<compile_context>
chip_gen: v6e
topology: v6e:2x2x1
jax: 0.10.0
libtpu: 0.0.40
codegen_flags: <defaults>
</compile_context>

<pallas_src>
import math

import jax
import jax.numpy as jnp
from jax.experimental import pallas as pl
from jax.experimental.pallas import tpu as pltpu

NUM_CLASSES = 11
LEAKY_SLOPE = 0.2
BN_EPS = 1e-5
CIN_PADDED = 16          # conv1 input channels padded 11 -> 16  (K1 = 256)


def _num_tensorcores():
    """Best-effort TensorCore count (1 on v5e/v6e, 2 on v7x); safe fallback."""
    try:
        info = pltpu.get_tpu_info()
    except Exception:
        return 1
    for attr in ("num_cores", "core_count", "num_tensorcores",
                 "tensor_core_count"):
        v = getattr(info, attr, None)
        if isinstance(v, int) and v > 0:
            return v
    return 1


_NUM_TC = _num_tensorcores()


def _wmat(w):
    """PyTorch (O, I, kh, kw) conv weight -> (I*kh*kw, O) matmul weight.

    Row ordering (I, kh, kw) matches lax.conv_general_dilated_patches'
    channel-major patch feature ordering.
    """
    return w.reshape(w.shape[0], -1).T


def _extract_patches(x_nhwc, k, stride, pad):
    """im2col glue: (N,H,W,C) -> (N*oh*ow, C*k*k); features ordered (C,kh,kw)."""
    N, H, W, C = x_nhwc.shape
    patches = jax.lax.conv_general_dilated_patches(
        x_nhwc, filter_shape=(k, k), window_strides=(stride, stride),
        padding=((pad, pad), (pad, pad)),
        dimension_numbers=("NHWC", "HWIO", "NHWC"))
    oh = (H + 2 * pad - k) // stride + 1
    ow = (W + 2 * pad - k) // stride + 1
    return patches.reshape(N * oh * ow, C * k * k), oh, ow


# --------------------------------------------------------------------------
# Pallas kernels (each is a whole-K matmul with a fused epilogue)
# --------------------------------------------------------------------------
def _mm_leaky_kernel(a_ref, b_ref, o_ref):
    """(tm, K) @ (K, O) on the MXU, fused LeakyReLU(0.2)."""
    y = jnp.dot(a_ref[...], b_ref[...], preferred_element_type=jnp.float32)
    o_ref[...] = jnp.where(y > 0, y, LEAKY_SLOPE * y).astype(o_ref.dtype)


def _mm_bn_leaky_kernel(a_ref, b_ref, g_ref, beta_ref, o_ref):
    """Whole-layer matmul + BatchNorm(batch stats, biased var) + LeakyReLU."""
    y = jnp.dot(a_ref[...], b_ref[...], preferred_element_type=jnp.float32)
    m = y.shape[0]                                        # static: N*H*W rows
    mean = jnp.sum(y, axis=0, keepdims=True) * (1.0 / m)
    d = y - mean
    var = jnp.sum(d * d, axis=0, keepdims=True) * (1.0 / m)
    z = d * jax.lax.rsqrt(var + BN_EPS) * g_ref[...] + beta_ref[...]
    o_ref[...] = jnp.where(z > 0, z, LEAKY_SLOPE * z).astype(o_ref.dtype)


def _mm_bn_leaky_head_kernel(a_ref, b_ref, g_ref, beta_ref, w4_ref, o_ref):
    """conv3 matmul + BN + LeakyReLU + fused conv4 (4x4, C->1) partial logits.

    Each grid step handles a lane-aligned slice of conv3's output channels.
    Its per-image partial conv4 logit is broadcast across the 128 lanes of its
    output block; the wrapper sums the per-slice partials and applies sigmoid.
    """
    y = jnp.dot(a_ref[...], b_ref[...], preferred_element_type=jnp.float32)
    m = y.shape[0]                                        # N * 4 * 4 rows
    mean = jnp.sum(y, axis=0, keepdims=True) * (1.0 / m)
    d = y - mean
    var = jnp.sum(d * d, axis=0, keepdims=True) * (1.0 / m)
    z = d * jax.lax.rsqrt(var + BN_EPS) * g_ref[...] + beta_ref[...]
    z = jnp.where(z > 0, z, LEAKY_SLOPE * z)              # (m, oc) f32
    s = w4_ref.shape[0]                                   # 16 spatial positions
    b = m // s                                            # batch
    # (m, oc) -> (b, 16, oc): 16-row groups = 2 sublane tiles, layout-neutral.
    prod = z.reshape(b, s, z.shape[1]) * w4_ref[...]      # (b, s, oc)
    part = jnp.sum(prod, axis=1)                          # (b, oc)
    part = jnp.sum(part, axis=1, keepdims=True)           # (b, 1) partial logit
    o_ref[...] = jnp.broadcast_to(part, o_ref.shape)


# --------------------------------------------------------------------------
# Layer wrappers
# --------------------------------------------------------------------------
def _conv_leaky(patches, w_mat):
    """conv1 (as matmul) + LeakyReLU; 2-way M split only when >1 TensorCore."""
    M, K = patches.shape
    O = w_mat.shape[1]
    mb = 2 if (_NUM_TC >= 2 and M % 2 == 0 and (M // 2) % 8 == 0) else 1
    tm = M // mb
    return pl.pallas_call(
        _mm_leaky_kernel,
        out_shape=jax.ShapeDtypeStruct((M, O), jnp.bfloat16),
        grid_spec=pltpu.PrefetchScalarGridSpec(
            num_scalar_prefetch=0,
            grid=(mb,),
            in_specs=[pl.BlockSpec((tm, K), lambda i: (i, 0)),
                      pl.BlockSpec((K, O), lambda i: (0, 0))],
            out_specs=pl.BlockSpec((tm, O), lambda i: (i, 0))),
        compiler_params=pltpu.CompilerParams(
            dimension_semantics=("parallel",)),
    )(patches, w_mat)


def _conv_bn_leaky(patches, w_mat, gamma2d, beta2d):
    """conv2 (as matmul) + BatchNorm + LeakyReLU in one gridless kernel."""
    M, _ = patches.shape
    O = w_mat.shape[1]
    return pl.pallas_call(
        _mm_bn_leaky_kernel,
        out_shape=jax.ShapeDtypeStruct((M, O), jnp.bfloat16),
    )(patches, w_mat, gamma2d, beta2d)


def _conv_bn_leaky_head(patches, w3_mat, gamma2d, beta2d, w4_rows, batch):
    """conv3 + BN + LeakyReLU + conv4 (+ sigmoid in wrapper); channel-split."""
    M, K = patches.shape
    O = w3_mat.shape[1]
    S = w4_rows.shape[0]                                  # 16 spatial positions
    nb = 2 if (_NUM_TC >= 2 and O % 256 == 0) else 1      # 256 -> 2 x 128
    oc = O // nb
    part = pl.pallas_call(
        _mm_bn_leaky_head_kernel,
        out_shape=jax.ShapeDtypeStruct((batch, 128 * nb), jnp.float32),
        grid_spec=pltpu.PrefetchScalarGridSpec(
            num_scalar_prefetch=0,
            grid=(nb,),
            in_specs=[pl.BlockSpec((M, K), lambda j: (0, 0)),
                      pl.BlockSpec((K, oc), lambda j: (0, j)),
                      pl.BlockSpec((1, oc), lambda j: (0, j)),
                      pl.BlockSpec((1, oc), lambda j: (0, j)),
                      pl.BlockSpec((S, oc), lambda j: (0, j))],
            out_specs=pl.BlockSpec((batch, 128), lambda j: (0, j))),
        compiler_params=pltpu.CompilerParams(
            dimension_semantics=("parallel",)),
    )(patches, w3_mat, gamma2d, beta2d, w4_rows)
    # Each block broadcast its partial logit over 128 lanes; take lane 0 of
    # each block, sum the per-channel-slice partials, apply sigmoid (2 floats).
    logits = jnp.sum(part.reshape(batch, nb, 128)[:, :, 0], axis=1)
    return jax.nn.sigmoid(logits)                         # (N,)


# --------------------------------------------------------------------------
# One-time parameter repacking (outside jit / off the per-call critical path)
# --------------------------------------------------------------------------
def prepare_params(params):
    w1 = params["w1"]                                     # (64, 11, 4, 4)
    cin = w1.shape[1]
    w1p = jnp.pad(w1, ((0, 0), (0, CIN_PADDED - cin), (0, 0), (0, 0)))
    w4 = params["w4"]                                     # (1, 256, 4, 4)
    kh4, kw4 = w4.shape[2], w4.shape[3]
    w4_rows = jnp.transpose(w4[0], (1, 2, 0)).reshape(kh4 * kw4, -1)
    return {
        "w1m": _wmat(w1p).astype(jnp.bfloat16),           # (256, 64)
        "w2m": _wmat(params["w2"]).astype(jnp.bfloat16),  # (1024, 128)
        "w3m": _wmat(params["w3"]).astype(jnp.bfloat16),  # (2048, 256)
        "g2": params["g2"].reshape(1, -1).astype(jnp.float32),
        "b2": params["b2"].reshape(1, -1).astype(jnp.float32),
        "g3": params["g3"].reshape(1, -1).astype(jnp.float32),
        "b3": params["b3"].reshape(1, -1).astype(jnp.float32),
        "w4r": w4_rows.astype(jnp.float32),               # (16, 256)
    }


# --------------------------------------------------------------------------
# Discriminator forward
# --------------------------------------------------------------------------
def discriminator_forward(x_nchw, prep):
    N = x_nchw.shape[0]
    x = jnp.transpose(x_nchw, (0, 2, 3, 1)).astype(jnp.bfloat16)    # NCHW->NHWC
    cpad = CIN_PADDED - x.shape[-1]
    if cpad > 0:                       # zero-pad channels 11 -> 16 (K1 = 256)
        x = jnp.pad(x, ((0, 0), (0, 0), (0, 0), (0, cpad)))

    # Conv(11->64, k4 s2 p1) + LeakyReLU(0.2)
    p1, oh1, ow1 = _extract_patches(x, 4, 2, 1)
    x = _conv_leaky(p1, prep["w1m"]).reshape(N, oh1, ow1, -1)       # (N,16,16,64)

    # Conv(64->128, k4 s2 p1) + BatchNorm + LeakyReLU(0.2)
    p2, oh2, ow2 = _extract_patches(x, 4, 2, 1)
    x = _conv_bn_leaky(p2, prep["w2m"], prep["g2"], prep["b2"]).reshape(
        N, oh2, ow2, -1)                                            # (N,8,8,128)

    # Conv(128->256, k4 s2 p1) + BN + LeakyReLU + Conv(256->1, k4 s1 p0) + Sigmoid
    p3, oh3, ow3 = _extract_patches(x, 4, 2, 1)
    assert oh3 * ow3 == prep["w4r"].shape[0], "final conv must cover whole map"
    return _conv_bn_leaky_head(p3, prep["w3m"], prep["g3"], prep["b3"],
                               prep["w4r"], N)                      # (N,)


# --------------------------------------------------------------------------
# Pure-JAX f32 reference (numerical sanity check)
# --------------------------------------------------------------------------
def reference_forward(x_nchw, params):
    def conv(x, w, stride, pad):
        return jax.lax.conv_general_dilated(
            x, w, (stride, stride), ((pad, pad), (pad, pad)),
            dimension_numbers=("NCHW", "OIHW", "NCHW"))

    def bn_leaky(x, g, b):
        mean = jnp.mean(x, axis=(0, 2, 3), keepdims=True)
        var = jnp.mean((x - mean) ** 2, axis=(0, 2, 3), keepdims=True)
        y = (x - mean) * jax.lax.rsqrt(var + BN_EPS)
        y = y * g.reshape(1, -1, 1, 1) + b.reshape(1, -1, 1, 1)
        return jnp.where(y > 0, y, LEAKY_SLOPE * y)

    y = x_nchw.astype(jnp.float32)
    y = conv(y, params["w1"], 2, 1)
    y = jnp.where(y > 0, y, LEAKY_SLOPE * y)
    y = bn_leaky(conv(y, params["w2"], 2, 1), params["g2"], params["b2"])
    y = bn_leaky(conv(y, params["w3"], 2, 1), params["g3"], params["b3"])
    y = jax.nn.sigmoid(conv(y, params["w4"], 1, 0))
    return y.reshape(-1)


def init_params(key):
    ks = jax.random.split(key, 4)

    def conv_w(k, o, i, kh, kw):
        fan_in = i * kh * kw
        bound = 1.0 / math.sqrt(fan_in)          # PyTorch-style uniform init
        return jax.random.uniform(k, (o, i, kh, kw), jnp.float32, -bound, bound)

    return {
        "w1": conv_w(ks[0], 64, NUM_CLASSES, 4, 4),
        "w2": conv_w(ks[1], 128, 64, 4, 4),
        "g2": jnp.ones((128,), jnp.float32),
        "b2": jnp.zeros((128,), jnp.float32),
        "w3": conv_w(ks[2], 256, 128, 4, 4),
        "g3": jnp.ones((256,), jnp.float32),
        "b3": jnp.zeros((256,), jnp.float32),
        "w4": conv_w(ks[3], 1, 256, 4, 4),
    }


if __name__ == "__main__":
    key = jax.random.PRNGKey(0)
    pkey, xkey = jax.random.split(key)
    params = init_params(pkey)
    prep = prepare_params(params)          # one-time repack, outside jit

    # Input consistent with the module: NCHW, 11 channels, 32x32 grid, batch=2.
    x = jax.random.normal(xkey, (2, NUM_CLASSES, 32, 32), jnp.float32)

    fwd = jax.jit(discriminator_forward)
    out = jax.block_until_ready(fwd(x, prep))

    assert out.shape == (2,), out.shape
    assert bool(jnp.all((out >= 0.0) & (out <= 1.0)))

    # Numerical sanity vs. pure-JAX f32 reference (loose tol: bf16 MXU operands).
    ref = jax.block_until_ready(jax.jit(reference_forward)(x, params))
    assert bool(jnp.all(jnp.abs(out - ref) < 5e-2)), (out, ref)

    print("KERNEL_OK")
</pallas_src>

<mosaic_0001>
module attributes {stable_mosaic.version = 11 : i64} {
  func.func @_mm_leaky_kernel(%arg0: i32, %arg1: memref<512x256xbf16, #tpu.memory_space<vmem>>, %arg2: memref<256x64xbf16, #tpu.memory_space<vmem>>, %arg3: memref<512x64xbf16, #tpu.memory_space<vmem>>) attributes {dimension_semantics = [#tpu.dimension_semantics<parallel>], iteration_bounds = array<i64: 1>, scalar_prefetch = 0 : i64, scratch_operands = 0 : i64, tpu.core_type = #tpu.core_type<tc>, window_params = [{transform_indices = @transform_0, window_bounds = array<i64: 512, 256>}, {pipeline_mode = #tpu.pipeline_mode<synchronous>, transform_indices = @transform_1, window_bounds = array<i64: 256, 64>}, {transform_indices = @transform_2, window_bounds = array<i64: 512, 64>}]} {
    %c0 = arith.constant 0 : index
    %c0_0 = arith.constant 0 : index
    %0 = vector.load %arg1[%c0, %c0_0] : memref<512x256xbf16, #tpu.memory_space<vmem>>, vector<512x256xbf16>
    %c0_1 = arith.constant 0 : index
    %c0_2 = arith.constant 0 : index
    %1 = vector.load %arg2[%c0_1, %c0_2] : memref<256x64xbf16, #tpu.memory_space<vmem>>, vector<256x64xbf16>
    %cst = arith.constant dense<0.000000e+00> : vector<512x64xf32>
    %2 = tpu.matmul %0, %1, %cst {dimension_numbers = #tpu.dot_dimension_numbers<[1], [0], [0], [1], [0, 0, 1, 1], [], []>} : vector<512x256xbf16>, vector<256x64xbf16>, vector<512x64xf32> -> vector<512x64xf32>
    %cst_3 = arith.constant 0.000000e+00 : f32
    %3 = vector.broadcast %cst_3 : f32 to vector<512x64xf32>
    %4 = arith.cmpf ogt, %2, %3 : vector<512x64xf32>
    %cst_4 = arith.constant 2.000000e-01 : f32
    %5 = vector.broadcast %cst_4 : f32 to vector<512x64xf32>
    %6 = arith.mulf %5, %2 : vector<512x64xf32>
    %7 = arith.select %4, %2, %6 : vector<512x64xi1>, vector<512x64xf32>
    %8 = arith.truncf %7 : vector<512x64xf32> to vector<512x64xbf16>
    %c0_5 = arith.constant 0 : index
    %c0_6 = arith.constant 0 : index
    %9 = vector.load %arg3[%c0_5, %c0_6] : memref<512x64xbf16, #tpu.memory_space<vmem>>, vector<512x64xbf16>
    tpu.vector_store %arg3[%c0_5, %c0_6], %8 {strides = array<i32>} : memref<512x64xbf16, #tpu.memory_space<vmem>>, vector<512x64xbf16>,
    return
  }
  func.func @transform_0(%arg0: i32) -> (i32, i32) {
    %c0_i32 = arith.constant 0 : i32
    %c0_i32_0 = arith.constant 0 : i32
    return %arg0, %c0_i32 : i32, i32
  }
  func.func @transform_1(%arg0: i32) -> (i32, i32) {
    %c0_i32 = arith.constant 0 : i32
    %c0_i32_0 = arith.constant 0 : i32
    %c0_i32_1 = arith.constant 0 : i32
    return %c0_i32, %c0_i32_0 : i32, i32
  }
  func.func @transform_2(%arg0: i32) -> (i32, i32) {
    %c0_i32 = arith.constant 0 : i32
    %c0_i32_0 = arith.constant 0 : i32
    return %arg0, %c0_i32 : i32, i32
  }
}

module attributes {stable_mosaic.version = 11 : i64} {
  func.func @_mm_bn_leaky_kernel(%arg0: memref<128x1024xbf16, #tpu.memory_space<vmem>>, %arg1: memref<1024x128xbf16, #tpu.memory_space<vmem>>, %arg2: memref<1x128xf32, #tpu.memory_space<vmem>>, %arg3: memref<1x128xf32, #tpu.memory_space<vmem>>, %arg4: memref<128x128xbf16, #tpu.memory_space<vmem>>) attributes {dimension_semantics = [], scalar_prefetch = 0 : i64, scratch_operands = 0 : i64, tpu.core_type = #tpu.core_type<tc>} {
    %c0 = arith.constant 0 : index
    %c0_0 = arith.constant 0 : index
    %0 = vector.load %arg0[%c0, %c0_0] : memref<128x1024xbf16, #tpu.memory_space<vmem>>, vector<128x1024xbf16>
    %c0_1 = arith.constant 0 : index
    %c0_2 = arith.constant 0 : index
    %1 = vector.load %arg1[%c0_1, %c0_2] : memref<1024x128xbf16, #tpu.memory_space<vmem>>, vector<1024x128xbf16>
    %cst = arith.constant dense<0.000000e+00> : vector<128x128xf32>
    %2 = tpu.matmul %0, %1, %cst {dimension_numbers = #tpu.dot_dimension_numbers<[1], [0], [0], [1], [0, 0, 1, 1], [], []>} : vector<128x1024xbf16>, vector<1024x128xbf16>, vector<128x128xf32> -> vector<128x128xf32>
    %cst_3 = arith.constant dense<0.000000e+00> : vector<128xf32>
    %3 = vector.multi_reduction <add>, %2, %cst_3 [0] : vector<128x128xf32> to vector<128xf32>
    %4 = vector.shape_cast %3 : vector<128xf32> to vector<1x128xf32>
    %cst_4 = arith.constant 7.812500e-03 : f32
    %5 = vector.broadcast %cst_4 : f32 to vector<1x128xf32>
    %6 = arith.mulf %4, %5 : vector<1x128xf32>
    %7 = vector.broadcast %6 : vector<1x128xf32> to vector<128x128xf32>
    %8 = arith.subf %2, %7 : vector<128x128xf32>
    %9 = arith.mulf %8, %8 : vector<128x128xf32>
    %cst_5 = arith.constant dense<0.000000e+00> : vector<128xf32>
    %10 = vector.multi_reduction <add>, %9, %cst_5 [0] : vector<128x128xf32> to vector<128xf32>
    %11 = vector.shape_cast %10 : vector<128xf32> to vector<1x128xf32>
    %cst_6 = arith.constant 7.812500e-03 : f32
    %12 = vector.broadcast %cst_6 : f32 to vector<1x128xf32>
    %13 = arith.mulf %11, %12 : vector<1x128xf32>
    %cst_7 = arith.constant 9.99999974E-6 : f32
    %14 = vector.broadcast %cst_7 : f32 to vector<1x128xf32>
    %15 = arith.addf %13, %14 : vector<1x128xf32>
    %16 = math.rsqrt %15 : vector<1x128xf32>
    %17 = vector.broadcast %16 : vector<1x128xf32> to vector<128x128xf32>
    %18 = arith.mulf %8, %17 : vector<128x128xf32>
    %c0_8 = arith.constant 0 : index
    %c0_9 = arith.constant 0 : index
    %19 = vector.load %arg2[%c0_8, %c0_9] : memref<1x128xf32, #tpu.memory_space<vmem>>, vector<1x128xf32>
    %20 = vector.broadcast %19 : vector<1x128xf32> to vector<128x128xf32>
    %21 = arith.mulf %18, %20 : vector<128x128xf32>
    %c0_10 = arith.constant 0 : index
    %c0_11 = arith.constant 0 : index
    %22 = vector.load %arg3[%c0_10, %c0_11] : memref<1x128xf32, #tpu.memory_space<vmem>>, vector<1x128xf32>
    %23 = vector.broadcast %22 : vector<1x128xf32> to vector<128x128xf32>
    %24 = arith.addf %21, %23 : vector<128x128xf32>
    %cst_12 = arith.constant 0.000000e+00 : f32
    %25 = vector.broadcast %cst_12 : f32 to vector<128x128xf32>
    %26 = arith.cmpf ogt, %24, %25 : vector<128x128xf32>
    %cst_13 = arith.constant 2.000000e-01 : f32
    %27 = vector.broadcast %cst_13 : f32 to vector<128x128xf32>
    %28 = arith.mulf %27, %24 : vector<128x128xf32>
    %29 = arith.select %26, %24, %28 : vector<128x128xi1>, vector<128x128xf32>
    %30 = arith.truncf %29 : vector<128x128xf32> to vector<128x128xbf16>
    %c0_14 = arith.constant 0 : index
    %c0_15 = arith.constant 0 : index
    %31 = vector.load %arg4[%c0_14, %c0_15] : memref<128x128xbf16, #tpu.memory_space<vmem>>, vector<128x128xbf16>
    tpu.vector_store %arg4[%c0_14, %c0_15], %30 {strides = array<i32>} : memref<128x128xbf16, #tpu.memory_space<vmem>>, vector<128x128xbf16>,
    return
  }
}

module attributes {stable_mosaic.version = 11 : i64} {
  func.func @_mm_bn_leaky_head_kernel(%arg0: i32, %arg1: memref<32x2048xbf16, #tpu.memory_space<vmem>>, %arg2: memref<2048x256xbf16, #tpu.memory_space<vmem>>, %arg3: memref<1x256xf32, #tpu.memory_space<vmem>>, %arg4: memref<1x256xf32, #tpu.memory_space<vmem>>, %arg5: memref<16x256xf32, #tpu.memory_space<vmem>>, %arg6: memref<2x128xf32, #tpu.memory_space<vmem>>) attributes {dimension_semantics = [#tpu.dimension_semantics<parallel>], iteration_bounds = array<i64: 1>, scalar_prefetch = 0 : i64, scratch_operands = 0 : i64, tpu.core_type = #tpu.core_type<tc>, window_params = [{pipeline_mode = #tpu.pipeline_mode<synchronous>, transform_indices = @transform_0, window_bounds = array<i64: 32, 2048>}, {transform_indices = @transform_1, window_bounds = array<i64: 2048, 256>}, {transform_indices = @transform_2, window_bounds = array<i64: 1, 256>}, {transform_indices = @transform_3, window_bounds = array<i64: 1, 256>}, {transform_indices = @transform_4, window_bounds = array<i64: 16, 256>}, {transform_indices = @transform_5, window_bounds = array<i64: 2, 128>}]} {
    %c0 = arith.constant 0 : index
    %c0_0 = arith.constant 0 : index
    %0 = vector.load %arg1[%c0, %c0_0] : memref<32x2048xbf16, #tpu.memory_space<vmem>>, vector<32x2048xbf16>
    %c0_1 = arith.constant 0 : index
    %c0_2 = arith.constant 0 : index
    %1 = vector.load %arg2[%c0_1, %c0_2] : memref<2048x256xbf16, #tpu.memory_space<vmem>>, vector<2048x256xbf16>
    %cst = arith.constant dense<0.000000e+00> : vector<32x256xf32>
    %2 = tpu.matmul %0, %1, %cst {dimension_numbers = #tpu.dot_dimension_numbers<[1], [0], [0], [1], [0, 0, 1, 1], [], []>} : vector<32x2048xbf16>, vector<2048x256xbf16>, vector<32x256xf32> -> vector<32x256xf32>
    %cst_3 = arith.constant dense<0.000000e+00> : vector<256xf32>
    %3 = vector.multi_reduction <add>, %2, %cst_3 [0] : vector<32x256xf32> to vector<256xf32>
    %4 = vector.shape_cast %3 : vector<256xf32> to vector<1x256xf32>
    %cst_4 = arith.constant 3.125000e-02 : f32
    %5 = vector.broadcast %cst_4 : f32 to vector<1x256xf32>
    %6 = arith.mulf %4, %5 : vector<1x256xf32>
    %7 = vector.broadcast %6 : vector<1x256xf32> to vector<32x256xf32>
    %8 = arith.subf %2, %7 : vector<32x256xf32>
    %9 = arith.mulf %8, %8 : vector<32x256xf32>
    %cst_5 = arith.constant dense<0.000000e+00> : vector<256xf32>
    %10 = vector.multi_reduction <add>, %9, %cst_5 [0] : vector<32x256xf32> to vector<256xf32>
    %11 = vector.shape_cast %10 : vector<256xf32> to vector<1x256xf32>
    %cst_6 = arith.constant 3.125000e-02 : f32
    %12 = vector.broadcast %cst_6 : f32 to vector<1x256xf32>
    %13 = arith.mulf %11, %12 : vector<1x256xf32>
    %cst_7 = arith.constant 9.99999974E-6 : f32
    %14 = vector.broadcast %cst_7 : f32 to vector<1x256xf32>
    %15 = arith.addf %13, %14 : vector<1x256xf32>
    %16 = math.rsqrt %15 : vector<1x256xf32>
    %17 = vector.broadcast %16 : vector<1x256xf32> to vector<32x256xf32>
    %18 = arith.mulf %8, %17 : vector<32x256xf32>
    %c0_8 = arith.constant 0 : index
    %c0_9 = arith.constant 0 : index
    %19 = vector.load %arg3[%c0_8, %c0_9] : memref<1x256xf32, #tpu.memory_space<vmem>>, vector<1x256xf32>
    %20 = vector.broadcast %19 : vector<1x256xf32> to vector<32x256xf32>
    %21 = arith.mulf %18, %20 : vector<32x256xf32>
    %c0_10 = arith.constant 0 : index
    %c0_11 = arith.constant 0 : index
    %22 = vector.load %arg4[%c0_10, %c0_11] : memref<1x256xf32, #tpu.memory_space<vmem>>, vector<1x256xf32>
    %23 = vector.broadcast %22 : vector<1x256xf32> to vector<32x256xf32>
    %24 = arith.addf %21, %23 : vector<32x256xf32>
    %cst_12 = arith.constant 0.000000e+00 : f32
    %25 = vector.broadcast %cst_12 : f32 to vector<32x256xf32>
    %26 = arith.cmpf ogt, %24, %25 : vector<32x256xf32>
    %cst_13 = arith.constant 2.000000e-01 : f32
    %27 = vector.broadcast %cst_13 : f32 to vector<32x256xf32>
    %28 = arith.mulf %27, %24 : vector<32x256xf32>
    %29 = arith.select %26, %24, %28 : vector<32x256xi1>, vector<32x256xf32>
    %30 = vector.shape_cast %29 : vector<32x256xf32> to vector<2x16x256xf32>
    %c0_14 = arith.constant 0 : index
    %c0_15 = arith.constant 0 : index
    %31 = vector.load %arg5[%c0_14, %c0_15] : memref<16x256xf32, #tpu.memory_space<vmem>>, vector<16x256xf32>
    %32 = vector.shape_cast %31 : vector<16x256xf32> to vector<1x16x256xf32>
    %33 = vector.broadcast %32 : vector<1x16x256xf32> to vector<2x16x256xf32>
    %34 = arith.mulf %30, %33 : vector<2x16x256xf32>
    %cst_16 = arith.constant dense<0.000000e+00> : vector<2x256xf32>
    %35 = vector.multi_reduction <add>, %34, %cst_16 [1] : vector<2x16x256xf32> to vector<2x256xf32>
    %cst_17 = arith.constant dense<0.000000e+00> : vector<2xf32>
    %36 = vector.multi_reduction <add>, %35, %cst_17 [1] : vector<2x256xf32> to vector<2xf32>
    %37 = vector.shape_cast %36 : vector<2xf32> to vector<2x1xf32>
    %38 = vector.shape_cast %37 : vector<2x1xf32> to vector<2x1xf32>
    %39 = vector.broadcast %38 : vector<2x1xf32> to vector<2x128xf32>
    %c0_18 = arith.constant 0 : index
    %c0_19 = arith.constant 0 : index
    %40 = vector.load %arg6[%c0_18, %c0_19] : memref<2x128xf32, #tpu.memory_space<vmem>>, vector<2x128xf32>
    tpu.vector_store %arg6[%c0_18, %c0_19], %39 {strides = array<i32>} : memref<2x128xf32, #tpu.memory_space<vmem>>, vector<2x128xf32>,
    return
  }
  func.func @transform_0(%arg0: i32) -> (i32, i32) {
    %c0_i32 = arith.constant 0 : i32
    %c0_i32_0 = arith.constant 0 : i32
    %c0_i32_1 = arith.constant 0 : i32
    return %c0_i32, %c0_i32_0 : i32, i32
  }
  func.func @transform_1(%arg0: i32) -> (i32, i32) {
    %c0_i32 = arith.constant 0 : i32
    %c0_i32_0 = arith.constant 0 : i32
    return %c0_i32, %arg0 : i32, i32
  }
  func.func @transform_2(%arg0: i32) -> (i32, i32) {
    %c0_i32 = arith.constant 0 : i32
    %c0_i32_0 = arith.constant 0 : i32
    return %c0_i32, %arg0 : i32, i32
  }
  func.func @transform_3(%arg0: i32) -> (i32, i32) {
    %c0_i32 = arith.constant 0 : i32
    %c0_i32_0 = arith.constant 0 : i32
    return %c0_i32, %arg0 : i32, i32
  }
  func.func @transform_4(%arg0: i32) -> (i32, i32) {
    %c0_i32 = arith.constant 0 : i32
    %c0_i32_0 = arith.constant 0 : i32
    return %c0_i32, %arg0 : i32, i32
  }
  func.func @transform_5(%arg0: i32) -> (i32, i32) {
    %c0_i32 = arith.constant 0 : i32
    %c0_i32_0 = arith.constant 0 : i32
    return %c0_i32, %arg0 : i32, i32
  }
}

</mosaic_0001>

<bundles_post_ra>
// kernel: discriminator_forward.3
= control target key start
LH: loop header
LB: loop body
LE: loop exit
PB: predicated region body
PF: predicated region fallthrough
CT: control target
= control target key end

     0   :  { %v1683_v0 = vmov 0   ;;  %vm1261_vm2 = vcmask 519168   ;;  %s2227_s1 = inlined_call_operand.vmem [shape: bf16[256,64], index: 1, kind: input, shape index: {}]   ;;  %s2228_s0 = inlined_call_operand.vmem [shape: bf16[512,256], index: 0, kind: input, shape index: {}]   ;;  %s2229_s2 = inlined_call_operand.vmem [shape: bf16[512,64], index: 2, kind: output, shape index: {}]  }
   0x1   :  { %524 = vmatprep.subr.bf16.mxu0 %v1683_v0  ;;  %1538 = vmatprep.subr.bf16.mxu1 %v1683_v0  ;;  %v1571_v1 = vld [vmem:[%s2227_s1 + $0x38] sm:$0xff]   ;;  %v1572_v2 = vld [vmem:[%s2227_s1 + $0x30] sm:$0xff]   ;;  %v1573_v3 = vld [vmem:[%s2227_s1 + $0x28] sm:$0xff]  }
   0x2   :  { %525 = vmatpush1.bf16.msra.mxu0 %v1571_v1  ;;  %1554 = vmatpush1.bf16.msra.mxu1 %v1571_v1  ;;  %v1574_v4 = vld [vmem:[%s2227_s1 + $0x20] sm:$0xff]   ;;  %v1575_v5 = vld [vmem:[%s2227_s1 + $0x18] sm:$0xff]   ;;  %v1576_v7 = vld [vmem:[%s2227_s1 + $0x10] sm:$0xff]  }
   0x3   :  { %526 = vmatprep.subr.bf16.mxu0 %v1683_v0  ;;  %1539 = vmatprep.subr.bf16.mxu1 %v1683_v0  ;;  %v1589_v6 = vld [vmem:[%s2228_s0 + $0x4] ss:$8 sps:$4 sm:$0xff]   ;;  %v1579_v11 = vld [vmem:[%s2227_s1 + $0x78] sm:$0xff]   ;;  %v1580_v12 = vld [vmem:[%s2227_s1 + $0x70] sm:$0xff]  }
   0x4   :  { %v1592_v8 = vld [vmem:[%s2228_s0 + $0x104] ss:$8 sps:$4 sm:$0xff]   ;;  %556 = vmatprep.mubr.bf16.mxu0 %v1589_v6  ;;  %v1583_v15 = vld [vmem:[%s2227_s1 + $0x58] sm:$0xff]   ;;  %v1584_v16 = vld [vmem:[%s2227_s1 + $0x50] sm:$0xff]  }
   0x5   :  { %684 = vmatprep.mubr.bf16.mxu1 %v1592_v8  ;;  %v1577_v9 = vld [vmem:[%s2227_s1 + $0x8] sm:$0xff]   ;;  %v1578_v10 = vld [vmem:[%s2227_s1] sm:$0xff]   ;;  %v1593_v21 = vld [vmem:[%s2228_s0 + $0x14] ss:$8 sps:$4 sm:$0xff]  }
   0x6   :  { %527 = vmatpush1.bf16.msra.mxu0 %v1572_v2  ;;  %1555 = vmatpush1.bf16.msra.mxu1 %v1572_v2  ;;  %v1581_v13 = vld [vmem:[%s2227_s1 + $0x68] sm:$0xff]   ;;  %v1582_v14 = vld [vmem:[%s2227_s1 + $0x60] sm:$0xff]   ;;  %v1595_v22 = vld [vmem:[%s2228_s0 + $0x114] ss:$8 sps:$4 sm:$0xff]  }
   0x7   :  { %528 = vmatprep.subr.bf16.mxu0 %v1683_v0  ;;  %1540 = vmatprep.subr.bf16.mxu1 %v1683_v0  ;;  %v1585_v17 = vld [vmem:[%s2227_s1 + $0x48] sm:$0xff]   ;;  %v1586_v18 = vld [vmem:[%s2227_s1 + $0x40] sm:$0xff]   ;;  %v1597_v23 = vld [vmem:[%s2228_s0 + $0x10] ss:$8 sps:$4 sm:$0xff]  }
   0x8   :  { %v1587_v19 = vld [vmem:[%s2228_s0] ss:$8 sps:$4 sm:$0xff]   ;;  %v1598_v24 = vld [vmem:[%s2228_s0 + $0x110] ss:$8 sps:$4 sm:$0xff]   ;;  %v1599_v25 = vld [vmem:[%s2228_s0 + $0x24] ss:$8 sps:$4 sm:$0xff]  }
   0x9   :  { %v1590_v20 = vld [vmem:[%s2228_s0 + $0x100] ss:$8 sps:$4 sm:$0xff]   ;;  %v1601_v26 = vld [vmem:[%s2228_s0 + $0x124] ss:$8 sps:$4 sm:$0xff]   ;;  %v1605_v29 = vld [vmem:[%s2228_s0 + $0x34] ss:$8 sps:$4 sm:$0xff]  }
   0xa   :  { %529 = vmatpush1.bf16.msra.mxu0 %v1573_v3  ;;  %1556 = vmatpush1.bf16.msra.mxu1 %v1573_v3  ;;  %v1603_v27 = vld [vmem:[%s2228_s0 + $0x20] ss:$8 sps:$4 sm:$0xff]   ;;  %v1607_v30 = vld [vmem:[%s2228_s0 + $0x134] ss:$8 sps:$4 sm:$0xff]   ;;  %v1609_v31 = vld [vmem:[%s2228_s0 + $0x30] ss:$8 sps:$4 sm:$0xff]  }
   0xb   :  { %530 = vmatprep.subr.bf16.mxu0 %v1683_v0  ;;  %1541 = vmatprep.subr.bf16.mxu1 %v1683_v0  ;;  %v1604_v28 = vld [vmem:[%s2228_s0 + $0x120] ss:$8 sps:$4 sm:$0xff]   ;;  %v1610_v32 = vld [vmem:[%s2228_s0 + $0x130] ss:$8 sps:$4 sm:$0xff]   ;;  %v1611_v33 = vld [vmem:[%s2228_s0 + $0x44] ss:$8 sps:$4 sm:$0xff]  }
   0xc   :  { %v1613_v34 = vld [vmem:[%s2228_s0 + $0x144] ss:$8 sps:$4 sm:$0xff]   ;;  %v1615_v35 = vld [vmem:[%s2228_s0 + $0x40] ss:$8 sps:$4 sm:$0xff]   ;;  %v1617_v37 = vld [vmem:[%s2228_s0 + $0x54] ss:$8 sps:$4 sm:$0xff]  }
   0xd   :  { %v1616_v36 = vld [vmem:[%s2228_s0 + $0x140] ss:$8 sps:$4 sm:$0xff]   ;;  %v1619_v38 = vld [vmem:[%s2228_s0 + $0x154] ss:$8 sps:$4 sm:$0xff]   ;;  %v1621_v39 = vld [vmem:[%s2228_s0 + $0x50] ss:$8 sps:$4 sm:$0xff]  }
   0xe   :  { %531 = vmatpush1.bf16.msra.mxu0 %v1574_v4  ;;  %1557 = vmatpush1.bf16.msra.mxu1 %v1574_v4  ;;  %v1622_v40 = vld [vmem:[%s2228_s0 + $0x150] ss:$8 sps:$4 sm:$0xff]   ;;  %v1623_v41 = vld [vmem:[%s2228_s0 + $0x64] ss:$8 sps:$4 sm:$0xff]   ;;  %v1627_v43 = vld [vmem:[%s2228_s0 + $0x60] ss:$8 sps:$4 sm:$0xff]  }
   0xf   :  { %532 = vmatprep.subr.bf16.mxu0 %v1683_v0  ;;  %1542 = vmatprep.subr.bf16.mxu1 %v1683_v0  ;;  %v1625_v42 = vld [vmem:[%s2228_s0 + $0x164] ss:$8 sps:$4 sm:$0xff]   ;;  %v1628_v44 = vld [vmem:[%s2228_s0 + $0x160] ss:$8 sps:$4 sm:$0xff]   ;;  %v1629_v45 = vld [vmem:[%s2228_s0 + $0x74] ss:$8 sps:$4 sm:$0xff]  }
  0x10   :  { %v1631_v46 = vld [vmem:[%s2228_s0 + $0x174] ss:$8 sps:$4 sm:$0xff]   ;;  %v1633_v47 = vld [vmem:[%s2228_s0 + $0x70] ss:$8 sps:$4 sm:$0xff]   ;;  %v1635_v49 = vld [vmem:[%s2228_s0 + $0x84] ss:$8 sps:$4 sm:$0xff]  }
  0x11   :  { %v1634_v48 = vld [vmem:[%s2228_s0 + $0x170] ss:$8 sps:$4 sm:$0xff]   ;;  %v1637_v50 = vld [vmem:[%s2228_s0 + $0x184] ss:$8 sps:$4 sm:$0xff]   ;;  %v1639_v51 = vld [vmem:[%s2228_s0 + $0x80] ss:$8 sps:$4 sm:$0xff]  }
  0x12   :  { %533 = vmatpush1.bf16.msra.mxu0 %v1575_v5  ;;  %1558 = vmatpush1.bf16.msra.mxu1 %v1575_v5  ;;  %v1640_v52 = vld [vmem:[%s2228_s0 + $0x180] ss:$8 sps:$4 sm:$0xff]   ;;  %v1641_v53 = vld [vmem:[%s2228_s0 + $0x94] ss:$8 sps:$4 sm:$0xff]   ;;  %v1645_v55 = vld [vmem:[%s2228_s0 + $0x90] ss:$8 sps:$4 sm:$0xff]  }
  0x13   :  { %534 = vmatprep.subr.bf16.mxu0 %v1683_v0  ;;  %1543 = vmatprep.subr.bf16.mxu1 %v1683_v0  ;;  %v1643_v54 = vld [vmem:[%s2228_s0 + $0x194] ss:$8 sps:$4 sm:$0xff]   ;;  %v1646_v56 = vld [vmem:[%s2228_s0 + $0x190] ss:$8 sps:$4 sm:$0xff]   ;;  %v1647_v57 = vld [vmem:[%s2228_s0 + $0xa4] ss:$8 sps:$4 sm:$0xff]  }
  0x14   :  { %v1649_v58 = vld [vmem:[%s2228_s0 + $0x1a4] ss:$8 sps:$4 sm:$0xff]   ;;  %v1651_v59 = vld [vmem:[%s2228_s0 + $0xa0] ss:$8 sps:$4 sm:$0xff]   ;;  %v1653_v61 = vld [vmem:[%s2228_s0 + $0xb4] ss:$8 sps:$4 sm:$0xff]  }
  0x15   :  { %v1652_v60 = vld [vmem:[%s2228_s0 + $0x1a0] ss:$8 sps:$4 sm:$0xff]   ;;  %v1655_v62 = vld [vmem:[%s2228_s0 + $0x1b4] ss:$8 sps:$4 sm:$0xff]   ;;  %v1657_v63 = vld [vmem:[%s2228_s0 + $0xb0] ss:$8 sps:$4 sm:$0xff]  }
  0x16   :  { %535 = vmatpush1.bf16.msra.mxu0 %v1576_v7  ;;  %1559 = vmatpush1.bf16.msra.mxu1 %v1576_v7  ;;  %v1659_v1 = vld [vmem:[%s2228_s0 + $0xc4] ss:$8 sps:$4 sm:$0xff]   ;;  %v1663_v3 = vld [vmem:[%s2228_s0 + $0xc0] ss:$8 sps:$4 sm:$0xff]   ;;  %v1665_v5 = vld [vmem:[%s2228_s0 + $0xd4] ss:$8 sps:$4 sm:$0xff]  }
  0x17   :  { %536 = vmatprep.subr.bf16.mxu0 %v1683_v0  ;;  %1544 = vmatprep.subr.bf16.mxu1 %v1683_v0  ;;  %v1661_v2 = vld [vmem:[%s2228_s0 + $0x1c4] ss:$8 sps:$4 sm:$0xff]   ;;  %v1664_v4 = vld [vmem:[%s2228_s0 + $0x1c0] ss:$8 sps:$4 sm:$0xff]   ;;  %v1667_v6 = vld [vmem:[%s2228_s0 + $0x1d4] ss:$8 sps:$4 sm:$0xff]  }
  0x18   :  { %v1669_v7 = vld [vmem:[%s2228_s0 + $0xd0] ss:$8 sps:$4 sm:$0xff]  }
  0x19   :  { %v1670_v8 = vld [vmem:[%s2228_s0 + $0x1d0] ss:$8 sps:$4 sm:$0xff]  }
  0x1a   :  { %537 = vmatpush1.bf16.msra.mxu0 %v1577_v9  ;;  %1560 = vmatpush1.bf16.msra.mxu1 %v1577_v9  ;;  %v1671_v9 = vld [vmem:[%s2228_s0 + $0xe4] ss:$8 sps:$4 sm:$0xff]  }
  0x1b   :  { %538 = vmatprep.subr.bf16.mxu0 %v1683_v0  ;;  %1545 = vmatprep.subr.bf16.mxu1 %v1683_v0 }
  0x1e   :  { %539 = vmatpush1.bf16.msra.mxu0 %v1578_v10  ;;  %1561 = vmatpush1.bf16.msra.mxu1 %v1578_v10  ;;  %v1673_v10 = vld [vmem:[%s2228_s0 + $0x1e4] ss:$8 sps:$4 sm:$0xff]  }
  0x1f   :  { %540 = vmatprep.subr.bf16.mxu0 %v1683_v0  ;;  %1546 = vmatprep.subr.bf16.mxu1 %v1683_v0 }
  0x22   :  { %541 = vmatpush2.bf16.msra.mxu0 %v1579_v11  ;;  %1562 = vmatpush2.bf16.msra.mxu1 %v1579_v11  ;;  %v1675_v11 = vld [vmem:[%s2228_s0 + $0xe0] ss:$8 sps:$4 sm:$0xff]  }
  0x23   :  { %542 = vmatprep.subr.bf16.mxu0 %v1683_v0  ;;  %1547 = vmatprep.subr.bf16.mxu1 %v1683_v0 }
  0x26   :  { %543 = vmatpush2.bf16.msra.mxu0 %v1580_v12  ;;  %1563 = vmatpush2.bf16.msra.mxu1 %v1580_v12  ;;  %v1676_v12 = vld [vmem:[%s2228_s0 + $0x1e0] ss:$8 sps:$4 sm:$0xff]  }
  0x27   :  { %544 = vmatprep.subr.bf16.mxu0 %v1683_v0  ;;  %1548 = vmatprep.subr.bf16.mxu1 %v1683_v0 }
  0x2a   :  { %545 = vmatpush2.bf16.msra.mxu0 %v1581_v13  ;;  %1564 = vmatpush2.bf16.msra.mxu1 %v1581_v13  ;;  %v1677_v13 = vld [vmem:[%s2228_s0 + $0xf4] ss:$8 sps:$4 sm:$0xff]  }
  0x2b   :  { %546 = vmatprep.subr.bf16.mxu0 %v1683_v0  ;;  %1549 = vmatprep.subr.bf16.mxu1 %v1683_v0 }
  0x2e   :  { %547 = vmatpush2.bf16.msra.mxu0 %v1582_v14  ;;  %1565 = vmatpush2.bf16.msra.mxu1 %v1582_v14  ;;  %v1679_v14 = vld [vmem:[%s2228_s0 + $0x1f4] ss:$8 sps:$4 sm:$0xff]  }
  0x2f   :  { %548 = vmatprep.subr.bf16.mxu0 %v1683_v0  ;;  %1550 = vmatprep.subr.bf16.mxu1 %v1683_v0 }
  0x32   :  { %549 = vmatpush2.bf16.msra.mxu0 %v1583_v15  ;;  %1566 = vmatpush2.bf16.msra.mxu1 %v1583_v15  ;;  %v1681_v15 = vld [vmem:[%s2228_s0 + $0xf0] ss:$8 sps:$4 sm:$0xff]  }
  0x33   :  { %550 = vmatprep.subr.bf16.mxu0 %v1683_v0  ;;  %1551 = vmatprep.subr.bf16.mxu1 %v1683_v0 }
  0x36   :  { %551 = vmatpush2.bf16.msra.mxu0 %v1584_v16  ;;  %1567 = vmatpush2.bf16.msra.mxu1 %v1584_v16  ;;  %v1682_v16 = vld [vmem:[%s2228_s0 + $0x1f0] ss:$8 sps:$4 sm:$0xff]  }
  0x37   :  { %552 = vmatprep.subr.bf16.mxu0 %v1683_v0  ;;  %1552 = vmatprep.subr.bf16.mxu1 %v1683_v0 }
  0x3a   :  { %553 = vmatpush2.bf16.msra.mxu0 %v1585_v17  ;;  %1568 = vmatpush2.bf16.msra.mxu1 %v1585_v17 }
  0x3b   :  { %554 = vmatprep.subr.bf16.mxu0 %v1683_v0  ;;  %1553 = vmatprep.subr.bf16.mxu1 %v1683_v0  ;;  %v1658_v0 = vld [vmem:[%s2228_s0 + $0x1b0] ss:$8 sps:$4 sm:$0xff]  }
  0x3e   :  { %555 = vmatpush2.bf16.msra.mxu0 %v1586_v18  ;;  %1569 = vmatpush2.bf16.msra.mxu1 %v1586_v18 }
  0x41   :  { %557 = vmatmul.mubr.bf16.vlgmr.msra.gmra.mxu0 %v1587_v19  ;;  %685 = vmatmul.mubr.bf16.vlgmr.msra.gmra.mxu1 %v1590_v20 }
  0x42   :  { %564 = vmatprep.mubr.bf16.mxu0 %v1593_v21  ;;  %692 = vmatprep.mubr.bf16.mxu1 %v1595_v22 }
  0x49   :  { %565 = vmatmul.mubr.bf16.gmra.mxu0 %v1597_v23  ;;  %693 = vmatmul.mubr.bf16.gmra.mxu1 %v1598_v24 }
  0x4a   :  { %572 = vmatprep.mubr.bf16.mxu0 %v1599_v25  ;;  %700 = vmatprep.mubr.bf16.mxu1 %v1601_v26 }
  0x51   :  { %573 = vmatmul.mubr.bf16.gmra.mxu0 %v1603_v27  ;;  %701 = vmatmul.mubr.bf16.gmra.mxu1 %v1604_v28 }
  0x52   :  { %580 = vmatprep.mubr.bf16.mxu0 %v1605_v29  ;;  %708 = vmatprep.mubr.bf16.mxu1 %v1607_v30 }
  0x59   :  { %581 = vmatmul.mubr.bf16.gmra.mxu0 %v1609_v31  ;;  %709 = vmatmul.mubr.bf16.gmra.mxu1 %v1610_v32 }
  0x5a   :  { %588 = vmatprep.mubr.bf16.mxu0 %v1611_v33  ;;  %716 = vmatprep.mubr.bf16.mxu1 %v1613_v34 }
  0x61   :  { %589 = vmatmul.mubr.bf16.gmra.mxu0 %v1615_v35  ;;  %717 = vmatmul.mubr.bf16.gmra.mxu1 %v1616_v36 }
  0x62   :  { %596 = vmatprep.mubr.bf16.mxu0 %v1617_v37  ;;  %724 = vmatprep.mubr.bf16.mxu1 %v1619_v38 }
  0x69   :  { %597 = vmatmul.mubr.bf16.gmra.mxu0 %v1621_v39  ;;  %725 = vmatmul.mubr.bf16.gmra.mxu1 %v1622_v40 }
  0x6a   :  { %604 = vmatprep.mubr.bf16.mxu0 %v1623_v41  ;;  %732 = vmatprep.mubr.bf16.mxu1 %v1625_v42 }
  0x71   :  { %605 = vmatmul.mubr.bf16.gmra.mxu0 %v1627_v43  ;;  %733 = vmatmul.mubr.bf16.gmra.mxu1 %v1628_v44 }
  0x72   :  { %612 = vmatprep.mubr.bf16.mxu0 %v1629_v45  ;;  %740 = vmatprep.mubr.bf16.mxu1 %v1631_v46 }
  0x79   :  { %613 = vmatmul.mubr.bf16.gmra.mxu0 %v1633_v47  ;;  %741 = vmatmul.mubr.bf16.gmra.mxu1 %v1634_v48 }
  0x7a   :  { %620 = vmatprep.mubr.bf16.mxu0 %v1635_v49  ;;  %748 = vmatprep.mubr.bf16.mxu1 %v1637_v50 }
  0x81   :  { %621 = vmatmul.mubr.bf16.gmra.mxu0 %v1639_v51  ;;  %749 = vmatmul.mubr.bf16.gmra.mxu1 %v1640_v52 }
  0x82   :  { %628 = vmatprep.mubr.bf16.mxu0 %v1641_v53  ;;  %756 = vmatprep.mubr.bf16.mxu1 %v1643_v54 }
  0x89   :  { %629 = vmatmul.mubr.bf16.gmra.mxu0 %v1645_v55  ;;  %757 = vmatmul.mubr.bf16.gmra.mxu1 %v1646_v56 }
  0x8a   :  { %636 = vmatprep.mubr.bf16.mxu0 %v1647_v57  ;;  %764 = vmatprep.mubr.bf16.mxu1 %v1649_v58 }
  0x91   :  { %637 = vmatmul.mubr.bf16.gmra.mxu0 %v1651_v59  ;;  %765 = vmatmul.mubr.bf16.gmra.mxu1 %v1652_v60 }
  0x92   :  { %644 = vmatprep.mubr.bf16.mxu0 %v1653_v61  ;;  %772 = vmatprep.mubr.bf16.mxu1 %v1655_v62 }
  0x99   :  { %645 = vmatmul.mubr.bf16.gmra.mxu0 %v1657_v63  ;;  %773 = vmatmul.mubr.bf16.gmra.mxu1 %v1658_v0 }
  0x9a   :  { %652 = vmatprep.mubr.bf16.mxu0 %v1659_v1  ;;  %780 = vmatprep.mubr.bf16.mxu1 %v1661_v2 }
  0xa1   :  { %653 = vmatmul.mubr.bf16.gmra.mxu0 %v1663_v3  ;;  %781 = vmatmul.mubr.bf16.gmra.mxu1 %v1664_v4 }
  0xa2   :  { %660 = vmatprep.mubr.bf16.mxu0 %v1665_v5  ;;  %788 = vmatprep.mubr.bf16.mxu1 %v1667_v6 }
  0xa9   :  { %661 = vmatmul.mubr.bf16.gmra.mxu0 %v1669_v7  ;;  %789 = vmatmul.mubr.bf16.gmra.mxu1 %v1670_v8 }
  0xaa   :  { %668 = vmatprep.mubr.bf16.mxu0 %v1671_v9  ;;  %796 = vmatprep.mubr.bf16.mxu1 %v1673_v10 }
  0xb1   :  { %669 = vmatmul.mubr.bf16.gmra.mxu0 %v1675_v11  ;;  %797 = vmatmul.mubr.bf16.gmra.mxu1 %v1676_v12 }
  0xb2   :  { %676 = vmatprep.mubr.bf16.mxu0 %v1677_v13  ;;  %804 = vmatprep.mubr.bf16.mxu1 %v1679_v14 }
  0xb9   :  { %677 = vmatmul.mubr.bf16.gmra.mxu0 %v1681_v15  ;;  %805 = vmatmul.mubr.bf16.gmra.mxu1 %v1682_v16 }
 0x101   :  { %v558_v17 = vpop.f32.mrf.mxu0  ;;  %v686_v18 = vpop.f32.mrf.mxu1 }
 0x102   :  { %vm813_vm0 = vcmp.gt.f32.partialorder %v558_v17, 0.0  ;;  %v877_v19 = vmul.f32 0.2, %v558_v17  ;;  %vm845_vm1 = vcmp.gt.f32.partialorder %v686_v18, 0.0  ;;  %v909_v20 = vmul.f32 0.2, %v686_v18 }
 0x103   :  { %v560_v21 = vpop.f32.mrf.mxu0  ;;  %v688_v22 = vpop.f32.mrf.mxu1 }
 0x104   :  { %v941_v23 = vsel %vm813_vm0, %v558_v17, %v877_v19  ;;  %v973_v24 = vsel %vm845_vm1, %v686_v18, %v909_v20 }
 0x105   :  { %v1474_v25 = vpack.c.bf16 %v941_v23, %v941_v23  ;;  %v1506_v26 = vpack.c.bf16 %v973_v24, %v973_v24  ;;  %v561_v27 = vpop.f32.mrf.mxu0  ;;  %v689_v28 = vpop.f32.mrf.mxu1 }
 0x106   :  { %vm814_vm3 = vcmp.gt.f32.partialorder %v561_v27, 0.0  ;;  %v878_v29 = vmul.f32 0.2, %v561_v27  ;;  %vm846_vm4 = vcmp.gt.f32.partialorder %v689_v28, 0.0  ;;  %v910_v30 = vmul.f32 0.2, %v689_v28 }
 0x107   :  { %1262 = vst.msk [vmem:[%s2229_s2] sm:$0xf] %vm1261_vm2, %v1474_v25  ;;  %1294 = vst.msk [vmem:[%s2229_s2 + $0x80] sm:$0xf] %vm1261_vm2, %v1506_v26  ;;  %v563_v31 = vpop.f32.mrf.mxu0  ;;  %v691_v32 = vpop.f32.mrf.mxu1 }
 0x108   :  { %v942_v33 = vsel %vm814_vm3, %v561_v27, %v878_v29  ;;  %v974_v34 = vsel %vm846_vm4, %v689_v28, %v910_v30 }
 0x109   :  { %v1475_v35 = vpack.c.bf16 %v942_v33, %v942_v33  ;;  %v1507_v36 = vpack.c.bf16 %v974_v34, %v974_v34  ;;  %v566_v37 = vpop.f32.mrf.mxu0  ;;  %v694_v38 = vpop.f32.mrf.mxu1 }
 0x10a   :  { %vm815_vm5 = vcmp.gt.f32.partialorder %v566_v37, 0.0  ;;  %v879_v39 = vmul.f32 0.2, %v566_v37  ;;  %vm847_vm6 = vcmp.gt.f32.partialorder %v694_v38, 0.0  ;;  %v911_v40 = vmul.f32 0.2, %v694_v38 }
 0x10b   :  { %1263 = vst.msk [vmem:[%s2229_s2 + $0x4] sm:$0xf] %vm1261_vm2, %v1475_v35  ;;  %1295 = vst.msk [vmem:[%s2229_s2 + $0x84] sm:$0xf] %vm1261_vm2, %v1507_v36  ;;  %v568_v41 = vpop.f32.mrf.mxu0  ;;  %v696_v42 = vpop.f32.mrf.mxu1 }
 0x10c   :  { %v943_v43 = vsel %vm815_vm5, %v566_v37, %v879_v39  ;;  %v975_v44 = vsel %vm847_vm6, %v694_v38, %v911_v40 }
 0x10d   :  { %v1476_v45 = vpack.c.bf16 %v943_v43, %v943_v43  ;;  %v1508_v46 = vpack.c.bf16 %v975_v44, %v975_v44  ;;  %v569_v47 = vpop.f32.mrf.mxu0  ;;  %v697_v48 = vpop.f32.mrf.mxu1 }
 0x10e   :  { %vm816_vm7 = vcmp.gt.f32.partialorder %v569_v47, 0.0  ;;  %v880_v49 = vmul.f32 0.2, %v569_v47  ;;  %vm848_vm8 = vcmp.gt.f32.partialorder %v697_v48, 0.0  ;;  %v912_v50 = vmul.f32 0.2, %v697_v48 }
 0x10f   :  { %1264 = vst.msk [vmem:[%s2229_s2 + $0x8] sm:$0xf] %vm1261_vm2, %v1476_v45  ;;  %1296 = vst.msk [vmem:[%s2229_s2 + $0x88] sm:$0xf] %vm1261_vm2, %v1508_v46  ;;  %v571_v51 = vpop.f32.mrf.mxu0  ;;  %v699_v52 = vpop.f32.mrf.mxu1 }
 0x110   :  { %v944_v53 = vsel %vm816_vm7, %v569_v47, %v880_v49  ;;  %v976_v54 = vsel %vm848_vm8, %v697_v48, %v912_v50 }
 0x111   :  { %v1477_v55 = vpack.c.bf16 %v944_v53, %v944_v53  ;;  %v1509_v56 = vpack.c.bf16 %v976_v54, %v976_v54  ;;  %v574_v57 = vpop.f32.mrf.mxu0  ;;  %v702_v58 = vpop.f32.mrf.mxu1 }
 0x112   :  { %vm817_vm9 = vcmp.gt.f32.partialorder %v574_v57, 0.0  ;;  %v881_v59 = vmul.f32 0.2, %v574_v57  ;;  %vm849_vm10 = vcmp.gt.f32.partialorder %v702_v58, 0.0  ;;  %v913_v60 = vmul.f32 0.2, %v702_v58 }
 0x113   :  { %1265 = vst.msk [vmem:[%s2229_s2 + $0xc] sm:$0xf] %vm1261_vm2, %v1477_v55  ;;  %1297 = vst.msk [vmem:[%s2229_s2 + $0x8c] sm:$0xf] %vm1261_vm2, %v1509_v56  ;;  %v576_v61 = vpop.f32.mrf.mxu0  ;;  %v704_v62 = vpop.f32.mrf.mxu1 }
 0x114   :  { %v945_v63 = vsel %vm817_vm9, %v574_v57, %v881_v59  ;;  %v977_v0 = vsel %vm849_vm10, %v702_v58, %v913_v60 }
 0x115   :  { %v1478_v1 = vpack.c.bf16 %v945_v63, %v945_v63  ;;  %v1510_v2 = vpack.c.bf16 %v977_v0, %v977_v0  ;;  %v577_v3 = vpop.f32.mrf.mxu0  ;;  %v705_v4 = vpop.f32.mrf.mxu1 }
 0x116   :  { %vm818_vm11 = vcmp.gt.f32.partialorder %v577_v3, 0.0  ;;  %v882_v5 = vmul.f32 0.2, %v577_v3  ;;  %vm850_vm12 = vcmp.gt.f32.partialorder %v705_v4, 0.0  ;;  %v914_v6 = vmul.f32 0.2, %v705_v4 }
 0x117   :  { %1266 = vst.msk [vmem:[%s2229_s2 + $0x10] sm:$0xf] %vm1261_vm2, %v1478_v1  ;;  %1298 = vst.msk [vmem:[%s2229_s2 + $0x90] sm:$0xf] %vm1261_vm2, %v1510_v2  ;;  %v579_v7 = vpop.f32.mrf.mxu0  ;;  %v707_v8 = vpop.f32.mrf.mxu1 }
 0x118   :  { %v946_v9 = vsel %vm818_vm11, %v577_v3, %v882_v5  ;;  %v978_v10 = vsel %vm850_vm12, %v705_v4, %v914_v6 }
 0x119   :  { %v1479_v11 = vpack.c.bf16 %v946_v9, %v946_v9  ;;  %v1511_v12 = vpack.c.bf16 %v978_v10, %v978_v10  ;;  %v582_v13 = vpop.f32.mrf.mxu0  ;;  %v710_v14 = vpop.f32.mrf.mxu1 }
 0x11a   :  { %vm819_vm13 = vcmp.gt.f32.partialorder %v582_v13, 0.0  ;;  %v883_v15 = vmul.f32 0.2, %v582_v13  ;;  %vm851_vm14 = vcmp.gt.f32.partialorder %v710_v14, 0.0  ;;  %v915_v16 = vmul.f32 0.2, %v710_v14 }
 0x11b   :  { %1267 = vst.msk [vmem:[%s2229_s2 + $0x14] sm:$0xf] %vm1261_vm2, %v1479_v11  ;;  %1299 = vst.msk [vmem:[%s2229_s2 + $0x94] sm:$0xf] %vm1261_vm2, %v1511_v12  ;;  %v584_v17 = vpop.f32.mrf.mxu0  ;;  %v712_v18 = vpop.f32.mrf.mxu1 }
 0x11c   :  { %v947_v19 = vsel %vm819_vm13, %v582_v13, %v883_v15  ;;  %v979_v20 = vsel %vm851_vm14, %v710_v14, %v915_v16 }
 0x11d   :  { %v1480_v21 = vpack.c.bf16 %v947_v19, %v947_v19  ;;  %v1512_v22 = vpack.c.bf16 %v979_v20, %v979_v20  ;;  %v585_v23 = vpop.f32.mrf.mxu0  ;;  %v713_v24 = vpop.f32.mrf.mxu1 }
 0x11e   :  { %vm820_vm15 = vcmp.gt.f32.partialorder %v585_v23, 0.0  ;;  %v884_v25 = vmul.f32 0.2, %v585_v23  ;;  %vm852_vm0 = vcmp.gt.f32.partialorder %v713_v24, 0.0  ;;  %v916_v26 = vmul.f32 0.2, %v713_v24 }
 0x11f   :  { %1268 = vst.msk [vmem:[%s2229_s2 + $0x18] sm:$0xf] %vm1261_vm2, %v1480_v21  ;;  %1300 = vst.msk [vmem:[%s2229_s2 + $0x98] sm:$0xf] %vm1261_vm2, %v1512_v22  ;;  %v587_v27 = vpop.f32.mrf.mxu0  ;;  %v715_v28 = vpop.f32.mrf.mxu1 }
 0x120   :  { %v948_v29 = vsel %vm820_vm15, %v585_v23, %v884_v25  ;;  %v980_v30 = vsel %vm852_vm0, %v713_v24, %v916_v26 }
 0x121   :  { %v1481_v31 = vpack.c.bf16 %v948_v29, %v948_v29  ;;  %v1513_v32 = vpack.c.bf16 %v980_v30, %v980_v30  ;;  %v590_v33 = vpop.f32.mrf.mxu0  ;;  %v718_v34 = vpop.f32.mrf.mxu1 }
 0x122   :  { %vm821_vm1 = vcmp.gt.f32.partialorder %v590_v33, 0.0  ;;  %v885_v35 = vmul.f32 0.2, %v590_v33  ;;  %vm853_vm3 = vcmp.gt.f32.partialorder %v718_v34, 0.0  ;;  %v917_v36 = vmul.f32 0.2, %v718_v34 }
 0x123   :  { %1269 = vst.msk [vmem:[%s2229_s2 + $0x1c] sm:$0xf] %vm1261_vm2, %v1481_v31  ;;  %1301 = vst.msk [vmem:[%s2229_s2 + $0x9c] sm:$0xf] %vm1261_vm2, %v1513_v32  ;;  %v592_v37 = vpop.f32.mrf.mxu0  ;;  %v720_v38 = vpop.f32.mrf.mxu1 }
 0x124   :  { %v949_v39 = vsel %vm821_vm1, %v590_v33, %v885_v35  ;;  %v981_v40 = vsel %vm853_vm3, %v718_v34, %v917_v36 }
 0x125   :  { %v1482_v41 = vpack.c.bf16 %v949_v39, %v949_v39  ;;  %v1514_v42 = vpack.c.bf16 %v981_v40, %v981_v40  ;;  %v593_v43 = vpop.f32.mrf.mxu0  ;;  %v721_v44 = vpop.f32.mrf.mxu1 }
 0x126   :  { %vm822_vm4 = vcmp.gt.f32.partialorder %v593_v43, 0.0  ;;  %v886_v45 = vmul.f32 0.2, %v593_v43  ;;  %vm854_vm5 = vcmp.gt.f32.partialorder %v721_v44, 0.0  ;;  %v918_v46 = vmul.f32 0.2, %v721_v44 }
 0x127   :  { %1270 = vst.msk [vmem:[%s2229_s2 + $0x20] sm:$0xf] %vm1261_vm2, %v1482_v41  ;;  %1302 = vst.msk [vmem:[%s2229_s2 + $0xa0] sm:$0xf] %vm1261_vm2, %v1514_v42  ;;  %v595_v47 = vpop.f32.mrf.mxu0  ;;  %v723_v48 = vpop.f32.mrf.mxu1 }
 0x128   :  { %v950_v49 = vsel %vm822_vm4, %v593_v43, %v886_v45  ;;  %v982_v50 = vsel %vm854_vm5, %v721_v44, %v918_v46 }
 0x129   :  { %v1483_v51 = vpack.c.bf16 %v950_v49, %v950_v49  ;;  %v1515_v52 = vpack.c.bf16 %v982_v50, %v982_v50  ;;  %v598_v53 = vpop.f32.mrf.mxu0  ;;  %v726_v54 = vpop.f32.mrf.mxu1 }
 0x12a   :  { %vm823_vm6 = vcmp.gt.f32.partialorder %v598_v53, 0.0  ;;  %v887_v55 = vmul.f32 0.2, %v598_v53  ;;  %vm855_vm7 = vcmp.gt.f32.partialorder %v726_v54, 0.0  ;;  %v919_v56 = vmul.f32 0.2, %v726_v54 }
 0x12b   :  { %1271 = vst.msk [vmem:[%s2229_s2 + $0x24] sm:$0xf] %vm1261_vm2, %v1483_v51  ;;  %1303 = vst.msk [vmem:[%s2229_s2 + $0xa4] sm:$0xf] %vm1261_vm2, %v1515_v52  ;;  %v600_v57 = vpop.f32.mrf.mxu0  ;;  %v728_v58 = vpop.f32.mrf.mxu1 }
 0x12c   :  { %v951_v59 = vsel %vm823_vm6, %v598_v53, %v887_v55  ;;  %v983_v60 = vsel %vm855_vm7, %v726_v54, %v919_v56 }
 0x12d   :  { %v1484_v61 = vpack.c.bf16 %v951_v59, %v951_v59  ;;  %v1516_v62 = vpack.c.bf16 %v983_v60, %v983_v60  ;;  %v601_v63 = vpop.f32.mrf.mxu0  ;;  %v729_v0 = vpop.f32.mrf.mxu1 }
 0x12e   :  { %vm824_vm8 = vcmp.gt.f32.partialorder %v601_v63, 0.0  ;;  %v888_v1 = vmul.f32 0.2, %v601_v63  ;;  %vm856_vm9 = vcmp.gt.f32.partialorder %v729_v0, 0.0  ;;  %v920_v2 = vmul.f32 0.2, %v729_v0 }
 0x12f   :  { %1272 = vst.msk [vmem:[%s2229_s2 + $0x28] sm:$0xf] %vm1261_vm2, %v1484_v61  ;;  %1304 = vst.msk [vmem:[%s2229_s2 + $0xa8] sm:$0xf] %vm1261_vm2, %v1516_v62  ;;  %v603_v3 = vpop.f32.mrf.mxu0  ;;  %v731_v4 = vpop.f32.mrf.mxu1 }
 0x130   :  { %v952_v5 = vsel %vm824_vm8, %v601_v63, %v888_v1  ;;  %v984_v6 = vsel %vm856_vm9, %v729_v0, %v920_v2 }
 0x131   :  { %v1485_v7 = vpack.c.bf16 %v952_v5, %v952_v5  ;;  %v1517_v8 = vpack.c.bf16 %v984_v6, %v984_v6  ;;  %v606_v9 = vpop.f32.mrf.mxu0  ;;  %v734_v10 = vpop.f32.mrf.mxu1 }
 0x132   :  { %vm825_vm10 = vcmp.gt.f32.partialorder %v606_v9, 0.0  ;;  %v889_v11 = vmul.f32 0.2, %v606_v9  ;;  %vm857_vm11 = vcmp.gt.f32.partialorder %v734_v10, 0.0  ;;  %v921_v12 = vmul.f32 0.2, %v734_v10 }
 0x133   :  { %1273 = vst.msk [vmem:[%s2229_s2 + $0x2c] sm:$0xf] %vm1261_vm2, %v1485_v7  ;;  %1305 = vst.msk [vmem:[%s2229_s2 + $0xac] sm:$0xf] %vm1261_vm2, %v1517_v8  ;;  %v608_v13 = vpop.f32.mrf.mxu0  ;;  %v736_v14 = vpop.f32.mrf.mxu1 }
 0x134   :  { %v953_v15 = vsel %vm825_vm10, %v606_v9, %v889_v11  ;;  %v985_v16 = vsel %vm857_vm11, %v734_v10, %v921_v12 }
 0x135   :  { %v1486_v17 = vpack.c.bf16 %v953_v15, %v953_v15  ;;  %v1518_v18 = vpack.c.bf16 %v985_v16, %v985_v16  ;;  %v609_v19 = vpop.f32.mrf.mxu0  ;;  %v737_v20 = vpop.f32.mrf.mxu1 }
 0x136   :  { %vm826_vm12 = vcmp.gt.f32.partialorder %v609_v19, 0.0  ;;  %v890_v21 = vmul.f32 0.2, %v609_v19  ;;  %vm858_vm13 = vcmp.gt.f32.partialorder %v737_v20, 0.0  ;;  %v922_v22 = vmul.f32 0.2, %v737_v20 }
 0x137   :  { %1274 = vst.msk [vmem:[%s2229_s2 + $0x30] sm:$0xf] %vm1261_vm2, %v1486_v17  ;;  %1306 = vst.msk [vmem:[%s2229_s2 + $0xb0] sm:$0xf] %vm1261_vm2, %v1518_v18  ;;  %v611_v23 = vpop.f32.mrf.mxu0  ;;  %v739_v24 = vpop.f32.mrf.mxu1 }
 0x138   :  { %v954_v25 = vsel %vm826_vm12, %v609_v19, %v890_v21  ;;  %v986_v26 = vsel %vm858_vm13, %v737_v20, %v922_v22 }
 0x139   :  { %v1487_v27 = vpack.c.bf16 %v954_v25, %v954_v25  ;;  %v1519_v28 = vpack.c.bf16 %v986_v26, %v986_v26  ;;  %v614_v29 = vpop.f32.mrf.mxu0  ;;  %v742_v30 = vpop.f32.mrf.mxu1 }
 0x13a   :  { %vm827_vm14 = vcmp.gt.f32.partialorder %v614_v29, 0.0  ;;  %v891_v31 = vmul.f32 0.2, %v614_v29  ;;  %vm859_vm15 = vcmp.gt.f32.partialorder %v742_v30, 0.0  ;;  %v923_v32 = vmul.f32 0.2, %v742_v30 }
 0x13b   :  { %1275 = vst.msk [vmem:[%s2229_s2 + $0x34] sm:$0xf] %vm1261_vm2, %v1487_v27  ;;  %1307 = vst.msk [vmem:[%s2229_s2 + $0xb4] sm:$0xf] %vm1261_vm2, %v1519_v28  ;;  %v616_v33 = vpop.f32.mrf.mxu0  ;;  %v744_v34 = vpop.f32.mrf.mxu1 }
 0x13c   :  { %v955_v35 = vsel %vm827_vm14, %v614_v29, %v891_v31  ;;  %v987_v36 = vsel %vm859_vm15, %v742_v30, %v923_v32 }
 0x13d   :  { %v1488_v37 = vpack.c.bf16 %v955_v35, %v955_v35  ;;  %v1520_v38 = vpack.c.bf16 %v987_v36, %v987_v36  ;;  %v617_v39 = vpop.f32.mrf.mxu0  ;;  %v745_v40 = vpop.f32.mrf.mxu1 }
 0x13e   :  { %vm828_vm0 = vcmp.gt.f32.partialorder %v617_v39, 0.0  ;;  %v892_v41 = vmul.f32 0.2, %v617_v39  ;;  %vm860_vm1 = vcmp.gt.f32.partialorder %v745_v40, 0.0  ;;  %v924_v42 = vmul.f32 0.2, %v745_v40 }
 0x13f   :  { %1276 = vst.msk [vmem:[%s2229_s2 + $0x38] sm:$0xf] %vm1261_vm2, %v1488_v37  ;;  %1308 = vst.msk [vmem:[%s2229_s2 + $0xb8] sm:$0xf] %vm1261_vm2, %v1520_v38  ;;  %v619_v43 = vpop.f32.mrf.mxu0  ;;  %v747_v44 = vpop.f32.mrf.mxu1 }
 0x140   :  { %v956_v45 = vsel %vm828_vm0, %v617_v39, %v892_v41  ;;  %v988_v46 = vsel %vm860_vm1, %v745_v40, %v924_v42 }
 0x141   :  { %v1489_v47 = vpack.c.bf16 %v956_v45, %v956_v45  ;;  %v1521_v48 = vpack.c.bf16 %v988_v46, %v988_v46  ;;  %v622_v49 = vpop.f32.mrf.mxu0  ;;  %v750_v50 = vpop.f32.mrf.mxu1 }
 0x142   :  { %vm829_vm3 = vcmp.gt.f32.partialorder %v622_v49, 0.0  ;;  %v893_v51 = vmul.f32 0.2, %v622_v49  ;;  %vm861_vm4 = vcmp.gt.f32.partialorder %v750_v50, 0.0  ;;  %v925_v52 = vmul.f32 0.2, %v750_v50 }
 0x143   :  { %1277 = vst.msk [vmem:[%s2229_s2 + $0x3c] sm:$0xf] %vm1261_vm2, %v1489_v47  ;;  %1309 = vst.msk [vmem:[%s2229_s2 + $0xbc] sm:$0xf] %vm1261_vm2, %v1521_v48  ;;  %v624_v53 = vpop.f32.mrf.mxu0  ;;  %v752_v54 = vpop.f32.mrf.mxu1 }
 0x144   :  { %v957_v55 = vsel %vm829_vm3, %v622_v49, %v893_v51  ;;  %v989_v56 = vsel %vm861_vm4, %v750_v50, %v925_v52 }
 0x145   :  { %v1490_v57 = vpack.c.bf16 %v957_v55, %v957_v55  ;;  %v1522_v58 = vpack.c.bf16 %v989_v56, %v989_v56  ;;  %v625_v59 = vpop.f32.mrf.mxu0  ;;  %v753_v60 = vpop.f32.mrf.mxu1 }
 0x146   :  { %vm830_vm5 = vcmp.gt.f32.partialorder %v625_v59, 0.0  ;;  %v894_v61 = vmul.f32 0.2, %v625_v59  ;;  %vm862_vm6 = vcmp.gt.f32.partialorder %v753_v60, 0.0  ;;  %v926_v62 = vmul.f32 0.2, %v753_v60 }
 0x147   :  { %1278 = vst.msk [vmem:[%s2229_s2 + $0x40] sm:$0xf] %vm1261_vm2, %v1490_v57  ;;  %1310 = vst.msk [vmem:[%s2229_s2 + $0xc0] sm:$0xf] %vm1261_vm2, %v1522_v58  ;;  %v627_v63 = vpop.f32.mrf.mxu0  ;;  %v755_v0 = vpop.f32.mrf.mxu1 }
 0x148   :  { %v958_v1 = vsel %vm830_vm5, %v625_v59, %v894_v61  ;;  %v990_v2 = vsel %vm862_vm6, %v753_v60, %v926_v62 }
 0x149   :  { %v1491_v3 = vpack.c.bf16 %v958_v1, %v958_v1  ;;  %v1523_v4 = vpack.c.bf16 %v990_v2, %v990_v2  ;;  %v630_v5 = vpop.f32.mrf.mxu0  ;;  %v758_v6 = vpop.f32.mrf.mxu1 }
 0x14a   :  { %vm831_vm7 = vcmp.gt.f32.partialorder %v630_v5, 0.0  ;;  %v895_v7 = vmul.f32 0.2, %v630_v5  ;;  %vm863_vm8 = vcmp.gt.f32.partialorder %v758_v6, 0.0  ;;  %v927_v8 = vmul.f32 0.2, %v758_v6 }
 0x14b   :  { %1279 = vst.msk [vmem:[%s2229_s2 + $0x44] sm:$0xf] %vm1261_vm2, %v1491_v3  ;;  %1311 = vst.msk [vmem:[%s2229_s2 + $0xc4] sm:$0xf] %vm1261_vm2, %v1523_v4  ;;  %v632_v9 = vpop.f32.mrf.mxu0  ;;  %v760_v10 = vpop.f32.mrf.mxu1 }
 0x14c   :  { %v959_v11 = vsel %vm831_vm7, %v630_v5, %v895_v7  ;;  %v991_v12 = vsel %vm863_vm8, %v758_v6, %v927_v8 }
 0x14d   :  { %v1492_v13 = vpack.c.bf16 %v959_v11, %v959_v11  ;;  %v1524_v14 = vpack.c.bf16 %v991_v12, %v991_v12  ;;  %v633_v15 = vpop.f32.mrf.mxu0  ;;  %v761_v16 = vpop.f32.mrf.mxu1 }
 0x14e   :  { %vm832_vm9 = vcmp.gt.f32.partialorder %v633_v15, 0.0  ;;  %v896_v17 = vmul.f32 0.2, %v633_v15  ;;  %vm864_vm10 = vcmp.gt.f32.partialorder %v761_v16, 0.0  ;;  %v928_v18 = vmul.f32 0.2, %v761_v16 }
 0x14f   :  { %1280 = vst.msk [vmem:[%s2229_s2 + $0x48] sm:$0xf] %vm1261_vm2, %v1492_v13  ;;  %1312 = vst.msk [vmem:[%s2229_s2 + $0xc8] sm:$0xf] %vm1261_vm2, %v1524_v14  ;;  %v635_v19 = vpop.f32.mrf.mxu0  ;;  %v763_v20 = vpop.f32.mrf.mxu1 }
 0x150   :  { %v960_v21 = vsel %vm832_vm9, %v633_v15, %v896_v17  ;;  %v992_v22 = vsel %vm864_vm10, %v761_v16, %v928_v18 }
 0x151   :  { %v1493_v23 = vpack.c.bf16 %v960_v21, %v960_v21  ;;  %v1525_v24 = vpack.c.bf16 %v992_v22, %v992_v22  ;;  %v638_v25 = vpop.f32.mrf.mxu0  ;;  %v766_v26 = vpop.f32.mrf.mxu1 }
 0x152   :  { %vm833_vm11 = vcmp.gt.f32.partialorder %v638_v25, 0.0  ;;  %v897_v27 = vmul.f32 0.2, %v638_v25  ;;  %vm865_vm12 = vcmp.gt.f32.partialorder %v766_v26, 0.0  ;;  %v929_v28 = vmul.f32 0.2, %v766_v26 }
 0x153   :  { %1281 = vst.msk [vmem:[%s2229_s2 + $0x4c] sm:$0xf] %vm1261_vm2, %v1493_v23  ;;  %1313 = vst.msk [vmem:[%s2229_s2 + $0xcc] sm:$0xf] %vm1261_vm2, %v1525_v24  ;;  %v640_v29 = vpop.f32.mrf.mxu0  ;;  %v768_v30 = vpop.f32.mrf.mxu1 }
 0x154   :  { %v961_v31 = vsel %vm833_vm11, %v638_v25, %v897_v27  ;;  %v993_v32 = vsel %vm865_vm12, %v766_v26, %v929_v28 }
 0x155   :  { %v1494_v33 = vpack.c.bf16 %v961_v31, %v961_v31  ;;  %v1526_v34 = vpack.c.bf16 %v993_v32, %v993_v32  ;;  %v641_v35 = vpop.f32.mrf.mxu0  ;;  %v769_v36 = vpop.f32.mrf.mxu1 }
 0x156   :  { %vm834_vm13 = vcmp.gt.f32.partialorder %v641_v35, 0.0  ;;  %v898_v37 = vmul.f32 0.2, %v641_v35  ;;  %vm866_vm14 = vcmp.gt.f32.partialorder %v769_v36, 0.0  ;;  %v930_v38 = vmul.f32 0.2, %v769_v36 }
 0x157   :  { %1282 = vst.msk [vmem:[%s2229_s2 + $0x50] sm:$0xf] %vm1261_vm2, %v1494_v33  ;;  %1314 = vst.msk [vmem:[%s2229_s2 + $0xd0] sm:$0xf] %vm1261_vm2, %v1526_v34  ;;  %v643_v39 = vpop.f32.mrf.mxu0  ;;  %v771_v40 = vpop.f32.mrf.mxu1 }
 0x158   :  { %v962_v41 = vsel %vm834_vm13, %v641_v35, %v898_v37  ;;  %v994_v42 = vsel %vm866_vm14, %v769_v36, %v930_v38 }
 0x159   :  { %v1495_v43 = vpack.c.bf16 %v962_v41, %v962_v41  ;;  %v1527_v44 = vpack.c.bf16 %v994_v42, %v994_v42  ;;  %v646_v45 = vpop.f32.mrf.mxu0  ;;  %v774_v46 = vpop.f32.mrf.mxu1 }
 0x15a   :  { %vm835_vm15 = vcmp.gt.f32.partialorder %v646_v45, 0.0  ;;  %v899_v47 = vmul.f32 0.2, %v646_v45  ;;  %vm867_vm0 = vcmp.gt.f32.partialorder %v774_v46, 0.0  ;;  %v931_v48 = vmul.f32 0.2, %v774_v46 }
 0x15b   :  { %1283 = vst.msk [vmem:[%s2229_s2 + $0x54] sm:$0xf] %vm1261_vm2, %v1495_v43  ;;  %1315 = vst.msk [vmem:[%s2229_s2 + $0xd4] sm:$0xf] %vm1261_vm2, %v1527_v44  ;;  %v648_v49 = vpop.f32.mrf.mxu0  ;;  %v776_v50 = vpop.f32.mrf.mxu1 }
 0x15c   :  { %v963_v51 = vsel %vm835_vm15, %v646_v45, %v899_v47  ;;  %v995_v52 = vsel %vm867_vm0, %v774_v46, %v931_v48 }
 0x15d   :  { %v1496_v53 = vpack.c.bf16 %v963_v51, %v963_v51  ;;  %v1528_v54 = vpack.c.bf16 %v995_v52, %v995_v52  ;;  %v649_v55 = vpop.f32.mrf.mxu0  ;;  %v777_v56 = vpop.f32.mrf.mxu1 }
 0x15e   :  { %vm836_vm1 = vcmp.gt.f32.partialorder %v649_v55, 0.0  ;;  %v900_v57 = vmul.f32 0.2, %v649_v55  ;;  %vm868_vm3 = vcmp.gt.f32.partialorder %v777_v56, 0.0  ;;  %v932_v58 = vmul.f32 0.2, %v777_v56 }
 0x15f   :  { %1284 = vst.msk [vmem:[%s2229_s2 + $0x58] sm:$0xf] %vm1261_vm2, %v1496_v53  ;;  %1316 = vst.msk [vmem:[%s2229_s2 + $0xd8] sm:$0xf] %vm1261_vm2, %v1528_v54  ;;  %v651_v59 = vpop.f32.mrf.mxu0  ;;  %v779_v60 = vpop.f32.mrf.mxu1 }
 0x160   :  { %v964_v61 = vsel %vm836_vm1, %v649_v55, %v900_v57  ;;  %v996_v62 = vsel %vm868_vm3, %v777_v56, %v932_v58 }
 0x161   :  { %v1497_v63 = vpack.c.bf16 %v964_v61, %v964_v61  ;;  %v1529_v0 = vpack.c.bf16 %v996_v62, %v996_v62  ;;  %v654_v1 = vpop.f32.mrf.mxu0  ;;  %v782_v2 = vpop.f32.mrf.mxu1 }
 0x162   :  { %vm837_vm4 = vcmp.gt.f32.partialorder %v654_v1, 0.0  ;;  %v901_v3 = vmul.f32 0.2, %v654_v1  ;;  %vm869_vm5 = vcmp.gt.f32.partialorder %v782_v2, 0.0  ;;  %v933_v4 = vmul.f32 0.2, %v782_v2 }
 0x163   :  { %1285 = vst.msk [vmem:[%s2229_s2 + $0x5c] sm:$0xf] %vm1261_vm2, %v1497_v63  ;;  %1317 = vst.msk [vmem:[%s2229_s2 + $0xdc] sm:$0xf] %vm1261_vm2, %v1529_v0  ;;  %v656_v5 = vpop.f32.mrf.mxu0  ;;  %v784_v6 = vpop.f32.mrf.mxu1 }
 0x164   :  { %v965_v7 = vsel %vm837_vm4, %v654_v1, %v901_v3  ;;  %v997_v8 = vsel %vm869_vm5, %v782_v2, %v933_v4 }
 0x165   :  { %v1498_v9 = vpack.c.bf16 %v965_v7, %v965_v7  ;;  %v1530_v10 = vpack.c.bf16 %v997_v8, %v997_v8  ;;  %v657_v11 = vpop.f32.mrf.mxu0  ;;  %v785_v12 = vpop.f32.mrf.mxu1 }
 0x166   :  { %vm838_vm6 = vcmp.gt.f32.partialorder %v657_v11, 0.0  ;;  %v902_v13 = vmul.f32 0.2, %v657_v11  ;;  %vm870_vm7 = vcmp.gt.f32.partialorder %v785_v12, 0.0  ;;  %v934_v14 = vmul.f32 0.2, %v785_v12 }
 0x167   :  { %1286 = vst.msk [vmem:[%s2229_s2 + $0x60] sm:$0xf] %vm1261_vm2, %v1498_v9  ;;  %1318 = vst.msk [vmem:[%s2229_s2 + $0xe0] sm:$0xf] %vm1261_vm2, %v1530_v10  ;;  %v659_v15 = vpop.f32.mrf.mxu0  ;;  %v787_v16 = vpop.f32.mrf.mxu1 }
 0x168   :  { %v966_v17 = vsel %vm838_vm6, %v657_v11, %v902_v13  ;;  %v998_v18 = vsel %vm870_vm7, %v785_v12, %v934_v14 }
 0x169   :  { %v1499_v19 = vpack.c.bf16 %v966_v17, %v966_v17  ;;  %v1531_v20 = vpack.c.bf16 %v998_v18, %v998_v18  ;;  %v662_v21 = vpop.f32.mrf.mxu0  ;;  %v790_v22 = vpop.f32.mrf.mxu1 }
 0x16a   :  { %vm839_vm8 = vcmp.gt.f32.partialorder %v662_v21, 0.0  ;;  %v903_v23 = vmul.f32 0.2, %v662_v21  ;;  %vm871_vm9 = vcmp.gt.f32.partialorder %v790_v22, 0.0  ;;  %v935_v24 = vmul.f32 0.2, %v790_v22 }
 0x16b   :  { %1287 = vst.msk [vmem:[%s2229_s2 + $0x64] sm:$0xf] %vm1261_vm2, %v1499_v19  ;;  %1319 = vst.msk [vmem:[%s2229_s2 + $0xe4] sm:$0xf] %vm1261_vm2, %v1531_v20  ;;  %v664_v25 = vpop.f32.mrf.mxu0  ;;  %v792_v26 = vpop.f32.mrf.mxu1 }
 0x16c   :  { %v967_v27 = vsel %vm839_vm8, %v662_v21, %v903_v23  ;;  %v999_v28 = vsel %vm871_vm9, %v790_v22, %v935_v24 }
 0x16d   :  { %v1500_v29 = vpack.c.bf16 %v967_v27, %v967_v27  ;;  %v1532_v30 = vpack.c.bf16 %v999_v28, %v999_v28  ;;  %v665_v31 = vpop.f32.mrf.mxu0  ;;  %v793_v32 = vpop.f32.mrf.mxu1 }
 0x16e   :  { %vm840_vm10 = vcmp.gt.f32.partialorder %v665_v31, 0.0  ;;  %v904_v33 = vmul.f32 0.2, %v665_v31  ;;  %vm872_vm11 = vcmp.gt.f32.partialorder %v793_v32, 0.0  ;;  %v936_v34 = vmul.f32 0.2, %v793_v32 }
 0x16f   :  { %1288 = vst.msk [vmem:[%s2229_s2 + $0x68] sm:$0xf] %vm1261_vm2, %v1500_v29  ;;  %1320 = vst.msk [vmem:[%s2229_s2 + $0xe8] sm:$0xf] %vm1261_vm2, %v1532_v30  ;;  %v667_v35 = vpop.f32.mrf.mxu0  ;;  %v795_v36 = vpop.f32.mrf.mxu1 }
 0x170   :  { %v968_v37 = vsel %vm840_vm10, %v665_v31, %v904_v33  ;;  %v1000_v38 = vsel %vm872_vm11, %v793_v32, %v936_v34 }
 0x171   :  { %v1501_v39 = vpack.c.bf16 %v968_v37, %v968_v37  ;;  %v1533_v40 = vpack.c.bf16 %v1000_v38, %v1000_v38  ;;  %v670_v41 = vpop.f32.mrf.mxu0  ;;  %v798_v42 = vpop.f32.mrf.mxu1 }
 0x172   :  { %vm841_vm12 = vcmp.gt.f32.partialorder %v670_v41, 0.0  ;;  %v905_v43 = vmul.f32 0.2, %v670_v41  ;;  %vm873_vm13 = vcmp.gt.f32.partialorder %v798_v42, 0.0  ;;  %v937_v44 = vmul.f32 0.2, %v798_v42 }
 0x173   :  { %1289 = vst.msk [vmem:[%s2229_s2 + $0x6c] sm:$0xf] %vm1261_vm2, %v1501_v39  ;;  %1321 = vst.msk [vmem:[%s2229_s2 + $0xec] sm:$0xf] %vm1261_vm2, %v1533_v40  ;;  %v672_v45 = vpop.f32.mrf.mxu0  ;;  %v800_v46 = vpop.f32.mrf.mxu1 }
 0x174   :  { %v969_v47 = vsel %vm841_vm12, %v670_v41, %v905_v43  ;;  %v1001_v48 = vsel %vm873_vm13, %v798_v42, %v937_v44 }
 0x175   :  { %v1502_v49 = vpack.c.bf16 %v969_v47, %v969_v47  ;;  %v1534_v50 = vpack.c.bf16 %v1001_v48, %v1001_v48  ;;  %v673_v51 = vpop.f32.mrf.mxu0  ;;  %v801_v52 = vpop.f32.mrf.mxu1 }
 0x176   :  { %vm842_vm14 = vcmp.gt.f32.partialorder %v673_v51, 0.0  ;;  %v906_v53 = vmul.f32 0.2, %v673_v51  ;;  %vm874_vm15 = vcmp.gt.f32.partialorder %v801_v52, 0.0  ;;  %v938_v54 = vmul.f32 0.2, %v801_v52 }
 0x177   :  { %1290 = vst.msk [vmem:[%s2229_s2 + $0x70] sm:$0xf] %vm1261_vm2, %v1502_v49  ;;  %1322 = vst.msk [vmem:[%s2229_s2 + $0xf0] sm:$0xf] %vm1261_vm2, %v1534_v50  ;;  %v675_v55 = vpop.f32.mrf.mxu0  ;;  %v803_v56 = vpop.f32.mrf.mxu1 }
 0x178   :  { %v970_v57 = vsel %vm842_vm14, %v673_v51, %v906_v53  ;;  %v1002_v58 = vsel %vm874_vm15, %v801_v52, %v938_v54 }
 0x179   :  { %v1503_v59 = vpack.c.bf16 %v970_v57, %v970_v57  ;;  %v1535_v60 = vpack.c.bf16 %v1002_v58, %v1002_v58  ;;  %v678_v61 = vpop.f32.mrf.mxu0  ;;  %v806_v62 = vpop.f32.mrf.mxu1 }
 0x17a   :  { %vm843_vm0 = vcmp.gt.f32.partialorder %v678_v61, 0.0  ;;  %v907_v63 = vmul.f32 0.2, %v678_v61  ;;  %vm875_vm1 = vcmp.gt.f32.partialorder %v806_v62, 0.0  ;;  %v939_v0 = vmul.f32 0.2, %v806_v62 }
 0x17b   :  { %1291 = vst.msk [vmem:[%s2229_s2 + $0x74] sm:$0xf] %vm1261_vm2, %v1503_v59  ;;  %1323 = vst.msk [vmem:[%s2229_s2 + $0xf4] sm:$0xf] %vm1261_vm2, %v1535_v60  ;;  %v680_v1 = vpop.f32.mrf.mxu0  ;;  %v808_v2 = vpop.f32.mrf.mxu1 }
 0x17c   :  { %v971_v3 = vsel %vm843_vm0, %v678_v61, %v907_v63  ;;  %v1003_v4 = vsel %vm875_vm1, %v806_v62, %v939_v0 }
 0x17d   :  { %v1504_v5 = vpack.c.bf16 %v971_v3, %v971_v3  ;;  %v1536_v6 = vpack.c.bf16 %v1003_v4, %v1003_v4  ;;  %v681_v7 = vpop.f32.mrf.mxu0  ;;  %v809_v8 = vpop.f32.mrf.mxu1 }
 0x17e   :  { %vm844_vm3 = vcmp.gt.f32.partialorder %v681_v7, 0.0  ;;  %v908_v9 = vmul.f32 0.2, %v681_v7  ;;  %vm876_vm4 = vcmp.gt.f32.partialorder %v809_v8, 0.0  ;;  %v940_v10 = vmul.f32 0.2, %v809_v8 }
 0x17f   :  { %1292 = vst.msk [vmem:[%s2229_s2 + $0x78] sm:$0xf] %vm1261_vm2, %v1504_v5  ;;  %1324 = vst.msk [vmem:[%s2229_s2 + $0xf8] sm:$0xf] %vm1261_vm2, %v1536_v6  ;;  %v683_v11 = vpop.f32.mrf.mxu0  ;;  %v811_v12 = vpop.f32.mrf.mxu1 }
 0x180   :  { %v972_v13 = vsel %vm844_vm3, %v681_v7, %v908_v9  ;;  %v1004_v14 = vsel %vm876_vm4, %v809_v8, %v940_v10 }
 0x181   :  { %v1505_v15 = vpack.c.bf16 %v972_v13, %v972_v13  ;;  %v1537_v16 = vpack.c.bf16 %v1004_v14, %v1004_v14 }
 0x183   :  { %1293 = vst.msk [vmem:[%s2229_s2 + $0x7c] sm:$0xf] %vm1261_vm2, %v1505_v15  ;;  %1325 = vst.msk [vmem:[%s2229_s2 + $0xfc] sm:$0xf] %vm1261_vm2, %v1537_v16 }

// kernel: discriminator_forward.4
= control target key start
LH: loop header
LB: loop body
LE: loop exit
PB: predicated region body
PF: predicated region fallthrough
CT: control target
= control target key end

     0   :  { %s2661_s1 = inlined_call_operand.vmem [shape: bf16[1024,128], index: 1, kind: input, shape index: {}]   ;;  %s2662_s0 = inlined_call_operand.vmem [shape: bf16[128,1024], index: 0, kind: input, shape index: {}]   ;;  %s2663_s2 = inlined_call_operand.vmem [shape: f32[1,128], index: 2, kind: input, shape index: {}]   ;;  %s2664_s3 = inlined_call_operand.vmem [shape: f32[1,128], index: 3, kind: input, shape index: {}]   ;;  %s2665_s4 = inlined_call_operand.vmem [shape: bf16[128,128], index: 4, kind: output, shape index: {}]  }
   0x1   :  { %v2039_v0 = vld [vmem:[%s2661_s1 + $0x78] sm:$0xff]   ;;  %v2043_v4 = vld [vmem:[%s2661_s1 + $0x70] sm:$0xff]   ;;  %v2047_v8 = vld [vmem:[%s2661_s1 + $0x68] sm:$0xff]  }
   0x2   :  { %v2040_v1 = vld [vmem:[%s2661_s1 + $0xf8] sm:$0xff]   ;;  %1783 = vmatprep.subr.bf16.mxu0 %v2039_v0  ;;  %v2044_v5 = vld [vmem:[%s2661_s1 + $0xf0] sm:$0xff]   ;;  %v2048_v9 = vld [vmem:[%s2661_s1 + $0xe8] sm:$0xff]  }
   0x3   :  { %v2041_v2 = vld [vmem:[%s2661_s1 + $0x38] sm:$0xff]   ;;  %1847 = vmatprep.subr.bf16.mxu1 %v2040_v1  ;;  %v2045_v6 = vld [vmem:[%s2661_s1 + $0x30] sm:$0xff]   ;;  %v2049_v10 = vld [vmem:[%s2661_s1 + $0x28] sm:$0xff]  }
   0x4   :  { %v2042_v3 = vld [vmem:[%s2661_s1 + $0xb8] sm:$0xff]   ;;  %1784 = vmatpush3.bf16.msra.mxu0 %v2041_v2  ;;  %v2046_v7 = vld [vmem:[%s2661_s1 + $0xb0] sm:$0xff]   ;;  %v2050_v11 = vld [vmem:[%s2661_s1 + $0xa8] sm:$0xff]  }
   0x5   :  { %1848 = vmatpush3.bf16.msra.mxu1 %v2042_v3  ;;  %1785 = vmatprep.subr.bf16.mxu0 %v2043_v4  ;;  %v2051_v12 = vld [vmem:[%s2661_s1 + $0x60] sm:$0xff]   ;;  %v2055_v16 = vld [vmem:[%s2661_s1 + $0x58] sm:$0xff]   ;;  %v2059_v20 = vld [vmem:[%s2661_s1 + $0x50] sm:$0xff]  }
   0x6   :  { %1849 = vmatprep.subr.bf16.mxu1 %v2044_v5  ;;  %v2052_v13 = vld [vmem:[%s2661_s1 + $0xe0] sm:$0xff]   ;;  %v2056_v17 = vld [vmem:[%s2661_s1 + $0xd8] sm:$0xff]   ;;  %v2060_v21 = vld [vmem:[%s2661_s1 + $0xd0] sm:$0xff]  }
   0x7   :  { %v2053_v14 = vld [vmem:[%s2661_s1 + $0x20] sm:$0xff]   ;;  %v2057_v18 = vld [vmem:[%s2661_s1 + $0x18] sm:$0xff]   ;;  %v2061_v22 = vld [vmem:[%s2661_s1 + $0x10] sm:$0xff]  }
   0x8   :  { %1786 = vmatpush3.bf16.msra.mxu0 %v2045_v6  ;;  %v2054_v15 = vld [vmem:[%s2661_s1 + $0xa0] sm:$0xff]   ;;  %v2058_v19 = vld [vmem:[%s2661_s1 + $0x98] sm:$0xff]   ;;  %v2062_v23 = vld [vmem:[%s2661_s1 + $0x90] sm:$0xff]  }
   0x9   :  { %1850 = vmatpush3.bf16.msra.mxu1 %v2046_v7  ;;  %1787 = vmatprep.subr.bf16.mxu0 %v2047_v8  ;;  %v2063_v24 = vld [vmem:[%s2661_s1 + $0x48] sm:$0xff]   ;;  %v2067_v28 = vld [vmem:[%s2661_s1 + $0x40] sm:$0xff]   ;;  %v2071_v40 = vld [vmem:[%s2661_s1 + $0x178] sm:$0xff]  }
   0xa   :  { %1851 = vmatprep.subr.bf16.mxu1 %v2048_v9  ;;  %v2064_v25 = vld [vmem:[%s2661_s1 + $0xc8] sm:$0xff]   ;;  %v2068_v29 = vld [vmem:[%s2661_s1 + $0xc0] sm:$0xff]   ;;  %v2072_v41 = vld [vmem:[%s2661_s1 + $0x138] sm:$0xff]  }
   0xb   :  { %v2065_v26 = vld [vmem:[%s2661_s1 + $0x8] sm:$0xff]   ;;  %v2069_v30 = vld [vmem:[%s2661_s1] sm:$0xff]   ;;  %v2073_v42 = vld [vmem:[%s2661_s1 + $0x1f8] sm:$0xff]  }
   0xc   :  { %1788 = vmatpush3.bf16.msra.mxu0 %v2049_v10  ;;  %v2066_v27 = vld [vmem:[%s2661_s1 + $0x88] sm:$0xff]   ;;  %v2070_v31 = vld [vmem:[%s2661_s1 + $0x80] sm:$0xff]   ;;  %v2074_v43 = vld [vmem:[%s2661_s1 + $0x1b8] sm:$0xff]  }
   0xd   :  { %1852 = vmatpush3.bf16.msra.mxu1 %v2050_v11  ;;  %1789 = vmatprep.subr.bf16.mxu0 %v2051_v12  ;;  %v18_v32 = vld [vmem:[%s2662_s0] sm:$0xff]  ;;  %v19_v34 = vld [vmem:[%s2662_s0 + $0x8] sm:$0xff]  ;;  %v2075_v50 = vld [vmem:[%s2661_s1 + $0x170] sm:$0xff]  }
   0xe   :  { %1853 = vmatprep.subr.bf16.mxu1 %v2052_v13  ;;  %v22_v33 = vld [vmem:[%s2662_s0 + $0x20] sm:$0xff]  ;;  %v23_v37 = vld [vmem:[%s2662_s0 + $0x28] sm:$0xff]  ;;  %v2076_v52 = vld [vmem:[%s2661_s1 + $0x130] sm:$0xff]  }
   0xf   :  { %v1574_v35 = vcombine.low %v18_v32, %v22_v33  ;;  %v1575_v36 = vcombine.high %v18_v32, %v22_v33  ;;  %v1576_v38 = vcombine.low %v19_v34, %v23_v37  ;;  %v1577_v39 = vcombine.high %v19_v34, %v23_v37  ;;  %v26_v44 = vld [vmem:[%s2662_s0 + $0x40] sm:$0xff]  ;;  %v27_v47 = vld [vmem:[%s2662_s0 + $0x48] sm:$0xff]  ;;  %v2077_v54 = vld [vmem:[%s2661_s1 + $0x1f0] sm:$0xff]  }
  0x10   :  { %1790 = vmatpush3.bf16.msra.mxu0 %v2053_v14  ;;  %v30_v45 = vld [vmem:[%s2662_s0 + $0x60] sm:$0xff]  ;;  %v31_v48 = vld [vmem:[%s2662_s0 + $0x68] sm:$0xff]  ;;  %v2078_v55 = vld [vmem:[%s2661_s1 + $0x1b0] sm:$0xff]  }
  0x11   :  { %1854 = vmatpush3.bf16.msra.mxu1 %v2054_v15  ;;  %1791 = vmatprep.subr.bf16.mxu0 %v2055_v16  ;;  %v1583_v46 = vcombine.high %v26_v44, %v30_v45  ;;  %v1585_v49 = vcombine.high %v27_v47, %v31_v48  ;;  %v1582_v51 = vcombine.low %v26_v44, %v30_v45  ;;  %v34_v56 = vld [vmem:[%s2662_s0 + $0x80] sm:$0xff]  ;;  %v35_v58 = vld [vmem:[%s2662_s0 + $0x88] sm:$0xff]  ;;  %v2093_v32 = vld [vmem:[%s2661_s1 + $0x1d0] sm:$0xff]  }
  0x12   :  { %1855 = vmatprep.subr.bf16.mxu1 %v2056_v17  ;;  %946 = vmatprep.mubr.bf16.mxu0 %v1575_v36  ;;  %v1584_v53 = vcombine.low %v27_v47, %v31_v48  ;;  %v38_v57 = vld [vmem:[%s2662_s0 + $0xa0] sm:$0xff]  ;;  %v39_v59 = vld [vmem:[%s2662_s0 + $0xa8] sm:$0xff]  ;;  %v2094_v33 = vld [vmem:[%s2661_s1 + $0x190] sm:$0xff]  }
  0x13   :  { %1043 = vmatprep.mubr.bf16.mxu1 %v1577_v39  ;;  %v1591_v60 = vcombine.high %v34_v56, %v38_v57  ;;  %v1593_v61 = vcombine.high %v35_v58, %v39_v59  ;;  %v2079_v62 = vld [vmem:[%s2661_s1 + $0x168] sm:$0xff]   ;;  %v1590_v2 = vcombine.low %v34_v56, %v38_v57  ;;  %v42_v3 = vld [vmem:[%s2662_s0 + $0xc0] sm:$0xff]  ;;  %v1592_v6 = vcombine.low %v35_v58, %v39_v59 }
  0x14   :  { %1792 = vmatpush3.bf16.msra.mxu0 %v2057_v18  ;;  %v2080_v63 = vld [vmem:[%s2661_s1 + $0x128] sm:$0xff]   ;;  %v46_v4 = vld [vmem:[%s2662_s0 + $0xe0] sm:$0xff]  ;;  %v2087_v18 = vld [vmem:[%s2661_s1 + $0x158] sm:$0xff]  }
  0x15   :  { %1856 = vmatpush3.bf16.msra.mxu1 %v2058_v19  ;;  %1793 = vmatprep.subr.bf16.mxu0 %v2059_v20  ;;  %v2081_v0 = vld [vmem:[%s2661_s1 + $0x1e8] sm:$0xff]   ;;  %v1599_v7 = vcombine.high %v42_v3, %v46_v4  ;;  %v2083_v10 = vld [vmem:[%s2661_s1 + $0x160] sm:$0xff]   ;;  %v1598_v19 = vcombine.low %v42_v3, %v46_v4  ;;  %v2088_v20 = vld [vmem:[%s2661_s1 + $0x118] sm:$0xff]  }
  0x16   :  { %1857 = vmatprep.subr.bf16.mxu1 %v2060_v21  ;;  %v2082_v1 = vld [vmem:[%s2661_s1 + $0x1a8] sm:$0xff]   ;;  %v2084_v11 = vld [vmem:[%s2661_s1 + $0x120] sm:$0xff]  }
  0x17   :  { %v43_v5 = vld [vmem:[%s2662_s0 + $0xc8] sm:$0xff]  ;;  %v2085_v12 = vld [vmem:[%s2661_s1 + $0x1e0] sm:$0xff]  }
  0x18   :  { %1794 = vmatpush3.bf16.msra.mxu0 %v2061_v22  ;;  %v47_v8 = vld [vmem:[%s2662_s0 + $0xe8] sm:$0xff]  ;;  %v2086_v13 = vld [vmem:[%s2661_s1 + $0x1a0] sm:$0xff]  }
  0x19   :  { %1858 = vmatpush3.bf16.msra.mxu1 %v2062_v23  ;;  %1795 = vmatprep.subr.bf16.mxu0 %v2063_v24  ;;  %v1601_v9 = vcombine.high %v43_v5, %v47_v8  ;;  %v50_v14 = vld [vmem:[%s2662_s0 + $0x100] sm:$0xff]  ;;  %v51_v16 = vld [vmem:[%s2662_s0 + $0x108] sm:$0xff]  ;;  %v1600_v21 = vcombine.low %v43_v5, %v47_v8  ;;  %v2089_v23 = vld [vmem:[%s2661_s1 + $0x1d8] sm:$0xff]  }
  0x1a   :  { %1859 = vmatprep.subr.bf16.mxu1 %v2064_v25  ;;  %v54_v15 = vld [vmem:[%s2662_s0 + $0x120] sm:$0xff]  ;;  %v55_v17 = vld [vmem:[%s2662_s0 + $0x128] sm:$0xff]  ;;  %v2090_v25 = vld [vmem:[%s2661_s1 + $0x198] sm:$0xff]  }
  0x1b   :  { %v1607_v22 = vcombine.high %v50_v14, %v54_v15  ;;  %v1609_v24 = vcombine.high %v51_v16, %v55_v17  ;;  %v1606_v34 = vcombine.low %v50_v14, %v54_v15  ;;  %v2096_v39 = vld [vmem:[%s2661_s1 + $0x108] sm:$0xff]   ;;  %v2100_v48 = vld [vmem:[%s2661_s1 + $0x100] sm:$0xff]   ;;  %v29_v8 = vld [vmem:[%s2662_s0 + $0x58] sm:$0xff] }
  0x1c   :  { %1796 = vmatpush3.bf16.msra.mxu0 %v2065_v26  ;;  %v58_v26 = vld [vmem:[%s2662_s0 + $0x140] sm:$0xff]  ;;  %v67_v44 = vld [vmem:[%s2662_s0 + $0x188] sm:$0xff]  ;;  %v36_v14 = vld [vmem:[%s2662_s0 + $0x90] sm:$0xff] }
  0x1d   :  { %1860 = vmatpush3.bf16.msra.mxu1 %v2066_v27  ;;  %1797 = vmatprep.subr.bf16.mxu0 %v2067_v28  ;;  %v62_v27 = vld [vmem:[%s2662_s0 + $0x160] sm:$0xff]  ;;  %v2091_v28 = vld [vmem:[%s2661_s1 + $0x150] sm:$0xff]   ;;  %v71_v45 = vld [vmem:[%s2662_s0 + $0x1a8] sm:$0xff] }
  0x1e   :  { %1861 = vmatprep.subr.bf16.mxu1 %v2068_v29  ;;  %v59_v29 = vld [vmem:[%s2662_s0 + $0x148] sm:$0xff]  ;;  %v1615_v36 = vcombine.high %v58_v26, %v62_v27  ;;  %v1614_v47 = vcombine.low %v58_v26, %v62_v27  ;;  %v1624_v59 = vcombine.low %v67_v44, %v71_v45  ;;  %v40_v15 = vld [vmem:[%s2662_s0 + $0xb0] sm:$0xff] }
  0x1f   :  { %v75_v56 = vld [vmem:[%s2662_s0 + $0x1c8] sm:$0xff]  ;;  %v1594_v26 = vcombine.low %v36_v14, %v40_v15 }
  0x20   :  { %1798 = vmatpush3.bf16.msra.mxu0 %v2069_v30  ;;  %v63_v30 = vld [vmem:[%s2662_s0 + $0x168] sm:$0xff] }
  0x21   :  { %1862 = vmatpush3.bf16.msra.mxu1 %v2070_v31  ;;  %1911 = vmatprep.subr.bf16.mxu0 %v2071_v40  ;;  %v2092_v31 = vld [vmem:[%s2661_s1 + $0x110] sm:$0xff]   ;;  %v1617_v37 = vcombine.high %v59_v29, %v63_v30  ;;  %v2097_v40 = vld [vmem:[%s2661_s1 + $0x1c8] sm:$0xff]  }
  0x22   :  { %1975 = vmatprep.subr.bf16.mxu1 %v2073_v42  ;;  %v70_v42 = vld [vmem:[%s2662_s0 + $0x1a0] sm:$0xff]  ;;  %v79_v57 = vld [vmem:[%s2662_s0 + $0x1e8] sm:$0xff] }
  0x23   :  { %947 = vmatmul.mubr.bf16.vlgmr.msra.gmra.mxu0 %v1574_v35  ;;  %v1608_v35 = vcombine.low %v51_v16, %v55_v17  ;;  %v1632_v3 = vcombine.low %v75_v56, %v79_v57  ;;  %v37_v16 = vld [vmem:[%s2662_s0 + $0x98] sm:$0xff] }
  0x24   :  { %1044 = vmatmul.mubr.bf16.vlgmr.msra.gmra.mxu1 %v1576_v38  ;;  %1912 = vmatpush3.bf16.msra.mxu0 %v2072_v41  ;;  %v2095_v38 = vld [vmem:[%s2661_s1 + $0x148] sm:$0xff]   ;;  %v66_v41 = vld [vmem:[%s2662_s0 + $0x180] sm:$0xff]  ;;  %v41_v17 = vld [vmem:[%s2662_s0 + $0xb8] sm:$0xff] }
  0x25   :  { %1976 = vmatpush3.bf16.msra.mxu1 %v2074_v43  ;;  %954 = vmatprep.mubr.bf16.mxu0 %v1583_v46  ;;  %v2098_v43 = vld [vmem:[%s2661_s1 + $0x188] sm:$0xff]   ;;  %v2099_v46 = vld [vmem:[%s2661_s1 + $0x140] sm:$0xff]   ;;  %v1622_v58 = vcombine.low %v66_v41, %v70_v42  ;;  %v1596_v27 = vcombine.low %v37_v16, %v41_v17 }
  0x26   :  { %1051 = vmatprep.mubr.bf16.mxu1 %v1585_v49  ;;  %1913 = vmatprep.subr.bf16.mxu0 %v2075_v50  ;;  %v1616_v49 = vcombine.low %v59_v29, %v63_v30  ;;  %v1623_v50 = vcombine.high %v66_v41, %v70_v42  ;;  %v52_v30 = vld [vmem:[%s2662_s0 + $0x110] sm:$0xff]  ;;  %v65_v41 = vld [vmem:[%s2662_s0 + $0x178] sm:$0xff] }
  0x27   :  { %1977 = vmatprep.subr.bf16.mxu1 %v2077_v54  ;;  %v74_v54 = vld [vmem:[%s2662_s0 + $0x1c0] sm:$0xff] }
  0x28   :  { %1914 = vmatpush3.bf16.msra.mxu0 %v2076_v52  ;;  %v1625_v52 = vcombine.high %v67_v44, %v71_v45 }
  0x29   :  { %1978 = vmatpush3.bf16.msra.mxu1 %v2078_v55  ;;  %1915 = vmatprep.subr.bf16.mxu0 %v2079_v62  ;;  %v78_v55 = vld [vmem:[%s2662_s0 + $0x1e0] sm:$0xff]  ;;  %v20_v62 = vld [vmem:[%s2662_s0 + $0x10] sm:$0xff] }
  0x2a   :  { %1979 = vmatprep.subr.bf16.mxu1 %v2081_v0  ;;  %v21_v0 = vld [vmem:[%s2662_s0 + $0x18] sm:$0xff] }
  0x2b   :  { %955 = vmatmul.mubr.bf16.gmra.mxu0 %v1582_v51  ;;  %v2101_v51 = vld [vmem:[%s2661_s1 + $0x1c0] sm:$0xff]  }
  0x2c   :  { %1052 = vmatmul.mubr.bf16.gmra.mxu1 %v1584_v53  ;;  %962 = vmatprep.mubr.bf16.mxu0 %v1591_v60  ;;  %v2102_v53 = vld [vmem:[%s2661_s1 + $0x180] sm:$0xff]   ;;  %v1631_v60 = vcombine.high %v74_v54, %v78_v55 }
  0x2d   :  { %1059 = vmatprep.mubr.bf16.mxu1 %v1593_v61  ;;  %1916 = vmatpush3.bf16.msra.mxu0 %v2080_v63  ;;  %v1633_v61 = vcombine.high %v75_v56, %v79_v57  ;;  %v24_v63 = vld [vmem:[%s2662_s0 + $0x30] sm:$0xff]  ;;  %v77_v56 = vld [vmem:[%s2662_s0 + $0x1d8] sm:$0xff] }
  0x2e   :  { %1980 = vmatpush3.bf16.msra.mxu1 %v2082_v1  ;;  %1917 = vmatprep.subr.bf16.mxu0 %v2083_v10  ;;  %v25_v1 = vld [vmem:[%s2662_s0 + $0x38] sm:$0xff]  ;;  %v1579_v4 = vcombine.high %v20_v62, %v24_v63  ;;  %v1578_v10 = vcombine.low %v20_v62, %v24_v63 }
  0x2f   :  { %1981 = vmatprep.subr.bf16.mxu1 %v2085_v12  ;;  %v1581_v5 = vcombine.high %v21_v0, %v25_v1  ;;  %v81_v57 = vld [vmem:[%s2662_s0 + $0x1f8] sm:$0xff] }
  0x30   :  { %v1636_v63 = vcombine.low %v77_v56, %v81_v57 }
  0x31   :  { %1918 = vmatpush3.bf16.msra.mxu0 %v2084_v11  ;;  %v1580_v11 = vcombine.low %v21_v0, %v25_v1 }
  0x32   :  { %1982 = vmatpush3.bf16.msra.mxu1 %v2086_v13  ;;  %1919 = vmatprep.subr.bf16.mxu0 %v2087_v18 }
  0x33   :  { %963 = vmatmul.mubr.bf16.gmra.mxu0 %v1590_v2  ;;  %1983 = vmatprep.subr.bf16.mxu1 %v2089_v23  ;;  %v1630_v2 = vcombine.low %v74_v54, %v78_v55  ;;  %v48_v23 = vld [vmem:[%s2662_s0 + $0xf0] sm:$0xff] }
  0x34   :  { %1060 = vmatmul.mubr.bf16.gmra.mxu1 %v1592_v6  ;;  %970 = vmatprep.mubr.bf16.mxu0 %v1599_v7  ;;  %v28_v6 = vld [vmem:[%s2662_s0 + $0x50] sm:$0xff] }
  0x35   :  { %1067 = vmatprep.mubr.bf16.mxu1 %v1601_v9  ;;  %1920 = vmatpush3.bf16.msra.mxu0 %v2088_v20  ;;  %v32_v7 = vld [vmem:[%s2662_s0 + $0x70] sm:$0xff]  ;;  %v33_v9 = vld [vmem:[%s2662_s0 + $0x78] sm:$0xff]  ;;  %v1595_v20 = vcombine.high %v36_v14, %v40_v15 }
  0x36   :  { %1984 = vmatpush3.bf16.msra.mxu1 %v2090_v25  ;;  %1921 = vmatprep.subr.bf16.mxu0 %v2091_v28  ;;  %v1587_v12 = vcombine.high %v28_v6, %v32_v7  ;;  %v1589_v13 = vcombine.high %v29_v8, %v33_v9  ;;  %v1586_v18 = vcombine.low %v28_v6, %v32_v7  ;;  %v49_v25 = vld [vmem:[%s2662_s0 + $0xf8] sm:$0xff]  ;;  %v76_v54 = vld [vmem:[%s2662_s0 + $0x1d0] sm:$0xff] }
  0x37   :  { %1985 = vmatprep.subr.bf16.mxu1 %v2093_v32  ;;  %v53_v32 = vld [vmem:[%s2662_s0 + $0x118] sm:$0xff]  ;;  %v80_v55 = vld [vmem:[%s2662_s0 + $0x1f0] sm:$0xff] }
  0x38   :  { %v1634_v62 = vcombine.low %v76_v54, %v80_v55 }
  0x39   :  { %1922 = vmatpush3.bf16.msra.mxu0 %v2092_v31  ;;  %v56_v31 = vld [vmem:[%s2662_s0 + $0x130] sm:$0xff] }
  0x3a   :  { %1986 = vmatpush3.bf16.msra.mxu1 %v2094_v33  ;;  %1923 = vmatprep.subr.bf16.mxu0 %v2095_v38  ;;  %v57_v33 = vld [vmem:[%s2662_s0 + $0x138] sm:$0xff]  ;;  %v60_v38 = vld [vmem:[%s2662_s0 + $0x150] sm:$0xff]  ;;  %v1610_v42 = vcombine.low %v52_v30, %v56_v31 }
  0x3b   :  { %971 = vmatmul.mubr.bf16.gmra.mxu0 %v1598_v19  ;;  %1987 = vmatprep.subr.bf16.mxu1 %v2097_v40  ;;  %v1588_v19 = vcombine.low %v29_v8, %v33_v9  ;;  %v61_v40 = vld [vmem:[%s2662_s0 + $0x158] sm:$0xff] }
  0x3c   :  { %1068 = vmatmul.mubr.bf16.gmra.mxu1 %v1600_v21  ;;  %978 = vmatprep.mubr.bf16.mxu0 %v1607_v22  ;;  %v1597_v21 = vcombine.high %v37_v16, %v41_v17  ;;  %v44_v22 = vld [vmem:[%s2662_s0 + $0xd0] sm:$0xff]  ;;  %v1621_v45 = vcombine.high %v61_v40, %v65_v41 }
  0x3d   :  { %1075 = vmatprep.mubr.bf16.mxu1 %v1609_v24  ;;  %1924 = vmatpush3.bf16.msra.mxu0 %v2096_v39  ;;  %v45_v24 = vld [vmem:[%s2662_s0 + $0xd8] sm:$0xff]  ;;  %v1603_v28 = vcombine.high %v44_v22, %v48_v23  ;;  %v64_v39 = vld [vmem:[%s2662_s0 + $0x170] sm:$0xff] }
  0x3e   :  { %1988 = vmatpush3.bf16.msra.mxu1 %v2098_v43  ;;  %1925 = vmatprep.subr.bf16.mxu0 %v2099_v46  ;;  %v1605_v29 = vcombine.high %v45_v24, %v49_v25  ;;  %v1612_v43 = vcombine.low %v53_v32, %v57_v33  ;;  %v1619_v44 = vcombine.high %v60_v38, %v64_v39  ;;  %v68_v46 = vld [vmem:[%s2662_s0 + $0x190] sm:$0xff] }
  0x3f   :  { %1989 = vmatprep.subr.bf16.mxu1 %v2101_v51  ;;  %v1620_v51 = vcombine.low %v61_v40, %v65_v41 }
  0x41   :  { %1926 = vmatpush3.bf16.msra.mxu0 %v2100_v48  ;;  %v69_v48 = vld [vmem:[%s2662_s0 + $0x198] sm:$0xff] }
  0x42   :  { %1990 = vmatpush3.bf16.msra.mxu1 %v2102_v53 }
  0x43   :  { %979 = vmatmul.mubr.bf16.gmra.mxu0 %v1606_v34  ;;  %v1602_v34 = vcombine.low %v44_v22, %v48_v23 }
  0x44   :  { %1076 = vmatmul.mubr.bf16.gmra.mxu1 %v1608_v35  ;;  %986 = vmatprep.mubr.bf16.mxu0 %v1615_v36  ;;  %v1604_v35 = vcombine.low %v45_v24, %v49_v25  ;;  %v1611_v36 = vcombine.high %v52_v30, %v56_v31 }
  0x45   :  { %1083 = vmatprep.mubr.bf16.mxu1 %v1617_v37  ;;  %v1613_v37 = vcombine.high %v53_v32, %v57_v33 }
  0x4b   :  { %987 = vmatmul.mubr.bf16.gmra.mxu0 %v1614_v47  ;;  %v72_v47 = vld [vmem:[%s2662_s0 + $0x1b0] sm:$0xff] }
  0x4c   :  { %1084 = vmatmul.mubr.bf16.gmra.mxu1 %v1616_v49  ;;  %994 = vmatprep.mubr.bf16.mxu0 %v1623_v50  ;;  %v73_v49 = vld [vmem:[%s2662_s0 + $0x1b8] sm:$0xff]  ;;  %v1618_v50 = vcombine.low %v60_v38, %v64_v39 }
  0x4d   :  { %1091 = vmatprep.mubr.bf16.mxu1 %v1625_v52  ;;  %v1627_v52 = vcombine.high %v68_v46, %v72_v47  ;;  %v1629_v53 = vcombine.high %v69_v48, %v73_v49 }
  0x53   :  { %995 = vmatmul.mubr.bf16.gmra.mxu0 %v1622_v58  ;;  %v1626_v58 = vcombine.low %v68_v46, %v72_v47 }
  0x54   :  { %1092 = vmatmul.mubr.bf16.gmra.mxu1 %v1624_v59  ;;  %1002 = vmatprep.mubr.bf16.mxu0 %v1631_v60  ;;  %v1628_v59 = vcombine.low %v69_v48, %v73_v49  ;;  %v1635_v60 = vcombine.high %v76_v54, %v80_v55 }
  0x55   :  { %1099 = vmatprep.mubr.bf16.mxu1 %v1633_v61  ;;  %v1637_v61 = vcombine.high %v77_v56, %v81_v57 }
  0x5b   :  { %1003 = vmatmul.mubr.bf16.gmra.mxu0 %v1630_v2 }
  0x5c   :  { %1100 = vmatmul.mubr.bf16.gmra.mxu1 %v1632_v3  ;;  %1140 = vmatprep.mubr.bf16.mxu0 %v1579_v4 }
  0x5d   :  { %1237 = vmatprep.mubr.bf16.mxu1 %v1581_v5 }
  0x63   :  { %1141 = vmatmul.mubr.bf16.vlgmr.msra.gmra.mxu0 %v1578_v10 }
  0x64   :  { %1238 = vmatmul.mubr.bf16.vlgmr.msra.gmra.mxu1 %v1580_v11  ;;  %1148 = vmatprep.mubr.bf16.mxu0 %v1587_v12 }
  0x65   :  { %1245 = vmatprep.mubr.bf16.mxu1 %v1589_v13 }
  0x6b   :  { %1149 = vmatmul.mubr.bf16.gmra.mxu0 %v1586_v18 }
  0x6c   :  { %1246 = vmatmul.mubr.bf16.gmra.mxu1 %v1588_v19  ;;  %1156 = vmatprep.mubr.bf16.mxu0 %v1595_v20 }
  0x6d   :  { %1253 = vmatprep.mubr.bf16.mxu1 %v1597_v21 }
  0x73   :  { %1157 = vmatmul.mubr.bf16.gmra.mxu0 %v1594_v26 }
  0x74   :  { %1254 = vmatmul.mubr.bf16.gmra.mxu1 %v1596_v27  ;;  %1164 = vmatprep.mubr.bf16.mxu0 %v1603_v28 }
  0x75   :  { %1261 = vmatprep.mubr.bf16.mxu1 %v1605_v29 }
  0x7b   :  { %1165 = vmatmul.mubr.bf16.gmra.mxu0 %v1602_v34 }
  0x7c   :  { %1262 = vmatmul.mubr.bf16.gmra.mxu1 %v1604_v35  ;;  %1172 = vmatprep.mubr.bf16.mxu0 %v1611_v36 }
  0x7d   :  { %1269 = vmatprep.mubr.bf16.mxu1 %v1613_v37 }
  0x83   :  { %1173 = vmatmul.mubr.bf16.gmra.mxu0 %v1610_v42 }
  0x84   :  { %1270 = vmatmul.mubr.bf16.gmra.mxu1 %v1612_v43  ;;  %1180 = vmatprep.mubr.bf16.mxu0 %v1619_v44 }
  0x85   :  { %1277 = vmatprep.mubr.bf16.mxu1 %v1621_v45 }
  0x8b   :  { %1181 = vmatmul.mubr.bf16.gmra.mxu0 %v1618_v50 }
  0x8c   :  { %1278 = vmatmul.mubr.bf16.gmra.mxu1 %v1620_v51  ;;  %1188 = vmatprep.mubr.bf16.mxu0 %v1627_v52 }
  0x8d   :  { %1285 = vmatprep.mubr.bf16.mxu1 %v1629_v53 }
  0x93   :  { %1189 = vmatmul.mubr.bf16.gmra.mxu0 %v1626_v58 }
  0x94   :  { %1286 = vmatmul.mubr.bf16.gmra.mxu1 %v1628_v59  ;;  %1196 = vmatprep.mubr.bf16.mxu0 %v1635_v60 }
  0x95   :  { %1293 = vmatprep.mubr.bf16.mxu1 %v1637_v61 }
  0x9b   :  { %1197 = vmatmul.mubr.bf16.gmra.mxu0 %v1634_v62 }
  0x9c   :  { %1294 = vmatmul.mubr.bf16.gmra.mxu1 %v1636_v63 }
  0xe3   :  { %v1799_v0 = vpop.f32.mrf.mxu0 }
  0xe4   :  { %v1863_v1 = vpop.f32.mrf.mxu1 }
  0xe5   :  { %v1800_v2 = vpop.f32.mrf.mxu0 }
  0xe6   :  { %v1801_v3 = vadd.f32 %v1800_v2, %v1799_v0  ;;  %v1864_v4 = vpop.f32.mrf.mxu1 }
  0xe7   :  { %v1865_v5 = vadd.f32 %v1864_v4, %v1863_v1  ;;  %v1802_v6 = vpop.f32.mrf.mxu0 }
  0xe8   :  { %v1866_v7 = vpop.f32.mrf.mxu1 }
  0xe9   :  { %v2514_v8 = vadd.f32 %v1865_v5, %v1801_v3  ;;  %v1803_v9 = vpop.f32.mrf.mxu0 }
  0xea   :  { %v1804_v10 = vadd.f32 %v1803_v9, %v1802_v6  ;;  %v1867_v11 = vpop.f32.mrf.mxu1 }
  0xeb   :  { %v1868_v12 = vadd.f32 %v1867_v11, %v1866_v7  ;;  %v1805_v13 = vpop.f32.mrf.mxu0 }
  0xec   :  { %v1869_v14 = vpop.f32.mrf.mxu1 }
  0xed   :  { %v2516_v15 = vadd.f32 %v1868_v12, %v1804_v10  ;;  %v1806_v16 = vpop.f32.mrf.mxu0 }
  0xee   :  { %v1807_v17 = vadd.f32 %v1806_v16, %v1805_v13  ;;  %v1870_v18 = vpop.f32.mrf.mxu1 }
  0xef   :  { %v1871_v19 = vadd.f32 %v1870_v18, %v1869_v14  ;;  %v1808_v20 = vpop.f32.mrf.mxu0 }
  0xf0   :  { %v1872_v21 = vpop.f32.mrf.mxu1 }
  0xf1   :  { %v2518_v22 = vadd.f32 %v1871_v19, %v1807_v17  ;;  %v1809_v23 = vpop.f32.mrf.mxu0 }
  0xf2   :  { %v1810_v24 = vadd.f32 %v1809_v23, %v1808_v20  ;;  %v1873_v25 = vpop.f32.mrf.mxu1 }
  0xf3   :  { %v1874_v26 = vadd.f32 %v1873_v25, %v1872_v21  ;;  %v1811_v27 = vpop.f32.mrf.mxu0 }
  0xf4   :  { %v1875_v28 = vpop.f32.mrf.mxu1 }
  0xf5   :  { %v2520_v29 = vadd.f32 %v1874_v26, %v1810_v24  ;;  %v1812_v30 = vpop.f32.mrf.mxu0 }
  0xf6   :  { %v1813_v31 = vadd.f32 %v1812_v30, %v1811_v27  ;;  %v1876_v32 = vpop.f32.mrf.mxu1 }
  0xf7   :  { %v1877_v33 = vadd.f32 %v1876_v32, %v1875_v28  ;;  %v1814_v34 = vpop.f32.mrf.mxu0 }
  0xf8   :  { %v1878_v35 = vpop.f32.mrf.mxu1 }
  0xf9   :  { %v2522_v36 = vadd.f32 %v1877_v33, %v1813_v31  ;;  %v1815_v37 = vpop.f32.mrf.mxu0 }
  0xfa   :  { %v1816_v38 = vadd.f32 %v1815_v37, %v1814_v34  ;;  %v1879_v39 = vpop.f32.mrf.mxu1 }
  0xfb   :  { %v1880_v40 = vadd.f32 %v1879_v39, %v1878_v35  ;;  %v1817_v41 = vpop.f32.mrf.mxu0 }
  0xfc   :  { %v1881_v42 = vpop.f32.mrf.mxu1 }
  0xfd   :  { %v2524_v43 = vadd.f32 %v1880_v40, %v1816_v38  ;;  %v1818_v44 = vpop.f32.mrf.mxu0 }
  0xfe   :  { %v1819_v45 = vadd.f32 %v1818_v44, %v1817_v41  ;;  %v1882_v46 = vpop.f32.mrf.mxu1 }
  0xff   :  { %v1883_v47 = vadd.f32 %v1882_v46, %v1881_v42  ;;  %v1820_v48 = vpop.f32.mrf.mxu0 }
 0x100   :  { %v1884_v49 = vpop.f32.mrf.mxu1 }
 0x101   :  { %v2526_v50 = vadd.f32 %v1883_v47, %v1819_v45  ;;  %v1821_v51 = vpop.f32.mrf.mxu0 }
 0x102   :  { %v1822_v52 = vadd.f32 %v1821_v51, %v1820_v48  ;;  %v1885_v53 = vpop.f32.mrf.mxu1 }
 0x103   :  { %v1886_v54 = vadd.f32 %v1885_v53, %v1884_v49  ;;  %v1823_v55 = vpop.f32.mrf.mxu0 }
 0x104   :  { %v1887_v56 = vpop.f32.mrf.mxu1 }
 0x105   :  { %v2528_v57 = vadd.f32 %v1886_v54, %v1822_v52  ;;  %v1824_v58 = vpop.f32.mrf.mxu0 }
 0x106   :  { %v1825_v59 = vadd.f32 %v1824_v58, %v1823_v55  ;;  %v1888_v60 = vpop.f32.mrf.mxu1 }
 0x107   :  { %v1889_v61 = vadd.f32 %v1888_v60, %v1887_v56  ;;  %v1826_v62 = vpop.f32.mrf.mxu0 }
 0x108   :  { %v1890_v63 = vpop.f32.mrf.mxu1 }
 0x109   :  { %v2530_v0 = vadd.f32 %v1889_v61, %v1825_v59  ;;  %v1827_v1 = vpop.f32.mrf.mxu0 }
 0x10a   :  { %v1828_v2 = vadd.f32 %v1827_v1, %v1826_v62  ;;  %v1891_v3 = vpop.f32.mrf.mxu1 }
 0x10b   :  { %v1892_v4 = vadd.f32 %v1891_v3, %v1890_v63  ;;  %v1829_v5 = vpop.f32.mrf.mxu0 }
 0x10c   :  { %v1893_v6 = vpop.f32.mrf.mxu1 }
 0x10d   :  { %v2532_v7 = vadd.f32 %v1892_v4, %v1828_v2  ;;  %v1830_v9 = vpop.f32.mrf.mxu0 }
 0x10e   :  { %v1831_v10 = vadd.f32 %v1830_v9, %v1829_v5  ;;  %v1894_v11 = vpop.f32.mrf.mxu1 }
 0x10f   :  { %v1895_v12 = vadd.f32 %v1894_v11, %v1893_v6  ;;  %v1832_v13 = vpop.f32.mrf.mxu0 }
 0x110   :  { %v1896_v14 = vpop.f32.mrf.mxu1 }
 0x111   :  { %v2534_v16 = vadd.f32 %v1895_v12, %v1831_v10  ;;  %v1833_v17 = vpop.f32.mrf.mxu0 }
 0x112   :  { %v1834_v18 = vadd.f32 %v1833_v17, %v1832_v13  ;;  %v1897_v19 = vpop.f32.mrf.mxu1 }
 0x113   :  { %v1898_v20 = vadd.f32 %v1897_v19, %v1896_v14  ;;  %v1835_v21 = vpop.f32.mrf.mxu0 }
 0x114   :  { %v1899_v23 = vpop.f32.mrf.mxu1 }
 0x115   :  { %v2536_v24 = vadd.f32 %v1898_v20, %v1834_v18  ;;  %v1836_v25 = vpop.f32.mrf.mxu0 }
 0x116   :  { %v1837_v26 = vadd.f32 %v1836_v25, %v1835_v21  ;;  %v1900_v27 = vpop.f32.mrf.mxu1 }
 0x117   :  { %v1901_v28 = vadd.f32 %v1900_v27, %v1899_v23  ;;  %v1838_v30 = vpop.f32.mrf.mxu0 }
 0x118   :  { %v1902_v31 = vpop.f32.mrf.mxu1 }
 0x119   :  { %v2538_v32 = vadd.f32 %v1901_v28, %v1837_v26  ;;  %v1839_v33 = vpop.f32.mrf.mxu0 }
 0x11a   :  { %v1840_v34 = vadd.f32 %v1839_v33, %v1838_v30  ;;  %v1903_v35 = vpop.f32.mrf.mxu1 }
 0x11b   :  { %v1904_v37 = vadd.f32 %v1903_v35, %v1902_v31  ;;  %v1841_v38 = vpop.f32.mrf.mxu0 }
 0x11c   :  { %v1905_v39 = vpop.f32.mrf.mxu1 }
 0x11d   :  { %v2540_v40 = vadd.f32 %v1904_v37, %v1840_v34  ;;  %v1842_v41 = vpop.f32.mrf.mxu0 }
 0x11e   :  { %v1843_v42 = vadd.f32 %v1842_v41, %v1841_v38  ;;  %v1906_v44 = vpop.f32.mrf.mxu1 }
 0x11f   :  { %v1907_v45 = vadd.f32 %v1906_v44, %v1905_v39  ;;  %v2542_v46 = vpop.f32.mrf.mxu0 }
 0x120   :  { %v2544_v47 = vpop.f32.mrf.mxu1 }
 0x121   :  { %v2546_v48 = vadd.f32 %v1907_v45, %v1843_v42  ;;  %v2548_v49 = vpop.f32.mrf.mxu0 }
 0x122   :  { %v2550_v51 = vpop.f32.mrf.mxu1 }
 0x123   :  { %v1927_v52 = vpop.f32.mrf.mxu0 }
 0x124   :  { %v1991_v53 = vpop.f32.mrf.mxu1 }
 0x125   :  { %v1928_v54 = vpop.f32.mrf.mxu0 }
 0x126   :  { %v1929_v55 = vadd.f32 %v1928_v54, %v1927_v52  ;;  %v1992_v56 = vpop.f32.mrf.mxu1 }
 0x127   :  { %v1930_v58 = vpop.f32.mrf.mxu0  ;;  %v1993_v2 = vadd.f32 %v1992_v56, %v1991_v53 }
 0x128   :  { %v1994_v59 = vpop.f32.mrf.mxu1  ;;  %v1143_v61 = vadd.f32 %v1929_v55, %v2514_v8 }
 0x129   :  { %v1931_v60 = vpop.f32.mrf.mxu0 }
 0x12a   :  { %v1932_v62 = vadd.f32 %v1931_v60, %v1930_v58  ;;  %v1995_v63 = vpop.f32.mrf.mxu1  ;;  %v2554_v9 = vadd.f32 %v1993_v2, %v1143_v61 }
 0x12b   :  { %v1933_v1 = vpop.f32.mrf.mxu0  ;;  %v1996_v4 = vadd.f32 %v1995_v63, %v1994_v59 }
 0x12c   :  { %v1146_v3 = vadd.f32 %v1932_v62, %v2516_v15  ;;  %v1997_v5 = vpop.f32.mrf.mxu1 }
 0x12d   :  { %v1934_v6 = vpop.f32.mrf.mxu0 }
 0x12e   :  { %v2556_v10 = vadd.f32 %v1996_v4, %v1146_v3  ;;  %v1935_v11 = vadd.f32 %v1934_v6, %v1933_v1  ;;  %v1998_v12 = vpop.f32.mrf.mxu1 }
 0x12f   :  { %v1936_v13 = vpop.f32.mrf.mxu0  ;;  %v1999_v17 = vadd.f32 %v1998_v12, %v1997_v5 }
 0x130   :  { %v1302_v14 = vadd.f32 %v2556_v10, %v2554_v9  ;;  %v1151_v8 = vadd.f32 %v1935_v11, %v2518_v22  ;;  %v2000_v18 = vpop.f32.mrf.mxu1 }
 0x131   :  { %v1937_v19 = vpop.f32.mrf.mxu0 }
 0x132   :  { %v2561_v20 = vadd.f32 %v1999_v17, %v1151_v8  ;;  %v1938_v15 = vadd.f32 %v1937_v19, %v1936_v13  ;;  %v2001_v21 = vpop.f32.mrf.mxu1 }
 0x133   :  { %v1939_v23 = vpop.f32.mrf.mxu0  ;;  %v2002_v27 = vadd.f32 %v2001_v21, %v2000_v18 }
 0x134   :  { %v1303_v25 = vadd.f32 %v1302_v14, %v2561_v20  ;;  %v1154_v26 = vadd.f32 %v1938_v15, %v2520_v29  ;;  %v2003_v28 = vpop.f32.mrf.mxu1 }
 0x135   :  { %v1940_v30 = vpop.f32.mrf.mxu0 }
 0x136   :  { %v2565_v31 = vadd.f32 %v2002_v27, %v1154_v26  ;;  %v1941_v33 = vadd.f32 %v1940_v30, %v1939_v23  ;;  %v2004_v34 = vpop.f32.mrf.mxu1 }
 0x137   :  { %v1942_v22 = vpop.f32.mrf.mxu0  ;;  %v2005_v38 = vadd.f32 %v2004_v34, %v2003_v28 }
 0x138   :  { %v1304_v35 = vadd.f32 %v1303_v25, %v2565_v31  ;;  %v1159_v37 = vadd.f32 %v1941_v33, %v2522_v36  ;;  %v2006_v39 = vpop.f32.mrf.mxu1 }
 0x139   :  { %v1943_v41 = vpop.f32.mrf.mxu0 }
 0x13a   :  { %v2569_v42 = vadd.f32 %v2005_v38, %v1159_v37  ;;  %v1944_v44 = vadd.f32 %v1943_v41, %v1942_v22  ;;  %v2007_v45 = vpop.f32.mrf.mxu1 }
 0x13b   :  { %v1945_v29 = vpop.f32.mrf.mxu0  ;;  %v2008_v54 = vadd.f32 %v2007_v45, %v2006_v39 }
 0x13c   :  { %v1305_v52 = vadd.f32 %v1304_v35, %v2569_v42  ;;  %v1162_v53 = vadd.f32 %v1944_v44, %v2524_v43  ;;  %v2009_v55 = vpop.f32.mrf.mxu1 }
 0x13d   :  { %v1946_v56 = vpop.f32.mrf.mxu0 }
 0x13e   :  { %v2573_v58 = vadd.f32 %v2008_v54, %v1162_v53  ;;  %v1947_v59 = vadd.f32 %v1946_v56, %v1945_v29  ;;  %v2010_v60 = vpop.f32.mrf.mxu1 }
 0x13f   :  { %v1948_v36 = vpop.f32.mrf.mxu0  ;;  %v2011_v63 = vadd.f32 %v2010_v60, %v2009_v55 }
 0x140   :  { %v1306_v61 = vadd.f32 %v1305_v52, %v2573_v58  ;;  %v1167_v62 = vadd.f32 %v1947_v59, %v2526_v50  ;;  %v2012_v1 = vpop.f32.mrf.mxu1 }
 0x141   :  { %v1949_v2 = vpop.f32.mrf.mxu0 }
 0x142   :  { %v2577_v3 = vadd.f32 %v2011_v63, %v1167_v62  ;;  %v1950_v4 = vadd.f32 %v1949_v2, %v1948_v36  ;;  %v2013_v5 = vpop.f32.mrf.mxu1 }
 0x143   :  { %v1951_v43 = vpop.f32.mrf.mxu0  ;;  %v2014_v12 = vadd.f32 %v2013_v5, %v2012_v1 }
 0x144   :  { %v1307_v6 = vadd.f32 %v1306_v61, %v2577_v3  ;;  %v1170_v11 = vadd.f32 %v1950_v4, %v2528_v57  ;;  %v2015_v13 = vpop.f32.mrf.mxu1 }
 0x145   :  { %v1952_v14 = vpop.f32.mrf.mxu0 }
 0x146   :  { %v2581_v8 = vadd.f32 %v2014_v12, %v1170_v11  ;;  %v1953_v17 = vadd.f32 %v1952_v14, %v1951_v43  ;;  %v2016_v18 = vpop.f32.mrf.mxu1 }
 0x147   :  { %v1954_v50 = vpop.f32.mrf.mxu0  ;;  %v2017_v21 = vadd.f32 %v2016_v18, %v2015_v13 }
 0x148   :  { %v1308_v19 = vadd.f32 %v1307_v6, %v2581_v8  ;;  %v1175_v15 = vadd.f32 %v1953_v17, %v2530_v0  ;;  %v2018_v23 = vpop.f32.mrf.mxu1 }
 0x149   :  { %v1955_v25 = vpop.f32.mrf.mxu0 }
 0x14a   :  { %v2585_v26 = vadd.f32 %v2017_v21, %v1175_v15  ;;  %v1956_v27 = vadd.f32 %v1955_v25, %v1954_v50  ;;  %v2019_v28 = vpop.f32.mrf.mxu1  ;;  %v1846_v15 = vadd.f32 %v2548_v49, %v2542_v46  ;;  %v1910_v21 = vadd.f32 %v2550_v51, %v2544_v47 }
 0x14b   :  { %v1957_v57 = vpop.f32.mrf.mxu0  ;;  %v2020_v34 = vadd.f32 %v2019_v28, %v2018_v23 }
 0x14c   :  { %v1309_v30 = vadd.f32 %v1308_v19, %v2585_v26  ;;  %v1178_v33 = vadd.f32 %v1956_v27, %v2532_v7  ;;  %v2021_v22 = vpop.f32.mrf.mxu1 }
 0x14d   :  { %v1958_v35 = vpop.f32.mrf.mxu0 }
 0x14e   :  { %v2589_v37 = vadd.f32 %v2020_v34, %v1178_v33  ;;  %v1959_v38 = vadd.f32 %v1958_v35, %v1957_v57  ;;  %v2022_v39 = vpop.f32.mrf.mxu1 }
 0x14f   :  { %v1960_v0 = vpop.f32.mrf.mxu0  ;;  %v2023_v45 = vadd.f32 %v2022_v39, %v2021_v22 }
 0x150   :  { %v1310_v41 = vadd.f32 %v1309_v30, %v2589_v37  ;;  %v1183_v44 = vadd.f32 %v1959_v38, %v2534_v16  ;;  %v2024_v29 = vpop.f32.mrf.mxu1 }
 0x151   :  { %v1961_v52 = vpop.f32.mrf.mxu0 }
 0x152   :  { %v2593_v53 = vadd.f32 %v2023_v45, %v1183_v44  ;;  %v1962_v54 = vadd.f32 %v1961_v52, %v1960_v0  ;;  %v2025_v55 = vpop.f32.mrf.mxu1 }
 0x153   :  { %v1963_v7 = vpop.f32.mrf.mxu0  ;;  %v2026_v60 = vadd.f32 %v2025_v55, %v2024_v29 }
 0x154   :  { %v1311_v56 = vadd.f32 %v1310_v41, %v2593_v53  ;;  %v1186_v59 = vadd.f32 %v1962_v54, %v2536_v24  ;;  %v2027_v36 = vpop.f32.mrf.mxu1 }
 0x155   :  { %v1964_v61 = vpop.f32.mrf.mxu0 }
 0x156   :  { %v1283_v62 = vadd.f32 %v2026_v60, %v1186_v59  ;;  %v1965_v63 = vadd.f32 %v1964_v61, %v1963_v7  ;;  %v2028_v1 = vpop.f32.mrf.mxu1 }
 0x157   :  { %v1966_v2 = vpop.f32.mrf.mxu0  ;;  %v2029_v5 = vadd.f32 %v2028_v1, %v2027_v36 }
 0x158   :  { %v1312_v16 = vadd.f32 %v1311_v56, %v1283_v62  ;;  %v1191_v4 = vadd.f32 %v1965_v63, %v2538_v32  ;;  %v2030_v43 = vpop.f32.mrf.mxu1 }
 0x159   :  { %v1967_v6 = vpop.f32.mrf.mxu0 }
 0x15a   :  { %v1288_v11 = vadd.f32 %v2029_v5, %v1191_v4  ;;  %v1968_v12 = vadd.f32 %v1967_v6, %v1966_v2  ;;  %v2031_v13 = vpop.f32.mrf.mxu1 }
 0x15b   :  { %v1969_v14 = vpop.f32.mrf.mxu0  ;;  %v2032_v18 = vadd.f32 %v2031_v13, %v2030_v43 }
 0x15c   :  { %v1313_v17 = vadd.f32 %v1312_v16, %v1288_v11  ;;  %v1194_v24 = vadd.f32 %v1968_v12, %v2540_v40  ;;  %v2033_v50 = vpop.f32.mrf.mxu1  ;;  %v1105_v40 = vadd.f32 %v1910_v21, %v1846_v15 }
 0x15d   :  { %v1970_v19 = vpop.f32.mrf.mxu0 }
 0x15e   :  { %v1291_v32 = vadd.f32 %v2032_v18, %v1194_v24  ;;  %v1971_v23 = vadd.f32 %v1970_v19, %v1969_v14  ;;  %v2034_v25 = vpop.f32.mrf.mxu1 }
 0x15f   :  { %v1972_v27 = vpop.f32.mrf.mxu0  ;;  %v2035_v30 = vadd.f32 %v2034_v25, %v2033_v50 }
 0x160   :  { %v1314_v28 = vadd.f32 %v1313_v17, %v1291_v32  ;;  %v1199_v57 = vadd.f32 %v1971_v23, %v2546_v48  ;;  %v2036_v33 = vpop.f32.mrf.mxu1 }
 0x161   :  { %v1973_v34 = vpop.f32.mrf.mxu0 }
 0x162   :  { %v1296_v22 = vadd.f32 %v2035_v30, %v1199_v57  ;;  %v1974_v35 = vadd.f32 %v1973_v34, %v1972_v27  ;;  %v2037_v38 = vpop.f32.mrf.mxu1 }
 0x163   :  { %v2038_v46 = vadd.f32 %v2037_v38, %v2036_v33 }
 0x164   :  { %v1315_v39 = vadd.f32 %v1314_v28, %v1296_v22  ;;  %v1202_v0 = vadd.f32 %v1974_v35, %v1105_v40 }
 0x166   :  { %v1299_v49 = vadd.f32 %v2038_v46, %v1202_v0 }
 0x168   :  { %v1316_v41 = vadd.f32 %v1315_v39, %v1299_v49 }
 0x16a   :  { %v1317_v47 = vrot.slane %v1316_v41, 4 }
 0x16c   :  { %v1318_v51 = vadd.f32 %v1317_v47, %v1316_v41 }
 0x16e   :  { %v1319_v44 = vrot.slane %v1318_v51, 2 }
 0x170   :  { %v1320_v45 = vadd.f32 %v1319_v44, %v1318_v51 }
 0x172   :  { %v1321_v29 = vrot.slane %v1320_v45, 1 }
 0x174   :  { %v1322_v52 = vadd.f32 %v1321_v29, %v1320_v45 }
 0x176   :  { %v1323_v54 = vmul.f32 0.0078125, %v1322_v52 }
 0x178   :  { %v1324_v48 = vsub.f32 %v2554_v9, %v1323_v54  ;;  %v1325_v55 = vsub.f32 %v2556_v10, %v1323_v54  ;;  %v1326_v7 = vsub.f32 %v2561_v20, %v1323_v54  ;;  %v1327_v56 = vsub.f32 %v2565_v31, %v1323_v54 }
 0x179   :  { %v1328_v59 = vsub.f32 %v2569_v42, %v1323_v54  ;;  %v1329_v60 = vsub.f32 %v2573_v58, %v1323_v54  ;;  %v1330_v36 = vsub.f32 %v2577_v3, %v1323_v54  ;;  %v1331_v61 = vsub.f32 %v2581_v8, %v1323_v54 }
 0x17a   :  { %v1332_v63 = vsub.f32 %v2585_v26, %v1323_v54  ;;  %v1333_v1 = vsub.f32 %v2589_v37, %v1323_v54  ;;  %v1334_v9 = vsub.f32 %v2593_v53, %v1323_v54  ;;  %v1335_v2 = vsub.f32 %v1283_v62, %v1323_v54 }
 0x17b   :  { %v1336_v10 = vsub.f32 %v1288_v11, %v1323_v54  ;;  %v1337_v16 = vsub.f32 %v1291_v32, %v1323_v54  ;;  %v1338_v20 = vsub.f32 %v1296_v22, %v1323_v54  ;;  %v1339_v4 = vsub.f32 %v1299_v49, %v1323_v54 }
 0x17c   :  { %v1340_v31 = vmul.f32 %v1324_v48, %v1324_v48  ;;  %v1341_v5 = vmul.f32 %v1325_v55, %v1325_v55  ;;  %v1342_v42 = vmul.f32 %v1326_v7, %v1326_v7  ;;  %v1343_v58 = vmul.f32 %v1327_v56, %v1327_v56 }
 0x17d   :  { %v1344_v3 = vmul.f32 %v1328_v59, %v1328_v59  ;;  %v1345_v8 = vmul.f32 %v1329_v60, %v1329_v60  ;;  %v1346_v26 = vmul.f32 %v1330_v36, %v1330_v36  ;;  %v1347_v37 = vmul.f32 %v1331_v61, %v1331_v61 }
 0x17e   :  { %v1356_v43 = vadd.f32 %v1341_v5, %v1340_v31  ;;  %v1348_v53 = vmul.f32 %v1332_v63, %v1332_v63  ;;  %v1349_v11 = vmul.f32 %v1333_v1, %v1333_v1  ;;  %v1350_v18 = vmul.f32 %v1334_v9, %v1334_v9  ;;  %v1702_v31 = vld [vmem:[%s2663_s2] ss:$0 sm:$0xff] }
 0x17f   :  { %v1351_v19 = vmul.f32 %v1335_v2, %v1335_v2  ;;  %v1352_v21 = vmul.f32 %v1336_v10, %v1336_v10  ;;  %v1353_v23 = vmul.f32 %v1337_v16, %v1337_v16  ;;  %v1354_v27 = vmul.f32 %v1338_v20, %v1338_v20 }
 0x180   :  { %v1357_v6 = vadd.f32 %v1356_v43, %v1342_v42  ;;  %v1355_v57 = vmul.f32 %v1339_v4, %v1339_v4 }
 0x182   :  { %v1358_v12 = vadd.f32 %v1357_v6, %v1343_v58 }
 0x184   :  { %v1359_v13 = vadd.f32 %v1358_v12, %v1344_v3 }
 0x186   :  { %v1360_v14 = vadd.f32 %v1359_v13, %v1345_v8  ;;  %v1703_v13 = vld [vmem:[%s2664_s3] ss:$0 sm:$0xff] }
 0x188   :  { %v1361_v17 = vadd.f32 %v1360_v14, %v1346_v26 }
 0x18a   :  { %v1362_v62 = vadd.f32 %v1361_v17, %v1347_v37 }
 0x18c   :  { %v1363_v24 = vadd.f32 %v1362_v62, %v1348_v53 }
 0x18e   :  { %v1364_v50 = vadd.f32 %v1363_v24, %v1349_v11 }
 0x190   :  { %v1365_v15 = vadd.f32 %v1364_v50, %v1350_v18 }
 0x192   :  { %v1366_v32 = vadd.f32 %v1365_v15, %v1351_v19 }
 0x194   :  { %v1367_v25 = vadd.f32 %v1366_v32, %v1352_v21 }
 0x196   :  { %v1368_v28 = vadd.f32 %v1367_v25, %v1353_v23 }
 0x198   :  { %v1369_v30 = vadd.f32 %v1368_v28, %v1354_v27 }
 0x19a   :  { %v1370_v33 = vadd.f32 %v1369_v30, %v1355_v57 }
 0x19c   :  { %v1371_v34 = vrot.slane %v1370_v33, 4 }
 0x19e   :  { %v1372_v40 = vadd.f32 %v1371_v34, %v1370_v33 }
 0x1a0   :  { %v1373_v22 = vrot.slane %v1372_v40, 2 }
 0x1a2   :  { %v1374_v35 = vadd.f32 %v1373_v22, %v1372_v40 }
 0x1a4   :  { %v1375_v38 = vrot.slane %v1374_v35, 1 }
 0x1a6   :  { %v1376_v39 = vadd.f32 %v1375_v38, %v1374_v35 }
 0x1a8   :  { %v1377_v0 = vmul.f32 0.0078125, %v1376_v39 }
 0x1aa   :  { %v1378_v46 = vadd.f32 1e-05, %v1377_v0 }
 0x1ac   :  { %2103 = vrsqrt.f32 %v1378_v46 }
 0x1b9   :  { %v2104_v49 = vpop.eup %2103 }
 0x1ba   :  { %v1380_v41 = vmul.f32 %v2104_v49, %v1324_v48  ;;  %v1381_v47 = vmul.f32 %v2104_v49, %v1325_v55  ;;  %v1382_v51 = vmul.f32 %v2104_v49, %v1326_v7  ;;  %v1383_v44 = vmul.f32 %v2104_v49, %v1327_v56 }
 0x1bb   :  { %v1384_v45 = vmul.f32 %v2104_v49, %v1328_v59  ;;  %v1385_v29 = vmul.f32 %v2104_v49, %v1329_v60  ;;  %v1386_v52 = vmul.f32 %v2104_v49, %v1330_v36  ;;  %v1387_v54 = vmul.f32 %v2104_v49, %v1331_v61 }
 0x1bc   :  { %v1388_v5 = vmul.f32 %v2104_v49, %v1332_v63  ;;  %v1389_v42 = vmul.f32 %v2104_v49, %v1333_v1  ;;  %v1390_v43 = vmul.f32 %v2104_v49, %v1334_v9  ;;  %v1391_v58 = vmul.f32 %v2104_v49, %v1335_v2 }
 0x1bd   :  { %v1392_v6 = vmul.f32 %v2104_v49, %v1336_v10  ;;  %v1393_v3 = vmul.f32 %v2104_v49, %v1337_v16  ;;  %v1394_v12 = vmul.f32 %v2104_v49, %v1338_v20  ;;  %v1395_v8 = vmul.f32 %v2104_v49, %v1339_v4 }
 0x1be   :  { %v1403_v48 = vmul.f32 %v1702_v31, %v1380_v41  ;;  %v1404_v55 = vmul.f32 %v1702_v31, %v1381_v47  ;;  %v1405_v7 = vmul.f32 %v1702_v31, %v1382_v51  ;;  %v1406_v56 = vmul.f32 %v1702_v31, %v1383_v44 }
 0x1bf   :  { %v1407_v59 = vmul.f32 %v1702_v31, %v1384_v45  ;;  %v1408_v60 = vmul.f32 %v1702_v31, %v1385_v29  ;;  %v1409_v36 = vmul.f32 %v1702_v31, %v1386_v52  ;;  %v1410_v61 = vmul.f32 %v1702_v31, %v1387_v54 }
 0x1c0   :  { %v1411_v63 = vmul.f32 %v1702_v31, %v1388_v5  ;;  %v1412_v1 = vmul.f32 %v1702_v31, %v1389_v42  ;;  %v1413_v9 = vmul.f32 %v1702_v31, %v1390_v43  ;;  %v1414_v2 = vmul.f32 %v1702_v31, %v1391_v58 }
 0x1c1   :  { %v1415_v10 = vmul.f32 %v1702_v31, %v1392_v6  ;;  %v1416_v16 = vmul.f32 %v1702_v31, %v1393_v3  ;;  %v1417_v20 = vmul.f32 %v1702_v31, %v1394_v12  ;;  %v1418_v4 = vmul.f32 %v1702_v31, %v1395_v8 }
 0x1c2   :  { %v1426_v26 = vadd.f32 %v1703_v13, %v1403_v48  ;;  %v1427_v14 = vadd.f32 %v1703_v13, %v1404_v55  ;;  %v1428_v37 = vadd.f32 %v1703_v13, %v1405_v7  ;;  %v1429_v17 = vadd.f32 %v1703_v13, %v1406_v56 }
 0x1c3   :  { %v1430_v53 = vadd.f32 %v1703_v13, %v1407_v59  ;;  %v1431_v62 = vadd.f32 %v1703_v13, %v1408_v60  ;;  %v1432_v11 = vadd.f32 %v1703_v13, %v1409_v36  ;;  %v1433_v24 = vadd.f32 %v1703_v13, %v1410_v61 }
 0x1c4   :  { %v1434_v18 = vadd.f32 %v1703_v13, %v1411_v63  ;;  %v1435_v50 = vadd.f32 %v1703_v13, %v1412_v1  ;;  %v1436_v19 = vadd.f32 %v1703_v13, %v1413_v9  ;;  %v1437_v15 = vadd.f32 %v1703_v13, %v1414_v2 }
 0x1c5   :  { %v1438_v21 = vadd.f32 %v1703_v13, %v1415_v10  ;;  %v1439_v32 = vadd.f32 %v1703_v13, %v1416_v16  ;;  %v1440_v23 = vadd.f32 %v1703_v13, %v1417_v20  ;;  %v1441_v25 = vadd.f32 %v1703_v13, %v1418_v4 }
 0x1c6   :  { %vm1442_vm0 = vcmp.gt.f32.partialorder %v1426_v26, 0.0  ;;  %vm1443_vm1 = vcmp.gt.f32.partialorder %v1427_v14, 0.0  ;;  %vm1444_vm2 = vcmp.gt.f32.partialorder %v1428_v37, 0.0  ;;  %vm1445_vm3 = vcmp.gt.f32.partialorder %v1429_v17, 0.0 }
 0x1c7   :  { %vm1446_vm4 = vcmp.gt.f32.partialorder %v1430_v53, 0.0  ;;  %vm1447_vm5 = vcmp.gt.f32.partialorder %v1431_v62, 0.0  ;;  %vm1448_vm6 = vcmp.gt.f32.partialorder %v1432_v11, 0.0  ;;  %vm1449_vm7 = vcmp.gt.f32.partialorder %v1433_v24, 0.0 }
 0x1c8   :  { %vm1450_vm8 = vcmp.gt.f32.partialorder %v1434_v18, 0.0  ;;  %vm1451_vm9 = vcmp.gt.f32.partialorder %v1435_v50, 0.0  ;;  %vm1452_vm10 = vcmp.gt.f32.partialorder %v1436_v19, 0.0  ;;  %vm1453_vm11 = vcmp.gt.f32.partialorder %v1437_v15, 0.0 }
 0x1c9   :  { %vm1454_vm12 = vcmp.gt.f32.partialorder %v1438_v21, 0.0  ;;  %vm1455_vm13 = vcmp.gt.f32.partialorder %v1439_v32, 0.0  ;;  %vm1456_vm14 = vcmp.gt.f32.partialorder %v1440_v23, 0.0  ;;  %vm1457_vm15 = vcmp.gt.f32.partialorder %v1441_v25, 0.0 }
 0x1ca   :  { %v1458_v27 = vmul.f32 0.2, %v1426_v26  ;;  %v1459_v28 = vmul.f32 0.2, %v1427_v14  ;;  %v1460_v57 = vmul.f32 0.2, %v1428_v37 }
 0x1cb   :  { %v1461_v30 = vmul.f32 0.2, %v1429_v17  ;;  %v1462_v33 = vmul.f32 0.2, %v1430_v53  ;;  %v1463_v34 = vmul.f32 0.2, %v1431_v62 }
 0x1cc   :  { %v1464_v40 = vmul.f32 0.2, %v1432_v11  ;;  %v1465_v22 = vmul.f32 0.2, %v1433_v24  ;;  %v1466_v35 = vmul.f32 0.2, %v1434_v18  ;;  %v1474_v38 = vsel %vm1442_vm0, %v1426_v26, %v1458_v27 }
 0x1cd   :  { %v1467_v39 = vmul.f32 0.2, %v1435_v50  ;;  %v1468_v0 = vmul.f32 0.2, %v1436_v19  ;;  %v1469_v46 = vmul.f32 0.2, %v1437_v15  ;;  %v1475_v49 = vsel %vm1443_vm1, %v1427_v14, %v1459_v28 }
 0x1ce   :  { %v1470_v41 = vmul.f32 0.2, %v1438_v21  ;;  %v1471_v47 = vmul.f32 0.2, %v1439_v32  ;;  %v1472_v51 = vmul.f32 0.2, %v1440_v23  ;;  %v1476_v44 = vsel %vm1444_vm2, %v1428_v37, %v1460_v57 }
 0x1cf   :  { %v1473_v45 = vmul.f32 0.2, %v1441_v25  ;;  %v1477_v29 = vsel %vm1445_vm3, %v1429_v17, %v1461_v30  ;;  %v1478_v52 = vsel %vm1446_vm4, %v1430_v53, %v1462_v33  ;;  %v1479_v54 = vsel %vm1447_vm5, %v1431_v62, %v1463_v34 }
 0x1d0   :  { %v1480_v31 = vsel %vm1448_vm6, %v1432_v11, %v1464_v40  ;;  %v1481_v5 = vsel %vm1449_vm7, %v1433_v24, %v1465_v22  ;;  %v1482_v42 = vsel %vm1450_vm8, %v1434_v18, %v1466_v35  ;;  %v1483_v43 = vsel %vm1451_vm9, %v1435_v50, %v1467_v39 }
 0x1d1   :  { %v1484_v58 = vsel %vm1452_vm10, %v1436_v19, %v1468_v0  ;;  %v1485_v6 = vsel %vm1453_vm11, %v1437_v15, %v1469_v46  ;;  %v1486_v3 = vsel %vm1454_vm12, %v1438_v21, %v1470_v41  ;;  %v1487_v12 = vsel %vm1455_vm13, %v1439_v32, %v1471_v47 }
 0x1d2   :  { %v1488_v8 = vsel %vm1456_vm14, %v1440_v23, %v1472_v51  ;;  %v1489_v48 = vsel %vm1457_vm15, %v1441_v25, %v1473_v45  ;;  %v1739_v55 = vpack.c.bf16 %v1475_v49, %v1474_v38  ;;  %v1744_v7 = vpack.c.bf16 %v1477_v29, %v1476_v44 }
 0x1d3   :  { %v1749_v56 = vpack.c.bf16 %v1479_v54, %v1478_v52  ;;  %v1754_v59 = vpack.c.bf16 %v1481_v5, %v1480_v31  ;;  %v1759_v60 = vpack.c.bf16 %v1483_v43, %v1482_v42  ;;  %v1764_v36 = vpack.c.bf16 %v1485_v6, %v1484_v58 }
 0x1d4   :  { %1740 = vst [vmem:[%s2665_s4] sm:$0xff] %v1739_v55   ;;  %1776 = vst [vmem:[%s2665_s4 + $0x8] sm:$0xff] %v1744_v7   ;;  %v1769_v61 = vpack.c.bf16 %v1487_v12, %v1486_v3  ;;  %v1774_v13 = vpack.c.bf16 %v1489_v48, %v1488_v8 }
 0x1d5   :  { %1777 = vst [vmem:[%s2665_s4 + $0x10] sm:$0xff] %v1749_v56   ;;  %1778 = vst [vmem:[%s2665_s4 + $0x18] sm:$0xff] %v1754_v59  }
 0x1d6   :  { %1779 = vst [vmem:[%s2665_s4 + $0x20] sm:$0xff] %v1759_v60   ;;  %1780 = vst [vmem:[%s2665_s4 + $0x28] sm:$0xff] %v1764_v36  }
 0x1d7   :  { %1781 = vst [vmem:[%s2665_s4 + $0x30] sm:$0xff] %v1769_v61   ;;  %1782 = vst [vmem:[%s2665_s4 + $0x38] sm:$0xff] %v1774_v13  }

// kernel: discriminator_forward.5
= control target key start
LH: loop header
LB: loop body
LE: loop exit
PB: predicated region body
PF: predicated region fallthrough
CT: control target
= control target key end

     0   :  { %vm2348_vm8 = vcmask 1041409   ;;  %vm2353_vm9 = vcmask 1041408   ;;  %s4006_s1 = inlined_call_operand.vmem [shape: bf16[2048,256], index: 1, kind: input, shape index: {}]   ;;  %s4007_s0 = inlined_call_operand.vmem [shape: bf16[32,2048], index: 0, kind: input, shape index: {}]   ;;  %s4008_s2 = inlined_call_operand.vmem [shape: f32[1,256], index: 2, kind: input, shape index: {}]   ;;  %s4009_s3 = inlined_call_operand.vmem [shape: f32[1,256], index: 3, kind: input, shape index: {}]   ;;  %s4010_s4 = inlined_call_operand.vmem [shape: f32[16,256], index: 4, kind: input, shape index: {}]   ;;  %s4011_s5 = inlined_call_operand.vmem [shape: f32[2,128], index: 5, kind: output, shape index: {}]  }
   0x1   :  { %v2652_v0 = vld [vmem:[%s4006_s1 + $0x74] ss:$8 sps:$4 sm:$0xff]   ;;  %v2656_v2 = vld [vmem:[%s4006_s1 + $0x70] ss:$8 sps:$4 sm:$0xff]   ;;  %v2658_v4 = vld [vmem:[%s4006_s1 + $0x64] ss:$8 sps:$4 sm:$0xff]  }
   0x2   :  { %v2654_v1 = vld [vmem:[%s4006_s1 + $0x174] ss:$8 sps:$4 sm:$0xff]   ;;  %1748 = vmatprep.subr.bf16.mxu0 %v2652_v0  ;;  %v2657_v3 = vld [vmem:[%s4006_s1 + $0x170] ss:$8 sps:$4 sm:$0xff]   ;;  %v2660_v5 = vld [vmem:[%s4006_s1 + $0x164] ss:$8 sps:$4 sm:$0xff]  }
   0x3   :  { %1801 = vmatprep.subr.bf16.mxu1 %v2654_v1  ;;  %1749 = vmatpush1.bf16.msra.mxu0 %v2656_v2  ;;  %v2662_v6 = vld [vmem:[%s4006_s1 + $0x60] ss:$8 sps:$4 sm:$0xff]   ;;  %v2664_v8 = vld [vmem:[%s4006_s1 + $0x54] ss:$8 sps:$4 sm:$0xff]   ;;  %v2668_v10 = vld [vmem:[%s4006_s1 + $0x50] ss:$8 sps:$4 sm:$0xff]  }
   0x4   :  { %1802 = vmatpush1.bf16.msra.mxu1 %v2657_v3  ;;  %1750 = vmatprep.subr.bf16.mxu0 %v2658_v4  ;;  %v2663_v7 = vld [vmem:[%s4006_s1 + $0x160] ss:$8 sps:$4 sm:$0xff]   ;;  %v2666_v9 = vld [vmem:[%s4006_s1 + $0x154] ss:$8 sps:$4 sm:$0xff]   ;;  %v2669_v11 = vld [vmem:[%s4006_s1 + $0x150] ss:$8 sps:$4 sm:$0xff]  }
   0x5   :  { %1803 = vmatprep.subr.bf16.mxu1 %v2660_v5  ;;  %v2670_v12 = vld [vmem:[%s4006_s1 + $0x44] ss:$8 sps:$4 sm:$0xff]   ;;  %v2674_v14 = vld [vmem:[%s4006_s1 + $0x40] ss:$8 sps:$4 sm:$0xff]   ;;  %v2676_v16 = vld [vmem:[%s4006_s1 + $0x34] ss:$8 sps:$4 sm:$0xff]  }
   0x6   :  { %v2672_v13 = vld [vmem:[%s4006_s1 + $0x144] ss:$8 sps:$4 sm:$0xff]   ;;  %v2675_v15 = vld [vmem:[%s4006_s1 + $0x140] ss:$8 sps:$4 sm:$0xff]   ;;  %v2678_v17 = vld [vmem:[%s4006_s1 + $0x134] ss:$8 sps:$4 sm:$0xff]  }
   0x7   :  { %1751 = vmatpush1.bf16.msra.mxu0 %v2662_v6  ;;  %v2680_v18 = vld [vmem:[%s4006_s1 + $0x30] ss:$8 sps:$4 sm:$0xff]   ;;  %v2682_v20 = vld [vmem:[%s4006_s1 + $0x24] ss:$8 sps:$4 sm:$0xff]   ;;  %v2686_v22 = vld [vmem:[%s4006_s1 + $0x20] ss:$8 sps:$4 sm:$0xff]  }
   0x8   :  { %1804 = vmatpush1.bf16.msra.mxu1 %v2663_v7  ;;  %1752 = vmatprep.subr.bf16.mxu0 %v2664_v8  ;;  %v2681_v19 = vld [vmem:[%s4006_s1 + $0x130] ss:$8 sps:$4 sm:$0xff]   ;;  %v2684_v21 = vld [vmem:[%s4006_s1 + $0x124] ss:$8 sps:$4 sm:$0xff]   ;;  %v2687_v23 = vld [vmem:[%s4006_s1 + $0x120] ss:$8 sps:$4 sm:$0xff]  }
   0x9   :  { %1805 = vmatprep.subr.bf16.mxu1 %v2666_v9  ;;  %v2688_v24 = vld [vmem:[%s4006_s1 + $0x14] ss:$8 sps:$4 sm:$0xff]   ;;  %v2692_v26 = vld [vmem:[%s4006_s1 + $0x10] ss:$8 sps:$4 sm:$0xff]   ;;  %v2694_v28 = vld [vmem:[%s4006_s1 + $0x4] ss:$8 sps:$4 sm:$0xff]  }
   0xa   :  { %v2690_v25 = vld [vmem:[%s4006_s1 + $0x114] ss:$8 sps:$4 sm:$0xff]   ;;  %v2693_v27 = vld [vmem:[%s4006_s1 + $0x110] ss:$8 sps:$4 sm:$0xff]   ;;  %v2696_v29 = vld [vmem:[%s4006_s1 + $0x104] ss:$8 sps:$4 sm:$0xff]  }
   0xb   :  { %1753 = vmatpush1.bf16.msra.mxu0 %v2668_v10  ;;  %v2698_v30 = vld [vmem:[%s4006_s1] ss:$8 sps:$4 sm:$0xff]   ;;  %v2700_v32 = vld [vmem:[%s4006_s1 + $0xf4] ss:$8 sps:$4 sm:$0xff]   ;;  %v2704_v34 = vld [vmem:[%s4006_s1 + $0xf0] ss:$8 sps:$4 sm:$0xff]  }
   0xc   :  { %1806 = vmatpush1.bf16.msra.mxu1 %v2669_v11  ;;  %1754 = vmatprep.subr.bf16.mxu0 %v2670_v12  ;;  %v2699_v31 = vld [vmem:[%s4006_s1 + $0x100] ss:$8 sps:$4 sm:$0xff]   ;;  %v2702_v33 = vld [vmem:[%s4006_s1 + $0x1f4] ss:$8 sps:$4 sm:$0xff]   ;;  %v2705_v35 = vld [vmem:[%s4006_s1 + $0x1f0] ss:$8 sps:$4 sm:$0xff]  }
   0xd   :  { %1807 = vmatprep.subr.bf16.mxu1 %v2672_v13  ;;  %v2706_v36 = vld [vmem:[%s4006_s1 + $0xe4] ss:$8 sps:$4 sm:$0xff]   ;;  %v2710_v38 = vld [vmem:[%s4006_s1 + $0xe0] ss:$8 sps:$4 sm:$0xff]   ;;  %v2712_v40 = vld [vmem:[%s4006_s1 + $0xd4] ss:$8 sps:$4 sm:$0xff]  }
   0xe   :  { %v2708_v37 = vld [vmem:[%s4006_s1 + $0x1e4] ss:$8 sps:$4 sm:$0xff]   ;;  %v2711_v39 = vld [vmem:[%s4006_s1 + $0x1e0] ss:$8 sps:$4 sm:$0xff]   ;;  %v2714_v41 = vld [vmem:[%s4006_s1 + $0x1d4] ss:$8 sps:$4 sm:$0xff]  }
   0xf   :  { %1755 = vmatpush1.bf16.msra.mxu0 %v2674_v14  ;;  %v2716_v42 = vld [vmem:[%s4006_s1 + $0xd0] ss:$8 sps:$4 sm:$0xff]   ;;  %v2718_v44 = vld [vmem:[%s4006_s1 + $0xc4] ss:$8 sps:$4 sm:$0xff]   ;;  %v2722_v46 = vld [vmem:[%s4006_s1 + $0xc0] ss:$8 sps:$4 sm:$0xff]  }
  0x10   :  { %1808 = vmatpush1.bf16.msra.mxu1 %v2675_v15  ;;  %1756 = vmatprep.subr.bf16.mxu0 %v2676_v16  ;;  %v2717_v43 = vld [vmem:[%s4006_s1 + $0x1d0] ss:$8 sps:$4 sm:$0xff]   ;;  %v2720_v45 = vld [vmem:[%s4006_s1 + $0x1c4] ss:$8 sps:$4 sm:$0xff]   ;;  %v2723_v47 = vld [vmem:[%s4006_s1 + $0x1c0] ss:$8 sps:$4 sm:$0xff]  }
  0x11   :  { %1809 = vmatprep.subr.bf16.mxu1 %v2678_v17  ;;  %v20_v48 = vld [vmem:[%s4007_s0] sm:$0xff]  ;;  %v21_v50 = vld [vmem:[%s4007_s0 + $0x8] sm:$0xff]  ;;  %v2724_v52 = vld [vmem:[%s4006_s1 + $0xb4] ss:$8 sps:$4 sm:$0xff]  }
  0x12   :  { %v28_v49 = vld [vmem:[%s4007_s0 + $0x40] sm:$0xff]  ;;  %v29_v51 = vld [vmem:[%s4007_s0 + $0x48] sm:$0xff]  ;;  %v2726_v54 = vld [vmem:[%s4006_s1 + $0x1b4] ss:$8 sps:$4 sm:$0xff]  }
  0x13   :  { %1757 = vmatpush1.bf16.msra.mxu0 %v2680_v18  ;;  %v2365_v53 = vcombine.high %v20_v48, %v28_v49  ;;  %v2367_v55 = vcombine.high %v21_v50, %v29_v51  ;;  %v2728_v56 = vld [vmem:[%s4006_s1 + $0xb0] ss:$8 sps:$4 sm:$0xff]   ;;  %v2730_v58 = vld [vmem:[%s4006_s1 + $0xa4] ss:$8 sps:$4 sm:$0xff]   ;;  %v2734_v60 = vld [vmem:[%s4006_s1 + $0xa0] ss:$8 sps:$4 sm:$0xff]   ;;  %v2364_v8 = vcombine.low %v20_v48, %v28_v49  ;;  %v2366_v9 = vcombine.low %v21_v50, %v29_v51 }
  0x14   :  { %1810 = vmatpush1.bf16.msra.mxu1 %v2681_v19  ;;  %1758 = vmatprep.subr.bf16.mxu0 %v2682_v20  ;;  %v2729_v57 = vld [vmem:[%s4006_s1 + $0x1b0] ss:$8 sps:$4 sm:$0xff]   ;;  %v2732_v59 = vld [vmem:[%s4006_s1 + $0x1a4] ss:$8 sps:$4 sm:$0xff]   ;;  %v2735_v61 = vld [vmem:[%s4006_s1 + $0x1a0] ss:$8 sps:$4 sm:$0xff]  }
  0x15   :  { %1811 = vmatprep.subr.bf16.mxu1 %v2684_v21  ;;  %1780 = vmatprep.mubr.bf16.mxu0 %v2365_v53  ;;  %v2736_v62 = vld [vmem:[%s4006_s1 + $0x94] ss:$8 sps:$4 sm:$0xff]   ;;  %v2740_v0 = vld [vmem:[%s4006_s1 + $0x90] ss:$8 sps:$4 sm:$0xff]   ;;  %v2742_v2 = vld [vmem:[%s4006_s1 + $0x84] ss:$8 sps:$4 sm:$0xff]  }
  0x16   :  { %1833 = vmatprep.mubr.bf16.mxu1 %v2367_v55  ;;  %v2738_v63 = vld [vmem:[%s4006_s1 + $0x194] ss:$8 sps:$4 sm:$0xff]   ;;  %v2741_v1 = vld [vmem:[%s4006_s1 + $0x190] ss:$8 sps:$4 sm:$0xff]   ;;  %v2744_v3 = vld [vmem:[%s4006_s1 + $0x184] ss:$8 sps:$4 sm:$0xff]  }
  0x17   :  { %1759 = vmatpush1.bf16.msra.mxu0 %v2686_v22  ;;  %v2746_v4 = vld [vmem:[%s4006_s1 + $0x80] ss:$8 sps:$4 sm:$0xff]   ;;  %v2750_v6 = vld [vmem:[%s4006_s1 + $0x274] ss:$8 sps:$4 sm:$0xff]   ;;  %v2748_v10 = vld [vmem:[%s4006_s1 + $0x270] ss:$8 sps:$4 sm:$0xff]  }
  0x18   :  { %1812 = vmatpush1.bf16.msra.mxu1 %v2687_v23  ;;  %1760 = vmatprep.subr.bf16.mxu0 %v2688_v24  ;;  %v2747_v5 = vld [vmem:[%s4006_s1 + $0x180] ss:$8 sps:$4 sm:$0xff]   ;;  %v2753_v7 = vld [vmem:[%s4006_s1 + $0x374] ss:$8 sps:$4 sm:$0xff]   ;;  %v2751_v11 = vld [vmem:[%s4006_s1 + $0x370] ss:$8 sps:$4 sm:$0xff]  }
  0x19   :  { %1813 = vmatprep.subr.bf16.mxu1 %v2690_v25  ;;  %v2756_v12 = vld [vmem:[%s4006_s1 + $0x264] ss:$8 sps:$4 sm:$0xff]   ;;  %v2754_v14 = vld [vmem:[%s4006_s1 + $0x260] ss:$8 sps:$4 sm:$0xff]   ;;  %v2762_v16 = vld [vmem:[%s4006_s1 + $0x254] ss:$8 sps:$4 sm:$0xff]  }
  0x1a   :  { %v2759_v13 = vld [vmem:[%s4006_s1 + $0x364] ss:$8 sps:$4 sm:$0xff]   ;;  %v2757_v15 = vld [vmem:[%s4006_s1 + $0x360] ss:$8 sps:$4 sm:$0xff]   ;;  %v2765_v17 = vld [vmem:[%s4006_s1 + $0x354] ss:$8 sps:$4 sm:$0xff]  }
  0x1b   :  { %1761 = vmatpush1.bf16.msra.mxu0 %v2692_v26  ;;  %v2760_v18 = vld [vmem:[%s4006_s1 + $0x250] ss:$8 sps:$4 sm:$0xff]   ;;  %v2768_v20 = vld [vmem:[%s4006_s1 + $0x244] ss:$8 sps:$4 sm:$0xff]   ;;  %v2766_v22 = vld [vmem:[%s4006_s1 + $0x240] ss:$8 sps:$4 sm:$0xff]  }
  0x1c   :  { %1814 = vmatpush1.bf16.msra.mxu1 %v2693_v27  ;;  %1762 = vmatprep.subr.bf16.mxu0 %v2694_v28  ;;  %v2763_v19 = vld [vmem:[%s4006_s1 + $0x350] ss:$8 sps:$4 sm:$0xff]   ;;  %v2771_v21 = vld [vmem:[%s4006_s1 + $0x344] ss:$8 sps:$4 sm:$0xff]   ;;  %v2769_v23 = vld [vmem:[%s4006_s1 + $0x340] ss:$8 sps:$4 sm:$0xff]  }
  0x1d   :  { %1815 = vmatprep.subr.bf16.mxu1 %v2696_v29  ;;  %v2774_v24 = vld [vmem:[%s4006_s1 + $0x234] ss:$8 sps:$4 sm:$0xff]   ;;  %v2772_v26 = vld [vmem:[%s4006_s1 + $0x230] ss:$8 sps:$4 sm:$0xff]   ;;  %v36_v28 = vld [vmem:[%s4007_s0 + $0x80] sm:$0xff] }
  0x1e   :  { %v2777_v25 = vld [vmem:[%s4006_s1 + $0x334] ss:$8 sps:$4 sm:$0xff]   ;;  %v2775_v27 = vld [vmem:[%s4006_s1 + $0x330] ss:$8 sps:$4 sm:$0xff]   ;;  %v44_v29 = vld [vmem:[%s4007_s0 + $0xc0] sm:$0xff] }
  0x1f   :  { %1763 = vmatpush1.bf16.msra.mxu0 %v2698_v30  ;;  %v37_v30 = vld [vmem:[%s4007_s0 + $0x88] sm:$0xff]  ;;  %v3389_v48 = vld [vmem:[%s4007_s0 + $0x18] sm:$0xff] }
  0x20   :  { %1816 = vmatpush1.bf16.msra.mxu1 %v2699_v31  ;;  %1764 = vmatprep.subr.bf16.mxu0 %v2700_v32  ;;  %v45_v31 = vld [vmem:[%s4007_s0 + $0xc8] sm:$0xff]  ;;  %v3396_v50 = vld [vmem:[%s4007_s0 + $0x58] sm:$0xff] }
  0x21   :  { %1817 = vmatprep.subr.bf16.mxu1 %v2702_v33  ;;  %v2780_v32 = vld [vmem:[%s4006_s1 + $0x224] ss:$8 sps:$4 sm:$0xff]   ;;  %v2381_v33 = vcombine.high %v36_v28, %v44_v29  ;;  %v2371_v51 = vcombine.high %v3389_v48, %v3396_v50  ;;  %v2793_v53 = vld [vmem:[%s4006_s1 + $0x300] ss:$8 sps:$4 sm:$0xff]   ;;  %v2801_v55 = vld [vmem:[%s4006_s1 + $0x3f4] ss:$8 sps:$4 sm:$0xff]  }
  0x23   :  { %1765 = vmatpush2.bf16.msra.mxu0 %v2704_v34  ;;  %v2383_v34 = vcombine.high %v37_v30, %v45_v31 }
  0x24   :  { %1818 = vmatpush2.bf16.msra.mxu1 %v2705_v35  ;;  %1766 = vmatprep.subr.bf16.mxu0 %v2706_v36  ;;  %v2380_v35 = vcombine.low %v36_v28, %v44_v29  ;;  %v2783_v36 = vld [vmem:[%s4006_s1 + $0x324] ss:$8 sps:$4 sm:$0xff]   ;;  %v2370_v29 = vcombine.low %v3389_v48, %v3396_v50 }
  0x25   :  { %1819 = vmatprep.subr.bf16.mxu1 %v2708_v37  ;;  %v2382_v37 = vcombine.low %v37_v30, %v45_v31  ;;  %v39_v30 = vld [vmem:[%s4007_s0 + $0x98] sm:$0xff]  ;;  %v2864_v48 = vld [vmem:[%s4006_s1 + $0x444] ss:$8 sps:$4 sm:$0xff]  }
  0x26   :  { %v47_v31 = vld [vmem:[%s4007_s0 + $0xd8] sm:$0xff] }
  0x27   :  { %1767 = vmatpush2.bf16.msra.mxu0 %v2710_v38  ;;  %v2778_v38 = vld [vmem:[%s4006_s1 + $0x220] ss:$8 sps:$4 sm:$0xff]  }
  0x28   :  { %1820 = vmatpush2.bf16.msra.mxu1 %v2711_v39  ;;  %1768 = vmatprep.subr.bf16.mxu0 %v2712_v40  ;;  %v2781_v39 = vld [vmem:[%s4006_s1 + $0x320] ss:$8 sps:$4 sm:$0xff]   ;;  %v2786_v40 = vld [vmem:[%s4006_s1 + $0x214] ss:$8 sps:$4 sm:$0xff]  }
  0x29   :  { %1821 = vmatprep.subr.bf16.mxu1 %v2714_v41  ;;  %v2789_v41 = vld [vmem:[%s4006_s1 + $0x314] ss:$8 sps:$4 sm:$0xff]  }
  0x2b   :  { %1769 = vmatpush2.bf16.msra.mxu0 %v2716_v42  ;;  %v2784_v42 = vld [vmem:[%s4006_s1 + $0x210] ss:$8 sps:$4 sm:$0xff]  }
  0x2c   :  { %1822 = vmatpush2.bf16.msra.mxu1 %v2717_v43  ;;  %1770 = vmatprep.subr.bf16.mxu0 %v2718_v44  ;;  %v2787_v43 = vld [vmem:[%s4006_s1 + $0x310] ss:$8 sps:$4 sm:$0xff]   ;;  %v2792_v44 = vld [vmem:[%s4006_s1 + $0x204] ss:$8 sps:$4 sm:$0xff]  }
  0x2d   :  { %1823 = vmatprep.subr.bf16.mxu1 %v2720_v45  ;;  %v2795_v45 = vld [vmem:[%s4006_s1 + $0x304] ss:$8 sps:$4 sm:$0xff]  }
  0x2f   :  { %1771 = vmatpush2.bf16.msra.mxu0 %v2722_v46  ;;  %v3379_v46 = vld [vmem:[%s4007_s0 + $0x10] sm:$0xff] }
  0x30   :  { %1824 = vmatpush2.bf16.msra.mxu1 %v2723_v47  ;;  %1772 = vmatprep.subr.bf16.mxu0 %v2724_v52  ;;  %v3384_v47 = vld [vmem:[%s4007_s0 + $0x50] sm:$0xff]  ;;  %v2790_v52 = vld [vmem:[%s4006_s1 + $0x200] ss:$8 sps:$4 sm:$0xff]  }
  0x31   :  { %1825 = vmatprep.subr.bf16.mxu1 %v2726_v54  ;;  %v2369_v49 = vcombine.high %v3379_v46, %v3384_v47  ;;  %v2798_v54 = vld [vmem:[%s4006_s1 + $0x2f4] ss:$8 sps:$4 sm:$0xff]   ;;  %v2368_v28 = vcombine.low %v3379_v46, %v3384_v47  ;;  %v3567_v46 = vld [vmem:[%s4007_s0 + $0x28] sm:$0xff] }
  0x32   :  { %v3572_v47 = vld [vmem:[%s4007_s0 + $0x68] sm:$0xff] }
  0x33   :  { %1773 = vmatpush2.bf16.msra.mxu0 %v2728_v56  ;;  %v2796_v56 = vld [vmem:[%s4006_s1 + $0x2f0] ss:$8 sps:$4 sm:$0xff]  }
  0x34   :  { %1826 = vmatpush2.bf16.msra.mxu1 %v2729_v57  ;;  %1774 = vmatprep.subr.bf16.mxu0 %v2730_v58  ;;  %v2799_v57 = vld [vmem:[%s4006_s1 + $0x3f0] ss:$8 sps:$4 sm:$0xff]   ;;  %v2804_v58 = vld [vmem:[%s4006_s1 + $0x2e4] ss:$8 sps:$4 sm:$0xff]  }
  0x35   :  { %1827 = vmatprep.subr.bf16.mxu1 %v2732_v59  ;;  %v2807_v59 = vld [vmem:[%s4006_s1 + $0x3e4] ss:$8 sps:$4 sm:$0xff]  }
  0x37   :  { %1775 = vmatpush2.bf16.msra.mxu0 %v2734_v60  ;;  %v2802_v60 = vld [vmem:[%s4006_s1 + $0x2e0] ss:$8 sps:$4 sm:$0xff]  }
  0x38   :  { %1828 = vmatpush2.bf16.msra.mxu1 %v2735_v61  ;;  %1776 = vmatprep.subr.bf16.mxu0 %v2736_v62  ;;  %v2805_v61 = vld [vmem:[%s4006_s1 + $0x3e0] ss:$8 sps:$4 sm:$0xff]   ;;  %v2810_v62 = vld [vmem:[%s4006_s1 + $0x2d4] ss:$8 sps:$4 sm:$0xff]  }
  0x39   :  { %1829 = vmatprep.subr.bf16.mxu1 %v2738_v63  ;;  %v2813_v63 = vld [vmem:[%s4006_s1 + $0x3d4] ss:$8 sps:$4 sm:$0xff]  }
  0x3b   :  { %1777 = vmatpush2.bf16.msra.mxu0 %v2740_v0  ;;  %v2808_v0 = vld [vmem:[%s4006_s1 + $0x2d0] ss:$8 sps:$4 sm:$0xff]  }
  0x3c   :  { %1830 = vmatpush2.bf16.msra.mxu1 %v2741_v1  ;;  %1778 = vmatprep.subr.bf16.mxu0 %v2742_v2  ;;  %v2811_v1 = vld [vmem:[%s4006_s1 + $0x3d0] ss:$8 sps:$4 sm:$0xff]   ;;  %v2816_v2 = vld [vmem:[%s4006_s1 + $0x2c4] ss:$8 sps:$4 sm:$0xff]  }
  0x3d   :  { %1831 = vmatprep.subr.bf16.mxu1 %v2744_v3  ;;  %v2819_v3 = vld [vmem:[%s4006_s1 + $0x3c4] ss:$8 sps:$4 sm:$0xff]  }
  0x3f   :  { %1779 = vmatpush2.bf16.msra.mxu0 %v2746_v4  ;;  %v2814_v4 = vld [vmem:[%s4006_s1 + $0x2c0] ss:$8 sps:$4 sm:$0xff]  }
  0x40   :  { %1832 = vmatpush2.bf16.msra.mxu1 %v2747_v5  ;;  %1854 = vmatprep.subr.bf16.mxu0 %v2750_v6  ;;  %v2817_v5 = vld [vmem:[%s4006_s1 + $0x3c0] ss:$8 sps:$4 sm:$0xff]   ;;  %v2822_v6 = vld [vmem:[%s4006_s1 + $0x2b4] ss:$8 sps:$4 sm:$0xff]  }
  0x41   :  { %1907 = vmatprep.subr.bf16.mxu1 %v2753_v7  ;;  %v2825_v7 = vld [vmem:[%s4006_s1 + $0x3b4] ss:$8 sps:$4 sm:$0xff]  }
  0x42   :  { %1781 = vmatmul.mubr.bf16.vlgmr.msra.gmra.mxu0 %v2364_v8  ;;  %v2820_v8 = vld [vmem:[%s4006_s1 + $0x2b0] ss:$8 sps:$4 sm:$0xff]  }
  0x43   :  { %1834 = vmatmul.mubr.bf16.vlgmr.msra.gmra.mxu1 %v2366_v9  ;;  %1855 = vmatpush1.bf16.msra.mxu0 %v2748_v10  ;;  %v2823_v9 = vld [vmem:[%s4006_s1 + $0x3b0] ss:$8 sps:$4 sm:$0xff]   ;;  %v2828_v10 = vld [vmem:[%s4006_s1 + $0x2a4] ss:$8 sps:$4 sm:$0xff]  }
  0x44   :  { %1908 = vmatpush1.bf16.msra.mxu1 %v2751_v11  ;;  %1856 = vmatprep.subr.bf16.mxu0 %v2756_v12  ;;  %v2831_v11 = vld [vmem:[%s4006_s1 + $0x3a4] ss:$8 sps:$4 sm:$0xff]   ;;  %v2826_v12 = vld [vmem:[%s4006_s1 + $0x2a0] ss:$8 sps:$4 sm:$0xff]  }
  0x45   :  { %1909 = vmatprep.subr.bf16.mxu1 %v2759_v13  ;;  %1790 = vmatprep.mubr.bf16.mxu0 %v2381_v33  ;;  %v2829_v13 = vld [vmem:[%s4006_s1 + $0x3a0] ss:$8 sps:$4 sm:$0xff]   ;;  %v2855_v33 = vld [vmem:[%s4006_s1 + $0x564] ss:$8 sps:$4 sm:$0xff]  }
  0x46   :  { %1843 = vmatprep.mubr.bf16.mxu1 %v2383_v34 }
  0x47   :  { %1857 = vmatpush1.bf16.msra.mxu0 %v2754_v14  ;;  %v2834_v14 = vld [vmem:[%s4006_s1 + $0x294] ss:$8 sps:$4 sm:$0xff]  }
  0x48   :  { %1910 = vmatpush1.bf16.msra.mxu1 %v2757_v15  ;;  %1858 = vmatprep.subr.bf16.mxu0 %v2762_v16  ;;  %v2837_v15 = vld [vmem:[%s4006_s1 + $0x394] ss:$8 sps:$4 sm:$0xff]   ;;  %v2832_v16 = vld [vmem:[%s4006_s1 + $0x290] ss:$8 sps:$4 sm:$0xff]  }
  0x49   :  { %1911 = vmatprep.subr.bf16.mxu1 %v2765_v17  ;;  %v2835_v17 = vld [vmem:[%s4006_s1 + $0x390] ss:$8 sps:$4 sm:$0xff]  }
  0x4a   :  { %1791 = vmatmul.mubr.bf16.gmra.mxu0 %v2380_v35  ;;  %v2387_v35 = vcombine.high %v39_v30, %v47_v31 }
  0x4b   :  { %1859 = vmatpush1.bf16.msra.mxu0 %v2760_v18  ;;  %1844 = vmatmul.mubr.bf16.gmra.mxu1 %v2382_v37  ;;  %v2840_v18 = vld [vmem:[%s4006_s1 + $0x284] ss:$8 sps:$4 sm:$0xff]   ;;  %v2853_v37 = vld [vmem:[%s4006_s1 + $0x560] ss:$8 sps:$4 sm:$0xff]  }
  0x4c   :  { %1912 = vmatpush1.bf16.msra.mxu1 %v2763_v19  ;;  %1860 = vmatprep.subr.bf16.mxu0 %v2768_v20  ;;  %v2843_v19 = vld [vmem:[%s4006_s1 + $0x384] ss:$8 sps:$4 sm:$0xff]   ;;  %v2838_v20 = vld [vmem:[%s4006_s1 + $0x280] ss:$8 sps:$4 sm:$0xff]  }
  0x4d   :  { %1913 = vmatprep.subr.bf16.mxu1 %v2771_v21  ;;  %1886 = vmatprep.mubr.bf16.mxu0 %v2369_v49  ;;  %v2841_v21 = vld [vmem:[%s4006_s1 + $0x380] ss:$8 sps:$4 sm:$0xff]   ;;  %v2867_v49 = vld [vmem:[%s4006_s1 + $0x544] ss:$8 sps:$4 sm:$0xff]  }
  0x4e   :  { %1939 = vmatprep.mubr.bf16.mxu1 %v2371_v51  ;;  %v2375_v51 = vcombine.high %v3567_v46, %v3572_v47 }
  0x4f   :  { %1861 = vmatpush1.bf16.msra.mxu0 %v2766_v22  ;;  %v2846_v22 = vld [vmem:[%s4006_s1 + $0x474] ss:$8 sps:$4 sm:$0xff]  }
  0x50   :  { %1914 = vmatpush1.bf16.msra.mxu1 %v2769_v23  ;;  %1862 = vmatprep.subr.bf16.mxu0 %v2774_v24  ;;  %v2849_v23 = vld [vmem:[%s4006_s1 + $0x574] ss:$8 sps:$4 sm:$0xff]   ;;  %v2844_v24 = vld [vmem:[%s4006_s1 + $0x470] ss:$8 sps:$4 sm:$0xff]  }
  0x51   :  { %1915 = vmatprep.subr.bf16.mxu1 %v2777_v25  ;;  %v2847_v25 = vld [vmem:[%s4006_s1 + $0x570] ss:$8 sps:$4 sm:$0xff]  }
  0x53   :  { %1863 = vmatpush1.bf16.msra.mxu0 %v2772_v26  ;;  %v38_v26 = vld [vmem:[%s4007_s0 + $0x90] sm:$0xff] }
  0x54   :  { %1916 = vmatpush1.bf16.msra.mxu1 %v2775_v27  ;;  %1864 = vmatprep.subr.bf16.mxu0 %v2780_v32  ;;  %v46_v27 = vld [vmem:[%s4007_s0 + $0xd0] sm:$0xff]  ;;  %v2852_v32 = vld [vmem:[%s4006_s1 + $0x464] ss:$8 sps:$4 sm:$0xff]  }
  0x55   :  { %1917 = vmatprep.subr.bf16.mxu1 %v2783_v36  ;;  %v2385_v34 = vcombine.high %v38_v26, %v46_v27  ;;  %v2850_v36 = vld [vmem:[%s4006_s1 + $0x460] ss:$8 sps:$4 sm:$0xff]  }
  0x57   :  { %1865 = vmatpush1.bf16.msra.mxu0 %v2778_v38  ;;  %v2858_v38 = vld [vmem:[%s4006_s1 + $0x454] ss:$8 sps:$4 sm:$0xff]  }
  0x58   :  { %1918 = vmatpush1.bf16.msra.mxu1 %v2781_v39  ;;  %1866 = vmatprep.subr.bf16.mxu0 %v2786_v40  ;;  %v2861_v39 = vld [vmem:[%s4006_s1 + $0x554] ss:$8 sps:$4 sm:$0xff]   ;;  %v2856_v40 = vld [vmem:[%s4006_s1 + $0x450] ss:$8 sps:$4 sm:$0xff]  }
  0x59   :  { %1919 = vmatprep.subr.bf16.mxu1 %v2789_v41  ;;  %v2859_v41 = vld [vmem:[%s4006_s1 + $0x550] ss:$8 sps:$4 sm:$0xff]  }
  0x5b   :  { %1867 = vmatpush1.bf16.msra.mxu0 %v2784_v42  ;;  %v3557_v42 = vld [vmem:[%s4007_s0 + $0x20] sm:$0xff] }
  0x5c   :  { %1920 = vmatpush1.bf16.msra.mxu1 %v2787_v43  ;;  %1868 = vmatprep.subr.bf16.mxu0 %v2792_v44  ;;  %v3562_v43 = vld [vmem:[%s4007_s0 + $0x60] sm:$0xff]  ;;  %v2384_v44 = vcombine.low %v38_v26, %v46_v27 }
  0x5d   :  { %1921 = vmatprep.subr.bf16.mxu1 %v2795_v45  ;;  %v2386_v45 = vcombine.low %v39_v30, %v47_v31  ;;  %v2373_v50 = vcombine.high %v3557_v42, %v3562_v43  ;;  %v2924_v26 = vld [vmem:[%s4006_s1 + $0x4a4] ss:$8 sps:$4 sm:$0xff]   ;;  %v2930_v30 = vld [vmem:[%s4006_s1 + $0x494] ss:$8 sps:$4 sm:$0xff]  }
  0x5e   :  { %v2927_v27 = vld [vmem:[%s4006_s1 + $0x5a4] ss:$8 sps:$4 sm:$0xff]   ;;  %v2933_v31 = vld [vmem:[%s4006_s1 + $0x594] ss:$8 sps:$4 sm:$0xff]  }
  0x5f   :  { %1869 = vmatpush1.bf16.msra.mxu0 %v2790_v52  ;;  %v2862_v52 = vld [vmem:[%s4006_s1 + $0x440] ss:$8 sps:$4 sm:$0xff]  }
  0x60   :  { %1922 = vmatpush1.bf16.msra.mxu1 %v2793_v53  ;;  %1870 = vmatprep.subr.bf16.mxu0 %v2798_v54  ;;  %v2865_v53 = vld [vmem:[%s4006_s1 + $0x540] ss:$8 sps:$4 sm:$0xff]   ;;  %v2870_v54 = vld [vmem:[%s4006_s1 + $0x434] ss:$8 sps:$4 sm:$0xff]  }
  0x61   :  { %1923 = vmatprep.subr.bf16.mxu1 %v2801_v55  ;;  %v2873_v55 = vld [vmem:[%s4006_s1 + $0x534] ss:$8 sps:$4 sm:$0xff]  }
  0x63   :  { %1871 = vmatpush2.bf16.msra.mxu0 %v2796_v56  ;;  %v2868_v56 = vld [vmem:[%s4006_s1 + $0x430] ss:$8 sps:$4 sm:$0xff]  }
  0x64   :  { %1924 = vmatpush2.bf16.msra.mxu1 %v2799_v57  ;;  %1872 = vmatprep.subr.bf16.mxu0 %v2804_v58  ;;  %v2871_v57 = vld [vmem:[%s4006_s1 + $0x530] ss:$8 sps:$4 sm:$0xff]   ;;  %v2876_v58 = vld [vmem:[%s4006_s1 + $0x424] ss:$8 sps:$4 sm:$0xff]  }
  0x65   :  { %1925 = vmatprep.subr.bf16.mxu1 %v2807_v59  ;;  %v2879_v59 = vld [vmem:[%s4006_s1 + $0x524] ss:$8 sps:$4 sm:$0xff]  }
  0x67   :  { %1873 = vmatpush2.bf16.msra.mxu0 %v2802_v60  ;;  %v2874_v60 = vld [vmem:[%s4006_s1 + $0x420] ss:$8 sps:$4 sm:$0xff]  }
  0x68   :  { %1926 = vmatpush2.bf16.msra.mxu1 %v2805_v61  ;;  %1874 = vmatprep.subr.bf16.mxu0 %v2810_v62  ;;  %v2877_v61 = vld [vmem:[%s4006_s1 + $0x520] ss:$8 sps:$4 sm:$0xff]   ;;  %v2882_v62 = vld [vmem:[%s4006_s1 + $0x414] ss:$8 sps:$4 sm:$0xff]  }
  0x69   :  { %1927 = vmatprep.subr.bf16.mxu1 %v2813_v63  ;;  %v2885_v63 = vld [vmem:[%s4006_s1 + $0x514] ss:$8 sps:$4 sm:$0xff]  }
  0x6b   :  { %1875 = vmatpush2.bf16.msra.mxu0 %v2808_v0  ;;  %v2880_v0 = vld [vmem:[%s4006_s1 + $0x410] ss:$8 sps:$4 sm:$0xff]  }
  0x6c   :  { %1928 = vmatpush2.bf16.msra.mxu1 %v2811_v1  ;;  %1876 = vmatprep.subr.bf16.mxu0 %v2816_v2  ;;  %v2883_v1 = vld [vmem:[%s4006_s1 + $0x510] ss:$8 sps:$4 sm:$0xff]   ;;  %v2888_v2 = vld [vmem:[%s4006_s1 + $0x404] ss:$8 sps:$4 sm:$0xff]  }
  0x6d   :  { %1929 = vmatprep.subr.bf16.mxu1 %v2819_v3  ;;  %v2891_v3 = vld [vmem:[%s4006_s1 + $0x504] ss:$8 sps:$4 sm:$0xff]  }
  0x6f   :  { %1877 = vmatpush2.bf16.msra.mxu0 %v2814_v4  ;;  %v2886_v4 = vld [vmem:[%s4006_s1 + $0x400] ss:$8 sps:$4 sm:$0xff]  }
  0x70   :  { %1930 = vmatpush2.bf16.msra.mxu1 %v2817_v5  ;;  %1878 = vmatprep.subr.bf16.mxu0 %v2822_v6  ;;  %v2889_v5 = vld [vmem:[%s4006_s1 + $0x500] ss:$8 sps:$4 sm:$0xff]   ;;  %v2894_v6 = vld [vmem:[%s4006_s1 + $0x4f4] ss:$8 sps:$4 sm:$0xff]  }
  0x71   :  { %1931 = vmatprep.subr.bf16.mxu1 %v2825_v7  ;;  %v2897_v7 = vld [vmem:[%s4006_s1 + $0x5f4] ss:$8 sps:$4 sm:$0xff]  }
  0x73   :  { %1879 = vmatpush2.bf16.msra.mxu0 %v2820_v8  ;;  %v2892_v8 = vld [vmem:[%s4006_s1 + $0x4f0] ss:$8 sps:$4 sm:$0xff]  }
  0x74   :  { %1932 = vmatpush2.bf16.msra.mxu1 %v2823_v9  ;;  %1880 = vmatprep.subr.bf16.mxu0 %v2828_v10  ;;  %v2895_v9 = vld [vmem:[%s4006_s1 + $0x5f0] ss:$8 sps:$4 sm:$0xff]   ;;  %v2900_v10 = vld [vmem:[%s4006_s1 + $0x4e4] ss:$8 sps:$4 sm:$0xff]  }
  0x75   :  { %1933 = vmatprep.subr.bf16.mxu1 %v2831_v11  ;;  %v2903_v11 = vld [vmem:[%s4006_s1 + $0x5e4] ss:$8 sps:$4 sm:$0xff]  }
  0x77   :  { %1881 = vmatpush2.bf16.msra.mxu0 %v2826_v12  ;;  %v2898_v12 = vld [vmem:[%s4006_s1 + $0x4e0] ss:$8 sps:$4 sm:$0xff]  }
  0x78   :  { %1934 = vmatpush2.bf16.msra.mxu1 %v2829_v13  ;;  %1882 = vmatprep.subr.bf16.mxu0 %v2834_v14  ;;  %v2901_v13 = vld [vmem:[%s4006_s1 + $0x5e0] ss:$8 sps:$4 sm:$0xff]   ;;  %v2906_v14 = vld [vmem:[%s4006_s1 + $0x4d4] ss:$8 sps:$4 sm:$0xff]  }
  0x79   :  { %1935 = vmatprep.subr.bf16.mxu1 %v2837_v15  ;;  %v2909_v15 = vld [vmem:[%s4006_s1 + $0x5d4] ss:$8 sps:$4 sm:$0xff]  }
  0x7b   :  { %1883 = vmatpush2.bf16.msra.mxu0 %v2832_v16  ;;  %v2904_v16 = vld [vmem:[%s4006_s1 + $0x4d0] ss:$8 sps:$4 sm:$0xff]  }
  0x7c   :  { %1936 = vmatpush2.bf16.msra.mxu1 %v2835_v17  ;;  %1884 = vmatprep.subr.bf16.mxu0 %v2840_v18  ;;  %v2907_v17 = vld [vmem:[%s4006_s1 + $0x5d0] ss:$8 sps:$4 sm:$0xff]   ;;  %v2912_v18 = vld [vmem:[%s4006_s1 + $0x4c4] ss:$8 sps:$4 sm:$0xff]  }
  0x7d   :  { %1937 = vmatprep.subr.bf16.mxu1 %v2843_v19  ;;  %v2915_v19 = vld [vmem:[%s4006_s1 + $0x5c4] ss:$8 sps:$4 sm:$0xff]  }
  0x7f   :  { %1885 = vmatpush2.bf16.msra.mxu0 %v2838_v20  ;;  %v2910_v20 = vld [vmem:[%s4006_s1 + $0x4c0] ss:$8 sps:$4 sm:$0xff]  }
  0x80   :  { %1938 = vmatpush2.bf16.msra.mxu1 %v2841_v21  ;;  %1960 = vmatprep.subr.bf16.mxu0 %v2846_v22  ;;  %v2913_v21 = vld [vmem:[%s4006_s1 + $0x5c0] ss:$8 sps:$4 sm:$0xff]   ;;  %v2918_v22 = vld [vmem:[%s4006_s1 + $0x4b4] ss:$8 sps:$4 sm:$0xff]  }
  0x81   :  { %2013 = vmatprep.subr.bf16.mxu1 %v2849_v23  ;;  %v2921_v23 = vld [vmem:[%s4006_s1 + $0x5b4] ss:$8 sps:$4 sm:$0xff]  }
  0x82   :  { %1887 = vmatmul.mubr.bf16.vlgmr.msra.gmra.mxu0 %v2368_v28  ;;  %v2922_v28 = vld [vmem:[%s4006_s1 + $0x4a0] ss:$8 sps:$4 sm:$0xff]  }
  0x83   :  { %1940 = vmatmul.mubr.bf16.vlgmr.msra.gmra.mxu1 %v2370_v29  ;;  %1961 = vmatpush1.bf16.msra.mxu0 %v2844_v24  ;;  %v2916_v24 = vld [vmem:[%s4006_s1 + $0x4b0] ss:$8 sps:$4 sm:$0xff]   ;;  %v2925_v29 = vld [vmem:[%s4006_s1 + $0x5a0] ss:$8 sps:$4 sm:$0xff]  }
  0x84   :  { %2014 = vmatpush1.bf16.msra.mxu1 %v2847_v25  ;;  %1962 = vmatprep.subr.bf16.mxu0 %v2852_v32  ;;  %v2919_v25 = vld [vmem:[%s4006_s1 + $0x5b0] ss:$8 sps:$4 sm:$0xff]  }
  0x85   :  { %2015 = vmatprep.subr.bf16.mxu1 %v2855_v33  ;;  %1896 = vmatprep.mubr.bf16.mxu0 %v2385_v34  ;;  %v2928_v32 = vld [vmem:[%s4006_s1 + $0x490] ss:$8 sps:$4 sm:$0xff]   ;;  %v2936_v34 = vld [vmem:[%s4006_s1 + $0x484] ss:$8 sps:$4 sm:$0xff]  }
  0x86   :  { %1949 = vmatprep.mubr.bf16.mxu1 %v2387_v35  ;;  %v2931_v33 = vld [vmem:[%s4006_s1 + $0x590] ss:$8 sps:$4 sm:$0xff]   ;;  %v2939_v35 = vld [vmem:[%s4006_s1 + $0x584] ss:$8 sps:$4 sm:$0xff]  }
  0x87   :  { %1963 = vmatpush1.bf16.msra.mxu0 %v2850_v36  ;;  %v2934_v36 = vld [vmem:[%s4006_s1 + $0x480] ss:$8 sps:$4 sm:$0xff]  }
  0x88   :  { %2016 = vmatpush1.bf16.msra.mxu1 %v2853_v37  ;;  %1964 = vmatprep.subr.bf16.mxu0 %v2858_v38  ;;  %v2937_v37 = vld [vmem:[%s4006_s1 + $0x580] ss:$8 sps:$4 sm:$0xff]   ;;  %v2942_v38 = vld [vmem:[%s4006_s1 + $0x674] ss:$8 sps:$4 sm:$0xff]  }
  0x89   :  { %2017 = vmatprep.subr.bf16.mxu1 %v2861_v39  ;;  %v2945_v39 = vld [vmem:[%s4006_s1 + $0x774] ss:$8 sps:$4 sm:$0xff]  }
  0x8a   :  { %1897 = vmatmul.mubr.bf16.gmra.mxu0 %v2384_v44  ;;  %v2374_v44 = vcombine.low %v3567_v46, %v3572_v47  ;;  %v2948_v46 = vld [vmem:[%s4006_s1 + $0x664] ss:$8 sps:$4 sm:$0xff]  }
  0x8b   :  { %1950 = vmatmul.mubr.bf16.gmra.mxu1 %v2386_v45  ;;  %1965 = vmatpush1.bf16.msra.mxu0 %v2856_v40  ;;  %v40_v40 = vld [vmem:[%s4007_s0 + $0xa0] sm:$0xff] }
  0x8c   :  { %2018 = vmatpush1.bf16.msra.mxu1 %v2859_v41  ;;  %1966 = vmatprep.subr.bf16.mxu0 %v2864_v48  ;;  %v2372_v41 = vcombine.low %v3557_v42, %v3562_v43  ;;  %v48_v45 = vld [vmem:[%s4007_s0 + $0xe0] sm:$0xff]  ;;  %v41_v48 = vld [vmem:[%s4007_s0 + $0xa8] sm:$0xff]  ;;  %v2940_v42 = vld [vmem:[%s4006_s1 + $0x670] ss:$8 sps:$4 sm:$0xff]  }
  0x8d   :  { %2019 = vmatprep.subr.bf16.mxu1 %v2867_v49  ;;  %1992 = vmatprep.mubr.bf16.mxu0 %v2373_v50  ;;  %v49_v49 = vld [vmem:[%s4007_s0 + $0xe8] sm:$0xff]  ;;  %v2943_v43 = vld [vmem:[%s4006_s1 + $0x770] ss:$8 sps:$4 sm:$0xff]   ;;  %v2389_v50 = vcombine.high %v40_v40, %v48_v45 }
  0x8e   :  { %2045 = vmatprep.mubr.bf16.mxu1 %v2375_v51  ;;  %v2951_v47 = vld [vmem:[%s4006_s1 + $0x764] ss:$8 sps:$4 sm:$0xff]   ;;  %v2391_v51 = vcombine.high %v41_v48, %v49_v49 }
  0x8f   :  { %1967 = vmatpush1.bf16.msra.mxu0 %v2862_v52  ;;  %v2946_v52 = vld [vmem:[%s4006_s1 + $0x660] ss:$8 sps:$4 sm:$0xff]  }
  0x90   :  { %2020 = vmatpush1.bf16.msra.mxu1 %v2865_v53  ;;  %1968 = vmatprep.subr.bf16.mxu0 %v2870_v54  ;;  %v2949_v53 = vld [vmem:[%s4006_s1 + $0x760] ss:$8 sps:$4 sm:$0xff]   ;;  %v2954_v54 = vld [vmem:[%s4006_s1 + $0x654] ss:$8 sps:$4 sm:$0xff]  }
  0x91   :  { %2021 = vmatprep.subr.bf16.mxu1 %v2873_v55  ;;  %v2957_v55 = vld [vmem:[%s4006_s1 + $0x754] ss:$8 sps:$4 sm:$0xff]  }
  0x93   :  { %1969 = vmatpush1.bf16.msra.mxu0 %v2868_v56  ;;  %v3783_v56 = vld [vmem:[%s4007_s0 + $0x30] sm:$0xff] }
  0x94   :  { %2022 = vmatpush1.bf16.msra.mxu1 %v2871_v57  ;;  %1970 = vmatprep.subr.bf16.mxu0 %v2876_v58  ;;  %v2388_v57 = vcombine.low %v40_v40, %v48_v45  ;;  %v2390_v58 = vcombine.low %v41_v48, %v49_v49  ;;  %v3012_v40 = vld [vmem:[%s4006_s1 + $0x6b0] ss:$8 sps:$4 sm:$0xff]   ;;  %v3023_v45 = vld [vmem:[%s4006_s1 + $0x7a4] ss:$8 sps:$4 sm:$0xff]   ;;  %v3018_v48 = vld [vmem:[%s4006_s1 + $0x6a0] ss:$8 sps:$4 sm:$0xff]  }
  0x95   :  { %2023 = vmatprep.subr.bf16.mxu1 %v2879_v59  ;;  %v3788_v59 = vld [vmem:[%s4007_s0 + $0x70] sm:$0xff]  ;;  %v3021_v49 = vld [vmem:[%s4006_s1 + $0x7a0] ss:$8 sps:$4 sm:$0xff]  }
  0x97   :  { %1971 = vmatpush1.bf16.msra.mxu0 %v2874_v60  ;;  %v3793_v60 = vld [vmem:[%s4007_s0 + $0x38] sm:$0xff] }
  0x98   :  { %2024 = vmatpush1.bf16.msra.mxu1 %v2877_v61  ;;  %1972 = vmatprep.subr.bf16.mxu0 %v2882_v62  ;;  %v3798_v61 = vld [vmem:[%s4007_s0 + $0x78] sm:$0xff] }
  0x99   :  { %2025 = vmatprep.subr.bf16.mxu1 %v2885_v63  ;;  %v2952_v62 = vld [vmem:[%s4006_s1 + $0x650] ss:$8 sps:$4 sm:$0xff]  }
  0x9a   :  { %v2955_v63 = vld [vmem:[%s4006_s1 + $0x750] ss:$8 sps:$4 sm:$0xff]  }
  0x9b   :  { %1973 = vmatpush1.bf16.msra.mxu0 %v2880_v0  ;;  %v2960_v0 = vld [vmem:[%s4006_s1 + $0x644] ss:$8 sps:$4 sm:$0xff]  }
  0x9c   :  { %2026 = vmatpush1.bf16.msra.mxu1 %v2883_v1  ;;  %1974 = vmatprep.subr.bf16.mxu0 %v2888_v2  ;;  %v2963_v1 = vld [vmem:[%s4006_s1 + $0x744] ss:$8 sps:$4 sm:$0xff]   ;;  %v2377_v2 = vcombine.high %v3783_v56, %v3788_v59 }
  0x9d   :  { %2027 = vmatprep.subr.bf16.mxu1 %v2891_v3  ;;  %v2379_v3 = vcombine.high %v3793_v60, %v3798_v61 }
  0x9f   :  { %1975 = vmatpush1.bf16.msra.mxu0 %v2886_v4  ;;  %v2958_v4 = vld [vmem:[%s4006_s1 + $0x640] ss:$8 sps:$4 sm:$0xff]  }
  0xa0   :  { %2028 = vmatpush1.bf16.msra.mxu1 %v2889_v5  ;;  %1976 = vmatprep.subr.bf16.mxu0 %v2894_v6  ;;  %v2961_v5 = vld [vmem:[%s4006_s1 + $0x740] ss:$8 sps:$4 sm:$0xff]   ;;  %v2966_v6 = vld [vmem:[%s4006_s1 + $0x634] ss:$8 sps:$4 sm:$0xff]  }
  0xa1   :  { %2029 = vmatprep.subr.bf16.mxu1 %v2897_v7  ;;  %v2969_v7 = vld [vmem:[%s4006_s1 + $0x734] ss:$8 sps:$4 sm:$0xff]  }
  0xa3   :  { %1977 = vmatpush2.bf16.msra.mxu0 %v2892_v8  ;;  %v2964_v8 = vld [vmem:[%s4006_s1 + $0x630] ss:$8 sps:$4 sm:$0xff]  }
  0xa4   :  { %2030 = vmatpush2.bf16.msra.mxu1 %v2895_v9  ;;  %1978 = vmatprep.subr.bf16.mxu0 %v2900_v10  ;;  %v2967_v9 = vld [vmem:[%s4006_s1 + $0x730] ss:$8 sps:$4 sm:$0xff]   ;;  %v2972_v10 = vld [vmem:[%s4006_s1 + $0x624] ss:$8 sps:$4 sm:$0xff]  }
  0xa5   :  { %2031 = vmatprep.subr.bf16.mxu1 %v2903_v11  ;;  %v2975_v11 = vld [vmem:[%s4006_s1 + $0x724] ss:$8 sps:$4 sm:$0xff]  }
  0xa7   :  { %1979 = vmatpush2.bf16.msra.mxu0 %v2898_v12  ;;  %v2970_v12 = vld [vmem:[%s4006_s1 + $0x620] ss:$8 sps:$4 sm:$0xff]  }
  0xa8   :  { %2032 = vmatpush2.bf16.msra.mxu1 %v2901_v13  ;;  %1980 = vmatprep.subr.bf16.mxu0 %v2906_v14  ;;  %v2973_v13 = vld [vmem:[%s4006_s1 + $0x720] ss:$8 sps:$4 sm:$0xff]   ;;  %v2978_v14 = vld [vmem:[%s4006_s1 + $0x614] ss:$8 sps:$4 sm:$0xff]  }
  0xa9   :  { %2033 = vmatprep.subr.bf16.mxu1 %v2909_v15  ;;  %v2981_v15 = vld [vmem:[%s4006_s1 + $0x714] ss:$8 sps:$4 sm:$0xff]  }
  0xab   :  { %1981 = vmatpush2.bf16.msra.mxu0 %v2904_v16  ;;  %v2976_v16 = vld [vmem:[%s4006_s1 + $0x610] ss:$8 sps:$4 sm:$0xff]  }
  0xac   :  { %2034 = vmatpush2.bf16.msra.mxu1 %v2907_v17  ;;  %1982 = vmatprep.subr.bf16.mxu0 %v2912_v18  ;;  %v2979_v17 = vld [vmem:[%s4006_s1 + $0x710] ss:$8 sps:$4 sm:$0xff]   ;;  %v2984_v18 = vld [vmem:[%s4006_s1 + $0x604] ss:$8 sps:$4 sm:$0xff]  }
  0xad   :  { %2035 = vmatprep.subr.bf16.mxu1 %v2915_v19  ;;  %v2987_v19 = vld [vmem:[%s4006_s1 + $0x704] ss:$8 sps:$4 sm:$0xff]  }
  0xaf   :  { %1983 = vmatpush2.bf16.msra.mxu0 %v2910_v20  ;;  %v2982_v20 = vld [vmem:[%s4006_s1 + $0x600] ss:$8 sps:$4 sm:$0xff]  }
  0xb0   :  { %2036 = vmatpush2.bf16.msra.mxu1 %v2913_v21  ;;  %1984 = vmatprep.subr.bf16.mxu0 %v2918_v22  ;;  %v2985_v21 = vld [vmem:[%s4006_s1 + $0x700] ss:$8 sps:$4 sm:$0xff]   ;;  %v2990_v22 = vld [vmem:[%s4006_s1 + $0x6f4] ss:$8 sps:$4 sm:$0xff]  }
  0xb1   :  { %2037 = vmatprep.subr.bf16.mxu1 %v2921_v23  ;;  %v2993_v23 = vld [vmem:[%s4006_s1 + $0x7f4] ss:$8 sps:$4 sm:$0xff]  }
  0xb3   :  { %1985 = vmatpush2.bf16.msra.mxu0 %v2916_v24  ;;  %v2988_v24 = vld [vmem:[%s4006_s1 + $0x6f0] ss:$8 sps:$4 sm:$0xff]  }
  0xb4   :  { %2038 = vmatpush2.bf16.msra.mxu1 %v2919_v25  ;;  %1986 = vmatprep.subr.bf16.mxu0 %v2924_v26  ;;  %v2991_v25 = vld [vmem:[%s4006_s1 + $0x7f0] ss:$8 sps:$4 sm:$0xff]   ;;  %v2996_v26 = vld [vmem:[%s4006_s1 + $0x6e4] ss:$8 sps:$4 sm:$0xff]  }
  0xb5   :  { %2039 = vmatprep.subr.bf16.mxu1 %v2927_v27  ;;  %v2999_v27 = vld [vmem:[%s4006_s1 + $0x7e4] ss:$8 sps:$4 sm:$0xff]  }
  0xb7   :  { %1987 = vmatpush2.bf16.msra.mxu0 %v2922_v28  ;;  %v2994_v28 = vld [vmem:[%s4006_s1 + $0x6e0] ss:$8 sps:$4 sm:$0xff]  }
  0xb8   :  { %2040 = vmatpush2.bf16.msra.mxu1 %v2925_v29  ;;  %1988 = vmatprep.subr.bf16.mxu0 %v2930_v30  ;;  %v2997_v29 = vld [vmem:[%s4006_s1 + $0x7e0] ss:$8 sps:$4 sm:$0xff]   ;;  %v3002_v30 = vld [vmem:[%s4006_s1 + $0x6d4] ss:$8 sps:$4 sm:$0xff]  }
  0xb9   :  { %2041 = vmatprep.subr.bf16.mxu1 %v2933_v31  ;;  %v3005_v31 = vld [vmem:[%s4006_s1 + $0x7d4] ss:$8 sps:$4 sm:$0xff]  }
  0xbb   :  { %1989 = vmatpush2.bf16.msra.mxu0 %v2928_v32  ;;  %v3000_v32 = vld [vmem:[%s4006_s1 + $0x6d0] ss:$8 sps:$4 sm:$0xff]  }
  0xbc   :  { %2042 = vmatpush2.bf16.msra.mxu1 %v2931_v33  ;;  %1990 = vmatprep.subr.bf16.mxu0 %v2936_v34  ;;  %v3003_v33 = vld [vmem:[%s4006_s1 + $0x7d0] ss:$8 sps:$4 sm:$0xff]   ;;  %v3008_v34 = vld [vmem:[%s4006_s1 + $0x6c4] ss:$8 sps:$4 sm:$0xff]  }
  0xbd   :  { %2043 = vmatprep.subr.bf16.mxu1 %v2939_v35  ;;  %v3011_v35 = vld [vmem:[%s4006_s1 + $0x7c4] ss:$8 sps:$4 sm:$0xff]  }
  0xbf   :  { %1991 = vmatpush2.bf16.msra.mxu0 %v2934_v36  ;;  %v3006_v36 = vld [vmem:[%s4006_s1 + $0x6c0] ss:$8 sps:$4 sm:$0xff]  }
  0xc0   :  { %2044 = vmatpush2.bf16.msra.mxu1 %v2937_v37  ;;  %2066 = vmatprep.subr.bf16.mxu0 %v2942_v38  ;;  %v3009_v37 = vld [vmem:[%s4006_s1 + $0x7c0] ss:$8 sps:$4 sm:$0xff]   ;;  %v3014_v38 = vld [vmem:[%s4006_s1 + $0x6b4] ss:$8 sps:$4 sm:$0xff]  }
  0xc1   :  { %2119 = vmatprep.subr.bf16.mxu1 %v2945_v39  ;;  %v3017_v39 = vld [vmem:[%s4006_s1 + $0x7b4] ss:$8 sps:$4 sm:$0xff]  }
  0xc2   :  { %1993 = vmatmul.mubr.bf16.vlgmr.msra.gmra.mxu0 %v2372_v41  ;;  %v3015_v41 = vld [vmem:[%s4006_s1 + $0x7b0] ss:$8 sps:$4 sm:$0xff]  }
  0xc3   :  { %2046 = vmatmul.mubr.bf16.vlgmr.msra.gmra.mxu1 %v2374_v44  ;;  %2067 = vmatpush1.bf16.msra.mxu0 %v2940_v42  ;;  %v3020_v44 = vld [vmem:[%s4006_s1 + $0x6a4] ss:$8 sps:$4 sm:$0xff]   ;;  %v3026_v42 = vld [vmem:[%s4006_s1 + $0x694] ss:$8 sps:$4 sm:$0xff]  }
  0xc4   :  { %2120 = vmatpush1.bf16.msra.mxu1 %v2943_v43  ;;  %2068 = vmatprep.subr.bf16.mxu0 %v2948_v46  ;;  %v3029_v43 = vld [vmem:[%s4006_s1 + $0x794] ss:$8 sps:$4 sm:$0xff]   ;;  %v3024_v46 = vld [vmem:[%s4006_s1 + $0x690] ss:$8 sps:$4 sm:$0xff]  }
  0xc5   :  { %2121 = vmatprep.subr.bf16.mxu1 %v2951_v47  ;;  %2002 = vmatprep.mubr.bf16.mxu0 %v2389_v50  ;;  %v3027_v47 = vld [vmem:[%s4006_s1 + $0x790] ss:$8 sps:$4 sm:$0xff]   ;;  %v3032_v50 = vld [vmem:[%s4006_s1 + $0x684] ss:$8 sps:$4 sm:$0xff]  }
  0xc6   :  { %2055 = vmatprep.mubr.bf16.mxu1 %v2391_v51  ;;  %v3035_v51 = vld [vmem:[%s4006_s1 + $0x784] ss:$8 sps:$4 sm:$0xff]  }
  0xc7   :  { %2069 = vmatpush1.bf16.msra.mxu0 %v2946_v52  ;;  %v3030_v52 = vld [vmem:[%s4006_s1 + $0x680] ss:$8 sps:$4 sm:$0xff]  }
  0xc8   :  { %2122 = vmatpush1.bf16.msra.mxu1 %v2949_v53  ;;  %2070 = vmatprep.subr.bf16.mxu0 %v2954_v54  ;;  %v3033_v53 = vld [vmem:[%s4006_s1 + $0x780] ss:$8 sps:$4 sm:$0xff]   ;;  %v42_v54 = vld [vmem:[%s4007_s0 + $0xb0] sm:$0xff] }
  0xc9   :  { %2123 = vmatprep.subr.bf16.mxu1 %v2957_v55  ;;  %v50_v55 = vld [vmem:[%s4007_s0 + $0xf0] sm:$0xff] }
  0xca   :  { %2003 = vmatmul.mubr.bf16.gmra.mxu0 %v2388_v57  ;;  %v43_v57 = vld [vmem:[%s4007_s0 + $0xb8] sm:$0xff] }
  0xcb   :  { %2056 = vmatmul.mubr.bf16.gmra.mxu1 %v2390_v58  ;;  %2071 = vmatpush1.bf16.msra.mxu0 %v2952_v62  ;;  %v51_v58 = vld [vmem:[%s4007_s0 + $0xf8] sm:$0xff]  ;;  %v2376_v62 = vcombine.low %v3783_v56, %v3788_v59 }
  0xcc   :  { %2124 = vmatpush1.bf16.msra.mxu1 %v2955_v63  ;;  %2072 = vmatprep.subr.bf16.mxu0 %v2960_v0  ;;  %v2378_v63 = vcombine.low %v3793_v60, %v3798_v61  ;;  %v2393_v0 = vcombine.high %v42_v54, %v50_v55 }
  0xcd   :  { %2125 = vmatprep.subr.bf16.mxu1 %v2963_v1  ;;  %2098 = vmatprep.mubr.bf16.mxu0 %v2377_v2  ;;  %v2395_v1 = vcombine.high %v43_v57, %v51_v58  ;;  %v2392_v2 = vcombine.low %v42_v54, %v50_v55 }
  0xce   :  { %2151 = vmatprep.mubr.bf16.mxu1 %v2379_v3  ;;  %v2394_v3 = vcombine.low %v43_v57, %v51_v58 }
  0xcf   :  { %2073 = vmatpush1.bf16.msra.mxu0 %v2958_v4 }
  0xd0   :  { %2126 = vmatpush1.bf16.msra.mxu1 %v2961_v5  ;;  %2074 = vmatprep.subr.bf16.mxu0 %v2966_v6 }
  0xd1   :  { %2127 = vmatprep.subr.bf16.mxu1 %v2969_v7 }
  0xd3   :  { %2075 = vmatpush1.bf16.msra.mxu0 %v2964_v8 }
  0xd4   :  { %2128 = vmatpush1.bf16.msra.mxu1 %v2967_v9  ;;  %2076 = vmatprep.subr.bf16.mxu0 %v2972_v10 }
  0xd5   :  { %2129 = vmatprep.subr.bf16.mxu1 %v2975_v11 }
  0xd7   :  { %2077 = vmatpush1.bf16.msra.mxu0 %v2970_v12 }
  0xd8   :  { %2130 = vmatpush1.bf16.msra.mxu1 %v2973_v13  ;;  %2078 = vmatprep.subr.bf16.mxu0 %v2978_v14 }
  0xd9   :  { %2131 = vmatprep.subr.bf16.mxu1 %v2981_v15 }
  0xdb   :  { %2079 = vmatpush1.bf16.msra.mxu0 %v2976_v16 }
  0xdc   :  { %2132 = vmatpush1.bf16.msra.mxu1 %v2979_v17  ;;  %2080 = vmatprep.subr.bf16.mxu0 %v2984_v18 }
  0xdd   :  { %2133 = vmatprep.subr.bf16.mxu1 %v2987_v19 }
  0xdf   :  { %2081 = vmatpush1.bf16.msra.mxu0 %v2982_v20 }
  0xe0   :  { %2134 = vmatpush1.bf16.msra.mxu1 %v2985_v21  ;;  %2082 = vmatprep.subr.bf16.mxu0 %v2990_v22 }
  0xe1   :  { %2135 = vmatprep.subr.bf16.mxu1 %v2993_v23 }
  0xe3   :  { %2083 = vmatpush2.bf16.msra.mxu0 %v2988_v24 }
  0xe4   :  { %2136 = vmatpush2.bf16.msra.mxu1 %v2991_v25  ;;  %2084 = vmatprep.subr.bf16.mxu0 %v2996_v26 }
  0xe5   :  { %2137 = vmatprep.subr.bf16.mxu1 %v2999_v27 }
  0xe7   :  { %2085 = vmatpush2.bf16.msra.mxu0 %v2994_v28 }
  0xe8   :  { %2138 = vmatpush2.bf16.msra.mxu1 %v2997_v29  ;;  %2086 = vmatprep.subr.bf16.mxu0 %v3002_v30 }
  0xe9   :  { %2139 = vmatprep.subr.bf16.mxu1 %v3005_v31 }
  0xeb   :  { %2087 = vmatpush2.bf16.msra.mxu0 %v3000_v32 }
  0xec   :  { %2140 = vmatpush2.bf16.msra.mxu1 %v3003_v33  ;;  %2088 = vmatprep.subr.bf16.mxu0 %v3008_v34 }
  0xed   :  { %2141 = vmatprep.subr.bf16.mxu1 %v3011_v35 }
  0xef   :  { %2089 = vmatpush2.bf16.msra.mxu0 %v3006_v36 }
  0xf0   :  { %2142 = vmatpush2.bf16.msra.mxu1 %v3009_v37  ;;  %2090 = vmatprep.subr.bf16.mxu0 %v3014_v38 }
  0xf1   :  { %2143 = vmatprep.subr.bf16.mxu1 %v3017_v39 }
  0xf3   :  { %2091 = vmatpush2.bf16.msra.mxu0 %v3012_v40 }
  0xf4   :  { %2144 = vmatpush2.bf16.msra.mxu1 %v3015_v41  ;;  %2092 = vmatprep.subr.bf16.mxu0 %v3020_v44 }
  0xf5   :  { %2145 = vmatprep.subr.bf16.mxu1 %v3023_v45 }
  0xf7   :  { %2093 = vmatpush2.bf16.msra.mxu0 %v3018_v48 }
  0xf8   :  { %2146 = vmatpush2.bf16.msra.mxu1 %v3021_v49  ;;  %2094 = vmatprep.subr.bf16.mxu0 %v3026_v42 }
  0xf9   :  { %2147 = vmatprep.subr.bf16.mxu1 %v3029_v43 }
  0xfb   :  { %2095 = vmatpush2.bf16.msra.mxu0 %v3024_v46 }
  0xfc   :  { %2148 = vmatpush2.bf16.msra.mxu1 %v3027_v47  ;;  %2096 = vmatprep.subr.bf16.mxu0 %v3032_v50 }
  0xfd   :  { %2149 = vmatprep.subr.bf16.mxu1 %v3035_v51 }
  0xff   :  { %2097 = vmatpush2.bf16.msra.mxu0 %v3030_v52 }
 0x100   :  { %2150 = vmatpush2.bf16.msra.mxu1 %v3033_v53 }
 0x102   :  { %2099 = vmatmul.mubr.bf16.vlgmr.msra.gmra.mxu0 %v2376_v62  ;;  %v1782_v4 = vpop.f32.mrf.mxu0 }
 0x103   :  { %2152 = vmatmul.mubr.bf16.vlgmr.msra.gmra.mxu1 %v2378_v63  ;;  %2108 = vmatprep.mubr.bf16.mxu0 %v2393_v0  ;;  %v1835_v5 = vpop.f32.mrf.mxu1 }
 0x104   :  { %2161 = vmatprep.mubr.bf16.mxu1 %v2395_v1  ;;  %v1784_v6 = vpop.f32.mrf.mxu0  ;;  %v1836_v49 = vadd.f32 %v1835_v5, %v1782_v4 }
 0x105   :  { %v1837_v7 = vpop.f32.mrf.mxu1 }
 0x106   :  { %v1786_v56 = vpop.f32.mrf.mxu0  ;;  %v1838_v50 = vadd.f32 %v1837_v7, %v1784_v6 }
 0x107   :  { %v1839_v59 = vpop.f32.mrf.mxu1 }
 0x108   :  { %v1788_v8 = vpop.f32.mrf.mxu0  ;;  %v1840_v48 = vadd.f32 %v1839_v59, %v1786_v56 }
 0x109   :  { %v1841_v61 = vpop.f32.mrf.mxu1 }
 0x10a   :  { %2109 = vmatmul.mubr.bf16.gmra.mxu0 %v2392_v2  ;;  %v1792_v60 = vpop.f32.mrf.mxu0  ;;  %v1842_v42 = vadd.f32 %v1841_v61, %v1788_v8 }
 0x10b   :  { %2162 = vmatmul.mubr.bf16.gmra.mxu1 %v2394_v3  ;;  %v1845_v9 = vpop.f32.mrf.mxu1 }
 0x10c   :  { %v1794_v10 = vpop.f32.mrf.mxu0  ;;  %v1846_v51 = vadd.f32 %v1845_v9, %v1792_v60 }
 0x10d   :  { %v1847_v11 = vpop.f32.mrf.mxu1 }
 0x10e   :  { %v1796_v12 = vpop.f32.mrf.mxu0  ;;  %v1848_v54 = vadd.f32 %v1847_v11, %v1794_v10 }
 0x10f   :  { %v1849_v13 = vpop.f32.mrf.mxu1 }
 0x110   :  { %v1798_v14 = vpop.f32.mrf.mxu0  ;;  %v1850_v62 = vadd.f32 %v1849_v13, %v1796_v12 }
 0x111   :  { %v1851_v16 = vpop.f32.mrf.mxu1 }
 0x112   :  { %v1852_v4 = vadd.f32 %v1851_v16, %v1798_v14 }
 0x142   :  { %v1888_v15 = vpop.f32.mrf.mxu0 }
 0x143   :  { %v1941_v17 = vpop.f32.mrf.mxu1  ;;  %v1889_v52 = vadd.f32 %v1888_v15, %v1836_v49 }
 0x144   :  { %v1890_v18 = vpop.f32.mrf.mxu0 }
 0x145   :  { %v1943_v19 = vpop.f32.mrf.mxu1  ;;  %v1891_v55 = vadd.f32 %v1890_v18, %v1838_v50  ;;  %v1942_v1 = vadd.f32 %v1941_v17, %v1889_v52 }
 0x146   :  { %v1892_v20 = vpop.f32.mrf.mxu0 }
 0x147   :  { %v1945_v21 = vpop.f32.mrf.mxu1  ;;  %v1893_v43 = vadd.f32 %v1892_v20, %v1840_v48  ;;  %v1944_v61 = vadd.f32 %v1943_v19, %v1891_v55 }
 0x148   :  { %v1894_v22 = vpop.f32.mrf.mxu0 }
 0x149   :  { %v1947_v23 = vpop.f32.mrf.mxu1  ;;  %v1895_v53 = vadd.f32 %v1894_v22, %v1842_v42  ;;  %v1946_v57 = vadd.f32 %v1945_v21, %v1893_v43 }
 0x14a   :  { %v1898_v24 = vpop.f32.mrf.mxu0 }
 0x14b   :  { %v1951_v25 = vpop.f32.mrf.mxu1  ;;  %v1899_v58 = vadd.f32 %v1898_v24, %v1846_v51  ;;  %v1948_v2 = vadd.f32 %v1947_v23, %v1895_v53 }
 0x14c   :  { %v1900_v26 = vpop.f32.mrf.mxu0 }
 0x14d   :  { %v1953_v27 = vpop.f32.mrf.mxu1  ;;  %v1901_v3 = vadd.f32 %v1900_v26, %v1848_v54  ;;  %v1952_v6 = vadd.f32 %v1951_v25, %v1899_v58 }
 0x14e   :  { %v1902_v28 = vpop.f32.mrf.mxu0 }
 0x14f   :  { %v1955_v29 = vpop.f32.mrf.mxu1  ;;  %v1903_v5 = vadd.f32 %v1902_v28, %v1850_v62  ;;  %v1954_v15 = vadd.f32 %v1953_v27, %v1901_v3 }
 0x150   :  { %v1904_v30 = vpop.f32.mrf.mxu0 }
 0x151   :  { %v1957_v31 = vpop.f32.mrf.mxu1  ;;  %v1905_v9 = vadd.f32 %v1904_v30, %v1852_v4  ;;  %v1956_v20 = vadd.f32 %v1955_v29, %v1903_v5 }
 0x153   :  { %v1958_v24 = vadd.f32 %v1957_v31, %v1905_v9 }
 0x182   :  { %v1994_v32 = vpop.f32.mrf.mxu0 }
 0x183   :  { %v2047_v33 = vpop.f32.mrf.mxu1  ;;  %v1995_v7 = vadd.f32 %v1994_v32, %v1942_v1 }
 0x184   :  { %v1996_v34 = vpop.f32.mrf.mxu0 }
 0x185   :  { %v2049_v35 = vpop.f32.mrf.mxu1  ;;  %v1997_v18 = vadd.f32 %v1996_v34, %v1944_v61  ;;  %v2048_v22 = vadd.f32 %v2047_v33, %v1995_v7 }
 0x186   :  { %v1998_v36 = vpop.f32.mrf.mxu0 }
 0x187   :  { %v2051_v37 = vpop.f32.mrf.mxu1  ;;  %v1999_v56 = vadd.f32 %v1998_v36, %v1946_v57  ;;  %v2050_v28 = vadd.f32 %v2049_v35, %v1997_v18 }
 0x188   :  { %v2000_v38 = vpop.f32.mrf.mxu0 }
 0x189   :  { %v2053_v39 = vpop.f32.mrf.mxu1  ;;  %v2001_v60 = vadd.f32 %v2000_v38, %v1948_v2  ;;  %v2052_v12 = vadd.f32 %v2051_v37, %v1999_v56 }
 0x18a   :  { %v2004_v40 = vpop.f32.mrf.mxu0 }
 0x18b   :  { %v2057_v41 = vpop.f32.mrf.mxu1  ;;  %v2005_v13 = vadd.f32 %v2004_v40, %v1952_v6  ;;  %v2054_v23 = vadd.f32 %v2053_v39, %v2001_v60 }
 0x18c   :  { %v2006_v44 = vpop.f32.mrf.mxu0 }
 0x18d   :  { %v2059_v45 = vpop.f32.mrf.mxu1  ;;  %v2007_v14 = vadd.f32 %v2006_v44, %v1954_v15  ;;  %v2058_v32 = vadd.f32 %v2057_v41, %v2005_v13 }
 0x18e   :  { %v2008_v46 = vpop.f32.mrf.mxu0 }
 0x18f   :  { %v2061_v47 = vpop.f32.mrf.mxu1  ;;  %v2009_v26 = vadd.f32 %v2008_v46, %v1956_v20  ;;  %v2060_v37 = vadd.f32 %v2059_v45, %v2007_v14 }
 0x190   :  { %v2010_v63 = vpop.f32.mrf.mxu0 }
 0x191   :  { %v2063_v0 = vpop.f32.mrf.mxu1  ;;  %v2011_v38 = vadd.f32 %v2010_v63, %v1958_v24  ;;  %v2062_v49 = vadd.f32 %v2061_v47, %v2009_v26 }
 0x193   :  { %v2064_v46 = vadd.f32 %v2063_v0, %v2011_v38 }
 0x1c2   :  { %v2100_v59 = vpop.f32.mrf.mxu0 }
 0x1c3   :  { %v2153_v8 = vpop.f32.mrf.mxu1  ;;  %v2101_v30 = vadd.f32 %v2100_v59, %v2048_v22 }
 0x1c4   :  { %v2102_v10 = vpop.f32.mrf.mxu0 }
 0x1c5   :  { %v2155_v11 = vpop.f32.mrf.mxu1  ;;  %v2103_v40 = vadd.f32 %v2102_v10, %v2050_v28  ;;  %v2154_v44 = vadd.f32 %v2153_v8, %v2101_v30 }
 0x1c6   :  { %v2104_v17 = vpop.f32.mrf.mxu0 }
 0x1c7   :  { %v2157_v21 = vpop.f32.mrf.mxu1  ;;  %v2105_v16 = vadd.f32 %v2104_v17, %v2052_v12  ;;  %v2156_v41 = vadd.f32 %v2155_v11, %v2103_v40 }
 0x1c8   :  { %v2106_v19 = vpop.f32.mrf.mxu0 }
 0x1c9   :  { %v2159_v25 = vpop.f32.mrf.mxu1  ;;  %v2107_v36 = vadd.f32 %v2106_v19, %v2054_v23  ;;  %v2158_v29 = vadd.f32 %v2157_v21, %v2105_v16 }
 0x1ca   :  { %v2110_v27 = vpop.f32.mrf.mxu0 }
 0x1cb   :  { %v2163_v34 = vpop.f32.mrf.mxu1  ;;  %v2111_v48 = vadd.f32 %v2110_v27, %v2058_v32  ;;  %v2160_v42 = vadd.f32 %v2159_v25, %v2107_v36  ;;  %v2172_v51 = vadd.f32 %v2158_v29, %v2154_v44 }
 0x1cc   :  { %v2112_v33 = vpop.f32.mrf.mxu0 }
 0x1cd   :  { %v2165_v39 = vpop.f32.mrf.mxu1  ;;  %v2164_v31 = vadd.f32 %v2163_v34, %v2111_v48  ;;  %v2113_v43 = vadd.f32 %v2112_v33, %v2060_v37  ;;  %v2181_v55 = vadd.f32 %v2160_v42, %v2156_v41 }
 0x1ce   :  { %v2114_v50 = vpop.f32.mrf.mxu0 }
 0x1cf   :  { %v2167_v35 = vpop.f32.mrf.mxu1  ;;  %v2166_v52 = vadd.f32 %v2165_v39, %v2113_v43  ;;  %v2115_v53 = vadd.f32 %v2114_v50, %v2062_v49  ;;  %v2173_v45 = vadd.f32 %v2172_v51, %v2164_v31  ;;  %v2242_v51 = vlaneseq }
 0x1d0   :  { %v2116_v54 = vpop.f32.mrf.mxu0 }
 0x1d1   :  { %v2168_v57 = vadd.f32 %v2167_v35, %v2115_v53  ;;  %v2117_v58 = vadd.f32 %v2116_v54, %v2064_v46  ;;  %v2169_v62 = vpop.f32.mrf.mxu1  ;;  %v2182_v47 = vadd.f32 %v2181_v55, %v2166_v52  ;;  %v2243_v53 = vshrl.u32 %v2242_v51, 7  ;;  %v2240_v55 = vld [vmem:[%s4008_s2] sm:$0x3] }
 0x1d3   :  { %v2174_v63 = vadd.f32 %v2173_v45, %v2168_v57  ;;  %v2170_v1 = vadd.f32 %v2169_v62, %v2117_v58  ;;  %v2244_v54 = vsub.s32 0, %v2243_v53  ;;  %v2260_v45 = vld [vmem:[%s4009_s3] sm:$0x3] }
 0x1d5   :  { %v2175_v2 = vrot.slane %v2174_v63, 4  ;;  %v2183_v3 = vadd.f32 %v2182_v47, %v2170_v1  ;;  %v2245_v58 = vrot.slane %v2240_v55, %v2244_v54  ;;  %v2265_v47 = vrot.slane %v2260_v45, %v2244_v54 }
 0x1d7   :  { %v2176_v56 = vadd.f32 %v2175_v2, %v2174_v63  ;;  %v2184_v4 = vrot.slane %v2183_v3, 4 }
 0x1d9   :  { %v2177_v0 = vrot.slane %v2176_v56, 2  ;;  %v2185_v5 = vadd.f32 %v2184_v4, %v2183_v3 }
 0x1db   :  { %v2178_v59 = vadd.f32 %v2177_v0, %v2176_v56  ;;  %v2186_v8 = vrot.slane %v2185_v5, 2 }
 0x1dd   :  { %v2179_v61 = vrot.slane %v2178_v59, 1  ;;  %v2187_v6 = vadd.f32 %v2186_v8, %v2185_v5 }
 0x1df   :  { %v2180_v7 = vadd.f32 %v2179_v61, %v2178_v59  ;;  %v2188_v60 = vrot.slane %v2187_v6, 1 }
 0x1e1   :  { %v2190_v9 = vmul.f32 0.03125, %v2180_v7  ;;  %v2189_v10 = vadd.f32 %v2188_v60, %v2187_v6 }
 0x1e3   :  { %v2192_v11 = vsub.f32 %v2154_v44, %v2190_v9  ;;  %v2194_v15 = vsub.f32 %v2158_v29, %v2190_v9  ;;  %v2196_v18 = vsub.f32 %v2164_v31, %v2190_v9  ;;  %v2191_v12 = vmul.f32 0.03125, %v2189_v10 }
 0x1e4   :  { %v2198_v13 = vsub.f32 %v2168_v57, %v2190_v9  ;;  %v2248_v57 = vsub.s32 1, %v2243_v53 }
 0x1e5   :  { %v2200_v20 = vmul.f32 %v2192_v11, %v2192_v11  ;;  %v2202_v17 = vmul.f32 %v2194_v15, %v2194_v15  ;;  %v2193_v21 = vsub.f32 %v2156_v41, %v2191_v12  ;;  %v2195_v22 = vsub.f32 %v2160_v42, %v2191_v12 }
 0x1e6   :  { %v2197_v23 = vsub.f32 %v2166_v52, %v2191_v12  ;;  %v2204_v14 = vmul.f32 %v2196_v18, %v2196_v18  ;;  %v2199_v24 = vsub.f32 %v2170_v1, %v2191_v12  ;;  %v2206_v25 = vmul.f32 %v2198_v13, %v2198_v13 }
 0x1e7   :  { %v2208_v16 = vadd.f32 %v2202_v17, %v2200_v20  ;;  %v2201_v26 = vmul.f32 %v2193_v21, %v2193_v21  ;;  %v2203_v19 = vmul.f32 %v2195_v22, %v2195_v22  ;;  %v2249_v56 = vrot.slane %v2240_v55, %v2248_v57 }
 0x1e8   :  { %v2205_v32 = vmul.f32 %v2197_v23, %v2197_v23  ;;  %v2207_v38 = vmul.f32 %v2199_v24, %v2199_v24  ;;  %v2269_v4 = vrot.slane %v2260_v45, %v2248_v57 }
 0x1e9   :  { %v2209_v28 = vadd.f32 %v2208_v16, %v2204_v14  ;;  %v2217_v30 = vadd.f32 %v2203_v19, %v2201_v26  ;;  %v2306_v16 = vld [vmem:[%s4010_s4 + $0x10] sm:$0xff]  ;;  %v2307_v19 = vld [vmem:[%s4010_s4 + $0x18] sm:$0xff] }
 0x1eb   :  { %v2210_v36 = vadd.f32 %v2209_v28, %v2206_v25  ;;  %v2218_v27 = vadd.f32 %v2217_v30, %v2205_v32 }
 0x1ed   :  { %v2211_v34 = vrot.slane %v2210_v36, 4  ;;  %v2219_v37 = vadd.f32 %v2218_v27, %v2207_v38  ;;  %v2305_v38 = vld [vmem:[%s4010_s4 + $0x8] sm:$0xff] }
 0x1ef   :  { %v2212_v40 = vadd.f32 %v2211_v34, %v2210_v36  ;;  %v2220_v29 = vrot.slane %v2219_v37, 4  ;;  %v2304_v36 = vld [vmem:[%s4010_s4] sm:$0xff] }
 0x1f1   :  { %v2213_v48 = vrot.slane %v2212_v40, 2  ;;  %v2221_v49 = vadd.f32 %v2220_v29, %v2219_v37 }
 0x1f3   :  { %v2214_v33 = vadd.f32 %v2213_v48, %v2212_v40  ;;  %v2222_v39 = vrot.slane %v2221_v49, 2 }
 0x1f5   :  { %v2215_v44 = vrot.slane %v2214_v33, 1  ;;  %v2223_v42 = vadd.f32 %v2222_v39, %v2221_v49 }
 0x1f7   :  { %v2216_v31 = vadd.f32 %v2215_v44, %v2214_v33  ;;  %v2224_v43 = vrot.slane %v2223_v42, 1 }
 0x1f9   :  { %v2226_v46 = vmul.f32 0.03125, %v2216_v31  ;;  %v2225_v50 = vadd.f32 %v2224_v43, %v2223_v42 }
 0x1fb   :  { %v2228_v35 = vadd.f32 1e-05, %v2226_v46  ;;  %v2227_v41 = vmul.f32 0.03125, %v2225_v50 }
 0x1fd   :  { %3036 = vrsqrt.f32 %v2228_v35  ;;  %v2229_v52 = vadd.f32 1e-05, %v2227_v41 }
 0x1ff   :  { %3038 = vrsqrt.f32 %v2229_v52 }
 0x20a   :  { %v3037_v62 = vpop.eup %3036 }
 0x20b   :  { %v2232_v63 = vmul.f32 %v3037_v62, %v2192_v11  ;;  %v2234_v1 = vmul.f32 %v3037_v62, %v2194_v15  ;;  %v2236_v2 = vmul.f32 %v3037_v62, %v2196_v18  ;;  %v2238_v3 = vmul.f32 %v3037_v62, %v2198_v13 }
 0x20c   :  { %v3039_v0 = vpop.eup %3038 }
 0x20d   :  { %v2252_v5 = vmul.f32 %v2245_v58, %v2232_v63  ;;  %v2254_v59 = vmul.f32 %v2245_v58, %v2234_v1  ;;  %v2256_v8 = vmul.f32 %v2245_v58, %v2236_v2  ;;  %v2258_v61 = vmul.f32 %v2245_v58, %v2238_v3 }
 0x20e   :  { %v2233_v6 = vmul.f32 %v3039_v0, %v2193_v21  ;;  %v2235_v7 = vmul.f32 %v3039_v0, %v2195_v22  ;;  %v2237_v60 = vmul.f32 %v3039_v0, %v2197_v23  ;;  %v2239_v9 = vmul.f32 %v3039_v0, %v2199_v24 }
 0x20f   :  { %v2276_v10 = vadd.f32 %v2265_v47, %v2256_v8  ;;  %v2278_v12 = vadd.f32 %v2265_v47, %v2258_v61  ;;  %v2272_v20 = vadd.f32 %v2265_v47, %v2252_v5  ;;  %v2274_v17 = vadd.f32 %v2265_v47, %v2254_v59 }
 0x210   :  { %v2253_v14 = vmul.f32 %v2249_v56, %v2233_v6  ;;  %v2255_v11 = vmul.f32 %v2249_v56, %v2235_v7  ;;  %v2257_v15 = vmul.f32 %v2249_v56, %v2237_v60  ;;  %v2259_v18 = vmul.f32 %v2249_v56, %v2239_v9 }
 0x211   :  { %vm2286_vm0 = vcmp.gt.f32.partialorder %v2278_v12, 0.0  ;;  %v2294_v13 = vmul.f32 0.2, %v2278_v12  ;;  %vm2280_vm1 = vcmp.gt.f32.partialorder %v2272_v20, 0.0  ;;  %vm2282_vm2 = vcmp.gt.f32.partialorder %v2274_v17, 0.0 }
 0x212   :  { %v2277_v21 = vadd.f32 %v2269_v4, %v2257_v15  ;;  %v2279_v22 = vadd.f32 %v2269_v4, %v2259_v18  ;;  %v2273_v23 = vadd.f32 %v2269_v4, %v2253_v14  ;;  %v2275_v24 = vadd.f32 %v2269_v4, %v2255_v11 }
 0x213   :  { %v2302_v26 = vsel %vm2286_vm0, %v2278_v12, %v2294_v13  ;;  %vm2284_vm3 = vcmp.gt.f32.partialorder %v2276_v10, 0.0  ;;  %v2288_v25 = vmul.f32 0.2, %v2272_v20  ;;  %v2290_v28 = vmul.f32 0.2, %v2274_v17 }
 0x214   :  { %v2314_v32 = vmul.f32 %v2306_v16, %v2302_v26  ;;  %vm2287_vm4 = vcmp.gt.f32.partialorder %v2279_v22, 0.0  ;;  %v2295_v30 = vmul.f32 0.2, %v2279_v22  ;;  %vm2281_vm5 = vcmp.gt.f32.partialorder %v2273_v23, 0.0 }
 0x215   :  { %vm2283_vm6 = vcmp.gt.f32.partialorder %v2275_v24, 0.0  ;;  %vm2285_vm7 = vcmp.gt.f32.partialorder %v2277_v21, 0.0  ;;  %v2289_v27 = vmul.f32 0.2, %v2273_v23  ;;  %v2291_v34 = vmul.f32 0.2, %v2275_v24 }
 0x216   :  { %v2303_v37 = vsel %vm2287_vm4, %v2279_v22, %v2295_v30  ;;  %v2292_v40 = vmul.f32 0.2, %v2276_v10  ;;  %v2293_v29 = vmul.f32 0.2, %v2277_v21  ;;  %v2296_v48 = vsel %vm2280_vm1, %v2272_v20, %v2288_v25 }
 0x217   :  { %v2315_v49 = vmul.f32 %v2307_v19, %v2303_v37  ;;  %v2297_v33 = vsel %vm2281_vm5, %v2273_v23, %v2289_v27  ;;  %v2298_v39 = vsel %vm2282_vm2, %v2274_v17, %v2290_v28  ;;  %v2299_v44 = vsel %vm2283_vm6, %v2275_v24, %v2291_v34 }
 0x218   :  { %v2300_v42 = vsel %vm2284_vm3, %v2276_v10, %v2292_v40  ;;  %v2301_v31 = vsel %vm2285_vm7, %v2277_v21, %v2293_v29  ;;  %v2308_v43 = vmul.f32 %v2304_v36, %v2296_v48  ;;  %v2309_v46 = vmul.f32 %v2305_v38, %v2297_v33 }
 0x219   :  { %v2310_v50 = vmul.f32 %v2306_v16, %v2298_v39  ;;  %v2311_v35 = vmul.f32 %v2307_v19, %v2299_v44  ;;  %v2312_v41 = vmul.f32 %v2304_v36, %v2300_v42  ;;  %v2313_v51 = vmul.f32 %v2305_v38, %v2301_v31 }
 0x21b   :  { %v2316_v52 = vadd.f32 %v2310_v50, %v2308_v43  ;;  %v2323_v53 = vadd.f32 %v2311_v35, %v2309_v46  ;;  %v2330_v54 = vadd.f32 %v2314_v32, %v2312_v41  ;;  %v2337_v55 = vadd.f32 %v2315_v49, %v2313_v51 }
 0x21d   :  { %v2317_v45 = vrot.slane %v2316_v52, 4  ;;  %v2324_v57 = vrot.slane %v2323_v53, 4  ;;  %v2331_v58 = vrot.slane %v2330_v54, 4  ;;  %v2338_v62 = vrot.slane %v2337_v55, 4 }
 0x21f   :  { %v2318_v47 = vadd.f32 %v2317_v45, %v2316_v52  ;;  %v2325_v63 = vadd.f32 %v2324_v57, %v2323_v53  ;;  %v2332_v1 = vadd.f32 %v2331_v58, %v2330_v54  ;;  %v2339_v2 = vadd.f32 %v2338_v62, %v2337_v55 }
 0x221   :  { %v2319_v3 = vrot.slane %v2318_v47, 2  ;;  %v2326_v56 = vrot.slane %v2325_v63, 2  ;;  %v2333_v4 = vrot.slane %v2332_v1, 2  ;;  %v2340_v0 = vrot.slane %v2339_v2, 2 }
 0x223   :  { %v2320_v5 = vadd.f32 %v2319_v3, %v2318_v47  ;;  %v2327_v59 = vadd.f32 %v2326_v56, %v2325_v63  ;;  %v2334_v8 = vadd.f32 %v2333_v4, %v2332_v1  ;;  %v2341_v61 = vadd.f32 %v2340_v0, %v2339_v2 }
 0x225   :  { %v2321_v6 = vrot.slane %v2320_v5, 1  ;;  %v2328_v7 = vrot.slane %v2327_v59, 1  ;;  %v2335_v60 = vrot.slane %v2334_v8, 1  ;;  %v2342_v9 = vrot.slane %v2341_v61, 1 }
 0x227   :  { %v2322_v10 = vadd.f32 %v2321_v6, %v2320_v5  ;;  %v2329_v12 = vadd.f32 %v2328_v7, %v2327_v59  ;;  %v2336_v20 = vadd.f32 %v2335_v60, %v2334_v8  ;;  %v2343_v17 = vadd.f32 %v2342_v9, %v2341_v61 }
 0x229   :  { %v2349_v14 = vsel %vm2348_vm8, %v2336_v20, %v2322_v10  ;;  %v2350_v11 = vsel %vm2348_vm8, %v2343_v17, %v2329_v12 }
 0x22a   :  { %v2354_v15 = vsel %vm2353_vm9, %v2349_v14, 0.0  ;;  %v2355_v18 = vsel %vm2353_vm9, %v2350_v11, 0.0 }
 0x22b   :  { %v2356_v13 = vadd.f32 %v2355_v18, %v2354_v15 }
 0x22d   :  { %2357 = vadd.xlane.f32.xlu0 %v2356_v13 }
 0x2b6   :  { %v2358_v16 = vpop.xlane.xlu0 %2357 }
 0x2b7   :  { %2359 = vst [vmem:[%s4011_s5] sm:$0x3] %v2358_v16 }

</bundles_post_ra>
